<compile_context>
chip_gen: v5e
topology: v5e:2x2
jax: 0.10.0
libtpu: 0.0.40
codegen_flags: <defaults>
</compile_context>

<pallas_src>
import functools
import numpy as np

import jax
import jax.numpy as jnp
from jax.experimental import pallas as pl
from jax.experimental.pallas import tpu as pltpu

EPS = 1e-6
NEG_INF = -1e9


# ----------------------------- in-kernel helpers -----------------------------

def _layernorm(x, g, b):
    mu = jnp.mean(x, axis=-1, keepdims=True)
    var = jnp.mean((x - mu) ** 2, axis=-1, keepdims=True)
    return (x - mu) * jax.lax.rsqrt(var + EPS) * g + b


def _attention_core(q, k, v, mask, wo, bo, num_heads, scale, w_out=None):
    """Multi-head attention on VMEM-resident (L, D) tiles.

    Heads are split via static lane slices.  The head merge + output projection is computed as
    a sum of per-head partial projections (attn @ Wo == sum_h attn_h @ Wo[h*dh:(h+1)*dh, :]),
    so no concatenate / transpose is needed.  If `w_out` is given, per-head softmax weights are
    stored as w_out[0, h] = (Lq, Lk) (exact normalization so rows sum to 1).
    """
    lq, d = q.shape
    dh = d // num_heads
    acc = jnp.zeros((lq, d), jnp.float32)
    for h in range(num_heads):
        lo, hi = h * dh, (h + 1) * dh
        qh, kh, vh = q[:, lo:hi], k[:, lo:hi], v[:, lo:hi]
        s = jax.lax.dot_general(qh, kh, (((1,), (1,)), ((), ())),
                                preferred_element_type=jnp.float32) * scale
        s = s + mask * NEG_INF
        s = s - jnp.max(s, axis=-1, keepdims=True)   # numerically stable softmax
        e = jnp.exp(s)
        w = e / jnp.sum(e, axis=-1, keepdims=True)
        if w_out is not None:
            w_out[0, h] = w
        oh = jnp.dot(w, vh, preferred_element_type=jnp.float32)
        acc = acc + jnp.dot(oh, wo[lo:hi, :], preferred_element_type=jnp.float32)
    return acc + bo


# ----------------------------- fused layer kernels -----------------------------

def _encoder_layer_kernel(x_ref, mask_ref,
                          wqkv_ref, bqkv_ref, wo_ref, bo_ref,
                          g1_ref, bln1_ref,
                          w1_ref, bf1_ref, w2_ref, bf2_ref,
                          g2_ref, bln2_ref,
                          o_ref, *, num_heads, scale):
    # One grid step = one batch element; everything below stays in VMEM.
    x = x_ref[0]                                              # (L, D)
    d = x.shape[-1]

    qkv = jnp.dot(x, wqkv_ref[...], preferred_element_type=jnp.float32) + bqkv_ref[...]
    q, k, v = qkv[:, :d], qkv[:, d:2 * d], qkv[:, 2 * d:]

    attn = _attention_core(q, k, v, mask_ref[0], wo_ref[...], bo_ref[...],
                           num_heads, scale)                  # weights discarded -> never formed

    h1 = _layernorm(x + attn, g1_ref[...], bln1_ref[...])     # fused residual + LN

    f = jnp.dot(h1, w1_ref[...], preferred_element_type=jnp.float32) + bf1_ref[...]
    f = jnp.maximum(f, 0.0)
    f = jnp.dot(f, w2_ref[...], preferred_element_type=jnp.float32) + bf2_ref[...]

    o_ref[0] = _layernorm(h1 + f, g2_ref[...], bln2_ref[...])


def _decoder_layer_kernel(x_ref, enc_ref, la_mask_ref, pad_mask_ref,
                          wqkv1_ref, bqkv1_ref, wo1_ref, bo1_ref, g1_ref, bln1_ref,
                          wq2_ref, bq2_ref, wkv2_ref, bkv2_ref, wo2_ref, bo2_ref,
                          g2_ref, bln2_ref,
                          wf1_ref, bf1_ref, wf2_ref, bf2_ref, g3_ref, bln3_ref,
                          o_ref, blk1_ref, blk2_ref, *, num_heads, scale):
    x = x_ref[0]                                              # (Lt, D)
    enc = enc_ref[0]                                          # (Ls, D)
    d = x.shape[-1]

    # --- masked self-attention (fused QKV) ---
    qkv = jnp.dot(x, wqkv1_ref[...], preferred_element_type=jnp.float32) + bqkv1_ref[...]
    q, k, v = qkv[:, :d], qkv[:, d:2 * d], qkv[:, 2 * d:]
    # TODO(synk): the reference tutorial combines look-ahead with target padding mask; only the
    # look-ahead mask is applied here (as in the given module's call signature).
    attn1 = _attention_core(q, k, v, la_mask_ref[0], wo1_ref[...], bo1_ref[...],
                            num_heads, scale, w_out=blk1_ref)
    out1 = _layernorm(attn1 + x, g1_ref[...], bln1_ref[...])

    # --- cross-attention on encoder output (fused KV) ---
    q2 = jnp.dot(out1, wq2_ref[...], preferred_element_type=jnp.float32) + bq2_ref[...]
    kv2 = jnp.dot(enc, wkv2_ref[...], preferred_element_type=jnp.float32) + bkv2_ref[...]
    k2, v2 = kv2[:, :d], kv2[:, d:]
    attn2 = _attention_core(q2, k2, v2, pad_mask_ref[0], wo2_ref[...], bo2_ref[...],
                            num_heads, scale, w_out=blk2_ref)
    out2 = _layernorm(attn2 + out1, g2_ref[...], bln2_ref[...])

    # --- FFN ---
    f = jnp.dot(out2, wf1_ref[...], preferred_element_type=jnp.float32) + bf1_ref[...]
    f = jnp.maximum(f, 0.0)
    f = jnp.dot(f, wf2_ref[...], preferred_element_type=jnp.float32) + bf2_ref[...]

    o_ref[0] = _layernorm(f + out2, g3_ref[...], bln3_ref[...])


def _final_linear_kernel(x_ref, w_ref, b_ref, o_ref):
    o_ref[0] = jnp.dot(x_ref[0], w_ref[...], preferred_element_type=jnp.float32) + b_ref[...]


# ----------------------------- pallas_call wrappers -----------------------------

def _const_spec(arr):
    nd = arr.ndim
    return pl.BlockSpec(arr.shape, lambda b: (0,) * nd)


def encoder_layer_pallas(p, x, mask, num_heads):
    B, L, D = x.shape
    scale = 1.0 / float(np.sqrt(D // num_heads))
    weights = (p["wqkv"], p["bqkv"], p["wo"], p["bo"],
               p["g1"], p["bln1"],
               p["w1"], p["bf1"], p["w2"], p["bf2"],
               p["g2"], p["bln2"])
    in_specs = [pl.BlockSpec((1, L, D), lambda b: (b, 0, 0)),
                pl.BlockSpec((1, L, L), lambda b: (b, 0, 0))]
    in_specs += [_const_spec(a) for a in weights]
    return pl.pallas_call(
        functools.partial(_encoder_layer_kernel, num_heads=num_heads, scale=scale),
        grid=(B,),
        in_specs=in_specs,
        out_specs=pl.BlockSpec((1, L, D), lambda b: (b, 0, 0)),
        out_shape=jax.ShapeDtypeStruct((B, L, D), jnp.float32),
        compiler_params=pltpu.CompilerParams(dimension_semantics=("parallel",)),
    )(x, mask, *weights)


def decoder_layer_pallas(p, x, enc_out, la_mask, pad_mask, num_heads):
    B, Lt, D = x.shape
    Ls = enc_out.shape[1]
    H = num_heads
    scale = 1.0 / float(np.sqrt(D // num_heads))
    weights = (p["wqkv1"], p["bqkv1"], p["wo1"], p["bo1"], p["g1"], p["bln1"],
               p["wq2"], p["bq2"], p["wkv2"], p["bkv2"], p["wo2"], p["bo2"],
               p["g2"], p["bln2"],
               p["wf1"], p["bf1"], p["wf2"], p["bf2"], p["g3"], p["bln3"])
    in_specs = [pl.BlockSpec((1, Lt, D), lambda b: (b, 0, 0)),
                pl.BlockSpec((1, Ls, D), lambda b: (b, 0, 0)),
                pl.BlockSpec((1, Lt, Lt), lambda b: (b, 0, 0)),
                pl.BlockSpec((1, Lt, Ls), lambda b: (b, 0, 0))]
    in_specs += [_const_spec(a) for a in weights]
    out_shape = (jax.ShapeDtypeStruct((B, Lt, D), jnp.float32),
                 jax.ShapeDtypeStruct((B, H, Lt, Lt), jnp.float32),
                 jax.ShapeDtypeStruct((B, H, Lt, Ls), jnp.float32))
    out_specs = (pl.BlockSpec((1, Lt, D), lambda b: (b, 0, 0)),
                 pl.BlockSpec((1, H, Lt, Lt), lambda b: (b, 0, 0, 0)),
                 pl.BlockSpec((1, H, Lt, Ls), lambda b: (b, 0, 0, 0)))
    y, blk1, blk2 = pl.pallas_call(
        functools.partial(_decoder_layer_kernel, num_heads=num_heads, scale=scale),
        grid=(B,),
        in_specs=in_specs,
        out_specs=out_specs,
        out_shape=out_shape,
        compiler_params=pltpu.CompilerParams(dimension_semantics=("parallel",)),
    )(x, enc_out, la_mask, pad_mask, *weights)
    return y, blk1, blk2


def final_linear_pallas(x, w, b):
    B, L, D = x.shape
    V = w.shape[1]
    return pl.pallas_call(
        _final_linear_kernel,
        grid=(B,),
        in_specs=[pl.BlockSpec((1, L, D), lambda i: (i, 0, 0)),
                  _const_spec(w), _const_spec(b)],
        out_specs=pl.BlockSpec((1, L, V), lambda i: (i, 0, 0)),
        out_shape=jax.ShapeDtypeStruct((B, L, V), jnp.float32),
        compiler_params=pltpu.CompilerParams(dimension_semantics=("parallel",)),
    )(x, w, b)


# ----------------------------- model forward -----------------------------

def positional_encoding(position, d_model):
    pos = np.arange(position)[:, None].astype(np.float32)
    i = np.arange(d_model)[None, :].astype(np.float32)
    angle_rates = 1.0 / np.power(10000.0, (2.0 * np.floor(i / 2.0)) / np.float32(d_model))
    angle_rads = pos * angle_rates
    angle_rads[:, 0::2] = np.sin(angle_rads[:, 0::2])
    angle_rads[:, 1::2] = np.cos(angle_rads[:, 1::2])
    return jnp.asarray(angle_rads[None, ...], dtype=jnp.float32)  # (1, pos, d_model)


def _compact_mask(mask, B, Lq, Lk):
    # Masks are head-invariant here (padding / look-ahead) -> drop the head axis entirely.
    if mask is None:
        return jnp.zeros((B, Lq, Lk), jnp.float32)
    m = mask[:, 0, :, :]
    return jnp.broadcast_to(m, (B, Lq, Lk)).astype(jnp.float32)


def encoder_forward(p, tokens, mask, num_heads, d_model):
    B, L = tokens.shape
    # TODO(synk): nn.Embedding gather + pos-encoding add left to XLA (no clean Pallas gather here).
    x = jnp.take(p["embedding"], tokens, axis=0) * jnp.sqrt(jnp.float32(d_model))
    x = x + p["pos_encoding"][:, :L, :]
    # TODO(synk): nn.Dropout is stochastic; implemented as identity (eval/inference semantics).
    m = _compact_mask(mask, B, L, L)
    for lp in p["layers"]:
        x = encoder_layer_pallas(lp, x, m, num_heads)
    return x


def decoder_forward(p, tokens, enc_output, look_ahead_mask, padding_mask, num_heads, d_model):
    B, Lt = tokens.shape
    Ls = enc_output.shape[1]
    x = jnp.take(p["embedding"], tokens, axis=0) * jnp.sqrt(jnp.float32(d_model))
    x = x + p["pos_encoding"][:, :Lt, :]
    la = _compact_mask(look_ahead_mask, B, Lt, Lt)
    pm = _compact_mask(padding_mask, B, Lt, Ls)
    attention_weights = {}
    for i, lp in enumerate(p["layers"]):
        x, blk1, blk2 = decoder_layer_pallas(lp, x, enc_output, la, pm, num_heads)
        attention_weights[f"decoder_layer{i}_block1"] = blk1
        attention_weights[f"decoder_layer{i}_block2"] = blk2
    return x, attention_weights


def transformer_forward(params, inp, tar, enc_padding_mask, look_ahead_mask,
                        dec_padding_mask, num_heads, d_model):
    enc_output = encoder_forward(params["encoder"], inp, enc_padding_mask, num_heads, d_model)
    dec_output, attention_weights = decoder_forward(
        params["decoder"], tar, enc_output, look_ahead_mask, dec_padding_mask,
        num_heads, d_model)
    final_output = final_linear_pallas(dec_output, params["final"]["w"], params["final"]["b"])
    return final_output, attention_weights


# ----------------------------- parameter init -----------------------------
# All weights stored pre-transposed as (Din, Dout); QKV / KV fused weights pre-concatenated here
# (host side, once) so the hot path never concatenates.

def init_linear_t(key, din, dout):
    w = jax.random.normal(key, (din, dout), jnp.float32) * 0.02
    b = jnp.zeros((1, dout), jnp.float32)
    return w, b


def init_ln(d_model):
    return jnp.ones((1, d_model), jnp.float32), jnp.zeros((1, d_model), jnp.float32)


def init_encoder_layer(key, d_model, dff):
    k = jax.random.split(key, 6)
    wq, bq = init_linear_t(k[0], d_model, d_model)
    wk, bk = init_linear_t(k[1], d_model, d_model)
    wv, bv = init_linear_t(k[2], d_model, d_model)
    wo, bo = init_linear_t(k[3], d_model, d_model)
    w1, bf1 = init_linear_t(k[4], d_model, dff)
    w2, bf2 = init_linear_t(k[5], dff, d_model)
    g1, bln1 = init_ln(d_model)
    g2, bln2 = init_ln(d_model)
    return {"wqkv": jnp.concatenate([wq, wk, wv], axis=1),
            "bqkv": jnp.concatenate([bq, bk, bv], axis=1),
            "wo": wo, "bo": bo, "g1": g1, "bln1": bln1,
            "w1": w1, "bf1": bf1, "w2": w2, "bf2": bf2,
            "g2": g2, "bln2": bln2}


def init_decoder_layer(key, d_model, dff):
    k = jax.random.split(key, 10)
    wq1, bq1 = init_linear_t(k[0], d_model, d_model)
    wk1, bk1 = init_linear_t(k[1], d_model, d_model)
    wv1, bv1 = init_linear_t(k[2], d_model, d_model)
    wo1, bo1 = init_linear_t(k[3], d_model, d_model)
    wq2, bq2 = init_linear_t(k[4], d_model, d_model)
    wk2, bk2 = init_linear_t(k[5], d_model, d_model)
    wv2, bv2 = init_linear_t(k[6], d_model, d_model)
    wo2, bo2 = init_linear_t(k[7], d_model, d_model)
    wf1, bf1 = init_linear_t(k[8], d_model, dff)
    wf2, bf2 = init_linear_t(k[9], dff, d_model)
    g1, bln1 = init_ln(d_model)
    g2, bln2 = init_ln(d_model)
    g3, bln3 = init_ln(d_model)
    return {"wqkv1": jnp.concatenate([wq1, wk1, wv1], axis=1),
            "bqkv1": jnp.concatenate([bq1, bk1, bv1], axis=1),
            "wo1": wo1, "bo1": bo1, "g1": g1, "bln1": bln1,
            "wq2": wq2, "bq2": bq2,
            "wkv2": jnp.concatenate([wk2, wv2], axis=1),
            "bkv2": jnp.concatenate([bk2, bv2], axis=1),
            "wo2": wo2, "bo2": bo2, "g2": g2, "bln2": bln2,
            "wf1": wf1, "bf1": bf1, "wf2": wf2, "bf2": bf2,
            "g3": g3, "bln3": bln3}


def init_transformer(key, n_layers, d_model, dff, input_vocab_size, target_vocab_size,
                     pe_input, pe_target):
    keys = jax.random.split(key, 3 + 2 * n_layers)
    enc = {
        "embedding": jax.random.normal(keys[0], (input_vocab_size, d_model), jnp.float32) * 0.02,
        "pos_encoding": positional_encoding(pe_input, d_model),
        "layers": [init_encoder_layer(keys[3 + i], d_model, dff) for i in range(n_layers)],
    }
    dec = {
        "embedding": jax.random.normal(keys[1], (target_vocab_size, d_model), jnp.float32) * 0.02,
        "pos_encoding": positional_encoding(pe_target, d_model),
        "layers": [init_decoder_layer(keys[3 + n_layers + i], d_model, dff)
                   for i in range(n_layers)],
    }
    wf, bf = init_linear_t(keys[2], d_model, target_vocab_size)
    return {"encoder": enc, "decoder": dec, "final": {"w": wf, "b": bf}}


# ----------------------------- main -----------------------------

if __name__ == "__main__":
    n_layers = 2
    d_model = 32
    num_heads = 2
    dff = 64
    input_vocab_size = 50
    target_vocab_size = 60
    pe_input = 40
    pe_target = 40

    B, Ls, Lt = 2, 8, 8

    root = jax.random.PRNGKey(0)
    k_param, k_inp, k_tar = jax.random.split(root, 3)
    params = init_transformer(k_param, n_layers, d_model, dff,
                              input_vocab_size, target_vocab_size, pe_input, pe_target)

    inp = jax.random.randint(k_inp, (B, Ls), 0, input_vocab_size, dtype=jnp.int32)
    tar = jax.random.randint(k_tar, (B, Lt), 0, target_vocab_size, dtype=jnp.int32)

    # masks: 1.0 marks positions to mask out (added as -1e9 to attention logits)
    enc_padding_mask = jnp.zeros((B, 1, 1, Ls), jnp.float32)
    look_ahead_mask = (1.0 - jnp.tril(jnp.ones((Lt, Lt), jnp.float32)))[None, None, :, :]
    dec_padding_mask = jnp.zeros((B, 1, 1, Ls), jnp.float32)

    fwd = jax.jit(functools.partial(transformer_forward,
                                    num_heads=num_heads, d_model=d_model))
    final_output, attention_weights = fwd(
        params, inp, tar, enc_padding_mask, look_ahead_mask, dec_padding_mask)

    jax.block_until_ready(final_output)
    for v in attention_weights.values():
        jax.block_until_ready(v)

    assert final_output.shape == (B, Lt, target_vocab_size)
    assert attention_weights["decoder_layer0_block1"].shape == (B, num_heads, Lt, Lt)
    assert attention_weights["decoder_layer0_block2"].shape == (B, num_heads, Lt, Ls)
    print("KERNEL_OK")
</pallas_src>

<mosaic_0001>
module attributes {stable_mosaic.version = 11 : i64} {
  func.func @_encoder_layer_kernel(%arg0: i32, %arg1: memref<1x8x32xf32, #tpu.memory_space<vmem>>, %arg2: memref<1x8x8xf32, #tpu.memory_space<vmem>>, %arg3: memref<32x96xf32, #tpu.memory_space<vmem>>, %arg4: memref<1x96xf32, #tpu.memory_space<vmem>>, %arg5: memref<32x32xf32, #tpu.memory_space<vmem>>, %arg6: memref<1x32xf32, #tpu.memory_space<vmem>>, %arg7: memref<1x32xf32, #tpu.memory_space<vmem>>, %arg8: memref<1x32xf32, #tpu.memory_space<vmem>>, %arg9: memref<32x64xf32, #tpu.memory_space<vmem>>, %arg10: memref<1x64xf32, #tpu.memory_space<vmem>>, %arg11: memref<64x32xf32, #tpu.memory_space<vmem>>, %arg12: memref<1x32xf32, #tpu.memory_space<vmem>>, %arg13: memref<1x32xf32, #tpu.memory_space<vmem>>, %arg14: memref<1x32xf32, #tpu.memory_space<vmem>>, %arg15: memref<1x8x32xf32, #tpu.memory_space<vmem>>) attributes {dimension_semantics = [#tpu.dimension_semantics<parallel>], iteration_bounds = array<i64: 2>, scalar_prefetch = 0 : i64, scratch_operands = 0 : i64, tpu.core_type = #tpu.core_type<tc>, window_params = [{transform_indices = @transform_0, window_bounds = array<i64: 1, 8, 32>}, {transform_indices = @transform_1, window_bounds = array<i64: 1, 8, 8>}, {pipeline_mode = #tpu.pipeline_mode<synchronous>, transform_indices = @transform_2, window_bounds = array<i64: 32, 96>}, {pipeline_mode = #tpu.pipeline_mode<synchronous>, transform_indices = @transform_3, window_bounds = array<i64: 1, 96>}, {pipeline_mode = #tpu.pipeline_mode<synchronous>, transform_indices = @transform_4, window_bounds = array<i64: 32, 32>}, {pipeline_mode = #tpu.pipeline_mode<synchronous>, transform_indices = @transform_5, window_bounds = array<i64: 1, 32>}, {pipeline_mode = #tpu.pipeline_mode<synchronous>, transform_indices = @transform_6, window_bounds = array<i64: 1, 32>}, {pipeline_mode = #tpu.pipeline_mode<synchronous>, transform_indices = @transform_7, window_bounds = array<i64: 1, 32>}, {pipeline_mode = #tpu.pipeline_mode<synchronous>, transform_indices = @transform_8, window_bounds = array<i64: 32, 64>}, {pipeline_mode = #tpu.pipeline_mode<synchronous>, transform_indices = @transform_9, window_bounds = array<i64: 1, 64>}, {pipeline_mode = #tpu.pipeline_mode<synchronous>, transform_indices = @transform_10, window_bounds = array<i64: 64, 32>}, {pipeline_mode = #tpu.pipeline_mode<synchronous>, transform_indices = @transform_11, window_bounds = array<i64: 1, 32>}, {pipeline_mode = #tpu.pipeline_mode<synchronous>, transform_indices = @transform_12, window_bounds = array<i64: 1, 32>}, {pipeline_mode = #tpu.pipeline_mode<synchronous>, transform_indices = @transform_13, window_bounds = array<i64: 1, 32>}, {transform_indices = @transform_14, window_bounds = array<i64: 1, 8, 32>}]} {
    %c0 = arith.constant 0 : index
    %c0_0 = arith.constant 0 : index
    %c0_1 = arith.constant 0 : index
    %0 = vector.load %arg1[%c0, %c0_0, %c0_1] : memref<1x8x32xf32, #tpu.memory_space<vmem>>, vector<1x8x32xf32>
    %1 = vector.shape_cast %0 : vector<1x8x32xf32> to vector<8x32xf32>
    %c0_2 = arith.constant 0 : index
    %c0_3 = arith.constant 0 : index
    %2 = vector.load %arg3[%c0_2, %c0_3] : memref<32x96xf32, #tpu.memory_space<vmem>>, vector<32x96xf32>
    %cst = arith.constant dense<0.000000e+00> : vector<8x96xf32>
    %3 = tpu.matmul %1, %2, %cst {dimension_numbers = #tpu.dot_dimension_numbers<[1], [0], [0], [1], [0, 0, 1, 1], [], []>} : vector<8x32xf32>, vector<32x96xf32>, vector<8x96xf32> -> vector<8x96xf32>
    %c0_4 = arith.constant 0 : index
    %c0_5 = arith.constant 0 : index
    %4 = vector.load %arg4[%c0_4, %c0_5] : memref<1x96xf32, #tpu.memory_space<vmem>>, vector<1x96xf32>
    %5 = vector.broadcast %4 : vector<1x96xf32> to vector<8x96xf32>
    %6 = arith.addf %3, %5 : vector<8x96xf32>
    %7 = vector.extract_strided_slice %6 {offsets = [0, 0], sizes = [8, 32], strides = [1, 1]} : vector<8x96xf32> to vector<8x32xf32>
    %8 = vector.extract_strided_slice %6 {offsets = [0, 32], sizes = [8, 32], strides = [1, 1]} : vector<8x96xf32> to vector<8x32xf32>
    %9 = vector.extract_strided_slice %6 {offsets = [0, 64], sizes = [8, 32], strides = [1, 1]} : vector<8x96xf32> to vector<8x32xf32>
    %c0_6 = arith.constant 0 : index
    %c0_7 = arith.constant 0 : index
    %c0_8 = arith.constant 0 : index
    %10 = vector.load %arg2[%c0_6, %c0_7, %c0_8] : memref<1x8x8xf32, #tpu.memory_space<vmem>>, vector<1x8x8xf32>
    %11 = vector.shape_cast %10 : vector<1x8x8xf32> to vector<8x8xf32>
    %c0_9 = arith.constant 0 : index
    %c0_10 = arith.constant 0 : index
    %12 = vector.load %arg5[%c0_9, %c0_10] : memref<32x32xf32, #tpu.memory_space<vmem>>, vector<32x32xf32>
    %c0_11 = arith.constant 0 : index
    %c0_12 = arith.constant 0 : index
    %13 = vector.load %arg6[%c0_11, %c0_12] : memref<1x32xf32, #tpu.memory_space<vmem>>, vector<1x32xf32>
    %cst_13 = arith.constant 0.000000e+00 : f32
    %14 = vector.broadcast %cst_13 : f32 to vector<8x32xf32>
    %15 = vector.extract_strided_slice %7 {offsets = [0, 0], sizes = [8, 16], strides = [1, 1]} : vector<8x32xf32> to vector<8x16xf32>
    %16 = vector.extract_strided_slice %8 {offsets = [0, 0], sizes = [8, 16], strides = [1, 1]} : vector<8x32xf32> to vector<8x16xf32>
    %17 = vector.extract_strided_slice %9 {offsets = [0, 0], sizes = [8, 16], strides = [1, 1]} : vector<8x32xf32> to vector<8x16xf32>
    %cst_14 = arith.constant dense<0.000000e+00> : vector<8x8xf32>
    %18 = tpu.matmul %15, %16, %cst_14 {dimension_numbers = #tpu.dot_dimension_numbers<[1], [1], [0], [0], [0, 0, 1, 0], [], []>} : vector<8x16xf32>, vector<8x16xf32>, vector<8x8xf32> -> vector<8x8xf32>
    %cst_15 = arith.constant 2.500000e-01 : f32
    %19 = vector.broadcast %cst_15 : f32 to vector<8x8xf32>
    %20 = arith.mulf %18, %19 : vector<8x8xf32>
    %cst_16 = arith.constant -1.000000e+09 : f32
    %21 = vector.broadcast %cst_16 : f32 to vector<8x8xf32>
    %22 = arith.mulf %11, %21 : vector<8x8xf32>
    %23 = arith.addf %20, %22 : vector<8x8xf32>
    %cst_17 = arith.constant dense<0xFF800000> : vector<8xf32>
    %24 = vector.multi_reduction <maximumf>, %23, %cst_17 [1] : vector<8x8xf32> to vector<8xf32>
    %25 = vector.shape_cast %24 : vector<8xf32> to vector<8x1xf32>
    %26 = vector.broadcast %25 : vector<8x1xf32> to vector<8x8xf32>
    %27 = arith.subf %23, %26 : vector<8x8xf32>
    %28 = math.exp %27 : vector<8x8xf32>
    %cst_18 = arith.constant dense<0.000000e+00> : vector<8xf32>
    %29 = vector.multi_reduction <add>, %28, %cst_18 [1] : vector<8x8xf32> to vector<8xf32>
    %30 = vector.shape_cast %29 : vector<8xf32> to vector<8x1xf32>
    %31 = vector.broadcast %30 : vector<8x1xf32> to vector<8x8xf32>
    %32 = arith.divf %28, %31 : vector<8x8xf32>
    %cst_19 = arith.constant dense<0.000000e+00> : vector<8x16xf32>
    %33 = tpu.matmul %32, %17, %cst_19 {dimension_numbers = #tpu.dot_dimension_numbers<[1], [0], [0], [1], [0, 0, 1, 1], [], []>} : vector<8x8xf32>, vector<8x16xf32>, vector<8x16xf32> -> vector<8x16xf32>
    %34 = vector.extract_strided_slice %12 {offsets = [0, 0], sizes = [16, 32], strides = [1, 1]} : vector<32x32xf32> to vector<16x32xf32>
    %cst_20 = arith.constant dense<0.000000e+00> : vector<8x32xf32>
    %35 = tpu.matmul %33, %34, %cst_20 {dimension_numbers = #tpu.dot_dimension_numbers<[1], [0], [0], [1], [0, 0, 1, 1], [], []>} : vector<8x16xf32>, vector<16x32xf32>, vector<8x32xf32> -> vector<8x32xf32>
    %36 = arith.addf %14, %35 : vector<8x32xf32>
    %37 = vector.extract_strided_slice %7 {offsets = [0, 16], sizes = [8, 16], strides = [1, 1]} : vector<8x32xf32> to vector<8x16xf32>
    %38 = vector.extract_strided_slice %8 {offsets = [0, 16], sizes = [8, 16], strides = [1, 1]} : vector<8x32xf32> to vector<8x16xf32>
    %39 = vector.extract_strided_slice %9 {offsets = [0, 16], sizes = [8, 16], strides = [1, 1]} : vector<8x32xf32> to vector<8x16xf32>
    %cst_21 = arith.constant dense<0.000000e+00> : vector<8x8xf32>
    %40 = tpu.matmul %37, %38, %cst_21 {dimension_numbers = #tpu.dot_dimension_numbers<[1], [1], [0], [0], [0, 0, 1, 0], [], []>} : vector<8x16xf32>, vector<8x16xf32>, vector<8x8xf32> -> vector<8x8xf32>
    %cst_22 = arith.constant 2.500000e-01 : f32
    %41 = vector.broadcast %cst_22 : f32 to vector<8x8xf32>
    %42 = arith.mulf %40, %41 : vector<8x8xf32>
    %cst_23 = arith.constant -1.000000e+09 : f32
    %43 = vector.broadcast %cst_23 : f32 to vector<8x8xf32>
    %44 = arith.mulf %11, %43 : vector<8x8xf32>
    %45 = arith.addf %42, %44 : vector<8x8xf32>
    %cst_24 = arith.constant dense<0xFF800000> : vector<8xf32>
    %46 = vector.multi_reduction <maximumf>, %45, %cst_24 [1] : vector<8x8xf32> to vector<8xf32>
    %47 = vector.shape_cast %46 : vector<8xf32> to vector<8x1xf32>
    %48 = vector.broadcast %47 : vector<8x1xf32> to vector<8x8xf32>
    %49 = arith.subf %45, %48 : vector<8x8xf32>
    %50 = math.exp %49 : vector<8x8xf32>
    %cst_25 = arith.constant dense<0.000000e+00> : vector<8xf32>
    %51 = vector.multi_reduction <add>, %50, %cst_25 [1] : vector<8x8xf32> to vector<8xf32>
    %52 = vector.shape_cast %51 : vector<8xf32> to vector<8x1xf32>
    %53 = vector.broadcast %52 : vector<8x1xf32> to vector<8x8xf32>
    %54 = arith.divf %50, %53 : vector<8x8xf32>
    %cst_26 = arith.constant dense<0.000000e+00> : vector<8x16xf32>
    %55 = tpu.matmul %54, %39, %cst_26 {dimension_numbers = #tpu.dot_dimension_numbers<[1], [0], [0], [1], [0, 0, 1, 1], [], []>} : vector<8x8xf32>, vector<8x16xf32>, vector<8x16xf32> -> vector<8x16xf32>
    %56 = vector.extract_strided_slice %12 {offsets = [16, 0], sizes = [16, 32], strides = [1, 1]} : vector<32x32xf32> to vector<16x32xf32>
    %cst_27 = arith.constant dense<0.000000e+00> : vector<8x32xf32>
    %57 = tpu.matmul %55, %56, %cst_27 {dimension_numbers = #tpu.dot_dimension_numbers<[1], [0], [0], [1], [0, 0, 1, 1], [], []>} : vector<8x16xf32>, vector<16x32xf32>, vector<8x32xf32> -> vector<8x32xf32>
    %58 = arith.addf %36, %57 : vector<8x32xf32>
    %59 = vector.broadcast %13 : vector<1x32xf32> to vector<8x32xf32>
    %60 = arith.addf %58, %59 : vector<8x32xf32>
    %61 = arith.addf %1, %60 : vector<8x32xf32>
    %c0_28 = arith.constant 0 : index
    %c0_29 = arith.constant 0 : index
    %62 = vector.load %arg7[%c0_28, %c0_29] : memref<1x32xf32, #tpu.memory_space<vmem>>, vector<1x32xf32>
    %c0_30 = arith.constant 0 : index
    %c0_31 = arith.constant 0 : index
    %63 = vector.load %arg8[%c0_30, %c0_31] : memref<1x32xf32, #tpu.memory_space<vmem>>, vector<1x32xf32>
    %cst_32 = arith.constant dense<0.000000e+00> : vector<8xf32>
    %64 = vector.multi_reduction <add>, %61, %cst_32 [1] : vector<8x32xf32> to vector<8xf32>
    %65 = vector.shape_cast %64 : vector<8xf32> to vector<8x1xf32>
    %cst_33 = arith.constant 3.200000e+01 : f32
    %66 = vector.broadcast %cst_33 : f32 to vector<8x1xf32>
    %67 = arith.divf %65, %66 : vector<8x1xf32>
    %68 = vector.broadcast %67 : vector<8x1xf32> to vector<8x32xf32>
    %69 = arith.subf %61, %68 : vector<8x32xf32>
    %70 = arith.mulf %69, %69 : vector<8x32xf32>
    %cst_34 = arith.constant dense<0.000000e+00> : vector<8xf32>
    %71 = vector.multi_reduction <add>, %70, %cst_34 [1] : vector<8x32xf32> to vector<8xf32>
    %72 = vector.shape_cast %71 : vector<8xf32> to vector<8x1xf32>
    %cst_35 = arith.constant 3.200000e+01 : f32
    %73 = vector.broadcast %cst_35 : f32 to vector<8x1xf32>
    %74 = arith.divf %72, %73 : vector<8x1xf32>
    %75 = vector.broadcast %67 : vector<8x1xf32> to vector<8x32xf32>
    %76 = arith.subf %61, %75 : vector<8x32xf32>
    %cst_36 = arith.constant 9.99999997E-7 : f32
    %77 = vector.broadcast %cst_36 : f32 to vector<8x1xf32>
    %78 = arith.addf %74, %77 : vector<8x1xf32>
    %79 = math.rsqrt %78 : vector<8x1xf32>
    %80 = vector.broadcast %79 : vector<8x1xf32> to vector<8x32xf32>
    %81 = arith.mulf %76, %80 : vector<8x32xf32>
    %82 = vector.broadcast %62 : vector<1x32xf32> to vector<8x32xf32>
    %83 = arith.mulf %81, %82 : vector<8x32xf32>
    %84 = vector.broadcast %63 : vector<1x32xf32> to vector<8x32xf32>
    %85 = arith.addf %83, %84 : vector<8x32xf32>
    %c0_37 = arith.constant 0 : index
    %c0_38 = arith.constant 0 : index
    %86 = vector.load %arg9[%c0_37, %c0_38] : memref<32x64xf32, #tpu.memory_space<vmem>>, vector<32x64xf32>
    %cst_39 = arith.constant dense<0.000000e+00> : vector<8x64xf32>
    %87 = tpu.matmul %85, %86, %cst_39 {dimension_numbers = #tpu.dot_dimension_numbers<[1], [0], [0], [1], [0, 0, 1, 1], [], []>} : vector<8x32xf32>, vector<32x64xf32>, vector<8x64xf32> -> vector<8x64xf32>
    %c0_40 = arith.constant 0 : index
    %c0_41 = arith.constant 0 : index
    %88 = vector.load %arg10[%c0_40, %c0_41] : memref<1x64xf32, #tpu.memory_space<vmem>>, vector<1x64xf32>
    %89 = vector.broadcast %88 : vector<1x64xf32> to vector<8x64xf32>
    %90 = arith.addf %87, %89 : vector<8x64xf32>
    %cst_42 = arith.constant 0.000000e+00 : f32
    %91 = vector.broadcast %cst_42 : f32 to vector<8x64xf32>
    %92 = arith.maximumf %90, %91 : vector<8x64xf32>
    %c0_43 = arith.constant 0 : index
    %c0_44 = arith.constant 0 : index
    %93 = vector.load %arg11[%c0_43, %c0_44] : memref<64x32xf32, #tpu.memory_space<vmem>>, vector<64x32xf32>
    %cst_45 = arith.constant dense<0.000000e+00> : vector<8x32xf32>
    %94 = tpu.matmul %92, %93, %cst_45 {dimension_numbers = #tpu.dot_dimension_numbers<[1], [0], [0], [1], [0, 0, 1, 1], [], []>} : vector<8x64xf32>, vector<64x32xf32>, vector<8x32xf32> -> vector<8x32xf32>
    %c0_46 = arith.constant 0 : index
    %c0_47 = arith.constant 0 : index
    %95 = vector.load %arg12[%c0_46, %c0_47] : memref<1x32xf32, #tpu.memory_space<vmem>>, vector<1x32xf32>
    %96 = vector.broadcast %95 : vector<1x32xf32> to vector<8x32xf32>
    %97 = arith.addf %94, %96 : vector<8x32xf32>
    %98 = arith.addf %85, %97 : vector<8x32xf32>
    %c0_48 = arith.constant 0 : index
    %c0_49 = arith.constant 0 : index
    %99 = vector.load %arg13[%c0_48, %c0_49] : memref<1x32xf32, #tpu.memory_space<vmem>>, vector<1x32xf32>
    %c0_50 = arith.constant 0 : index
    %c0_51 = arith.constant 0 : index
    %100 = vector.load %arg14[%c0_50, %c0_51] : memref<1x32xf32, #tpu.memory_space<vmem>>, vector<1x32xf32>
    %cst_52 = arith.constant dense<0.000000e+00> : vector<8xf32>
    %101 = vector.multi_reduction <add>, %98, %cst_52 [1] : vector<8x32xf32> to vector<8xf32>
    %102 = vector.shape_cast %101 : vector<8xf32> to vector<8x1xf32>
    %cst_53 = arith.constant 3.200000e+01 : f32
    %103 = vector.broadcast %cst_53 : f32 to vector<8x1xf32>
    %104 = arith.divf %102, %103 : vector<8x1xf32>
    %105 = vector.broadcast %104 : vector<8x1xf32> to vector<8x32xf32>
    %106 = arith.subf %98, %105 : vector<8x32xf32>
    %107 = arith.mulf %106, %106 : vector<8x32xf32>
    %cst_54 = arith.constant dense<0.000000e+00> : vector<8xf32>
    %108 = vector.multi_reduction <add>, %107, %cst_54 [1] : vector<8x32xf32> to vector<8xf32>
    %109 = vector.shape_cast %108 : vector<8xf32> to vector<8x1xf32>
    %cst_55 = arith.constant 3.200000e+01 : f32
    %110 = vector.broadcast %cst_55 : f32 to vector<8x1xf32>
    %111 = arith.divf %109, %110 : vector<8x1xf32>
    %112 = vector.broadcast %104 : vector<8x1xf32> to vector<8x32xf32>
    %113 = arith.subf %98, %112 : vector<8x32xf32>
    %cst_56 = arith.constant 9.99999997E-7 : f32
    %114 = vector.broadcast %cst_56 : f32 to vector<8x1xf32>
    %115 = arith.addf %111, %114 : vector<8x1xf32>
    %116 = math.rsqrt %115 : vector<8x1xf32>
    %117 = vector.broadcast %116 : vector<8x1xf32> to vector<8x32xf32>
    %118 = arith.mulf %113, %117 : vector<8x32xf32>
    %119 = vector.broadcast %99 : vector<1x32xf32> to vector<8x32xf32>
    %120 = arith.mulf %118, %119 : vector<8x32xf32>
    %121 = vector.broadcast %100 : vector<1x32xf32> to vector<8x32xf32>
    %122 = arith.addf %120, %121 : vector<8x32xf32>
    %c0_57 = arith.constant 0 : index
    %c0_58 = arith.constant 0 : index
    %c0_59 = arith.constant 0 : index
    %123 = vector.load %arg15[%c0_57, %c0_58, %c0_59] : memref<1x8x32xf32, #tpu.memory_space<vmem>>, vector<1x8x32xf32>
    %124 = vector.shape_cast %123 : vector<1x8x32xf32> to vector<8x32xf32>
    %125 = vector.shape_cast %122 : vector<8x32xf32> to vector<1x8x32xf32>
    tpu.vector_store %arg15[%c0_57, %c0_58, %c0_59], %125 {strides = array<i32>} : memref<1x8x32xf32, #tpu.memory_space<vmem>>, vector<1x8x32xf32>,
    return
  }
  func.func @transform_0(%arg0: i32) -> (i32, i32, i32) {
    %c0_i32 = arith.constant 0 : i32
    %c0_i32_0 = arith.constant 0 : i32
    %c0_i32_1 = arith.constant 0 : i32
    return %arg0, %c0_i32, %c0_i32_0 : i32, i32, i32
  }
  func.func @transform_1(%arg0: i32) -> (i32, i32, i32) {
    %c0_i32 = arith.constant 0 : i32
    %c0_i32_0 = arith.constant 0 : i32
    %c0_i32_1 = arith.constant 0 : i32
    return %arg0, %c0_i32, %c0_i32_0 : i32, i32, i32
  }
  func.func @transform_2(%arg0: i32) -> (i32, i32) {
    %c0_i32 = arith.constant 0 : i32
    %c0_i32_0 = arith.constant 0 : i32
    %c0_i32_1 = arith.constant 0 : i32
    return %c0_i32, %c0_i32_0 : i32, i32
  }
  func.func @transform_3(%arg0: i32) -> (i32, i32) {
    %c0_i32 = arith.constant 0 : i32
    %c0_i32_0 = arith.constant 0 : i32
    %c0_i32_1 = arith.constant 0 : i32
    return %c0_i32, %c0_i32_0 : i32, i32
  }
  func.func @transform_4(%arg0: i32) -> (i32, i32) {
    %c0_i32 = arith.constant 0 : i32
    %c0_i32_0 = arith.constant 0 : i32
    %c0_i32_1 = arith.constant 0 : i32
    return %c0_i32, %c0_i32_0 : i32, i32
  }
  func.func @transform_5(%arg0: i32) -> (i32, i32) {
    %c0_i32 = arith.constant 0 : i32
    %c0_i32_0 = arith.constant 0 : i32
    %c0_i32_1 = arith.constant 0 : i32
    return %c0_i32, %c0_i32_0 : i32, i32
  }
  func.func @transform_6(%arg0: i32) -> (i32, i32) {
    %c0_i32 = arith.constant 0 : i32
    %c0_i32_0 = arith.constant 0 : i32
    %c0_i32_1 = arith.constant 0 : i32
    return %c0_i32, %c0_i32_0 : i32, i32
  }
  func.func @transform_7(%arg0: i32) -> (i32, i32) {
    %c0_i32 = arith.constant 0 : i32
    %c0_i32_0 = arith.constant 0 : i32
    %c0_i32_1 = arith.constant 0 : i32
    return %c0_i32, %c0_i32_0 : i32, i32
  }
  func.func @transform_8(%arg0: i32) -> (i32, i32) {
    %c0_i32 = arith.constant 0 : i32
    %c0_i32_0 = arith.constant 0 : i32
    %c0_i32_1 = arith.constant 0 : i32
    return %c0_i32, %c0_i32_0 : i32, i32
  }
  func.func @transform_9(%arg0: i32) -> (i32, i32) {
    %c0_i32 = arith.constant 0 : i32
    %c0_i32_0 = arith.constant 0 : i32
    %c0_i32_1 = arith.constant 0 : i32
    return %c0_i32, %c0_i32_0 : i32, i32
  }
  func.func @transform_10(%arg0: i32) -> (i32, i32) {
    %c0_i32 = arith.constant 0 : i32
    %c0_i32_0 = arith.constant 0 : i32
    %c0_i32_1 = arith.constant 0 : i32
    return %c0_i32, %c0_i32_0 : i32, i32
  }
  func.func @transform_11(%arg0: i32) -> (i32, i32) {
    %c0_i32 = arith.constant 0 : i32
    %c0_i32_0 = arith.constant 0 : i32
    %c0_i32_1 = arith.constant 0 : i32
    return %c0_i32, %c0_i32_0 : i32, i32
  }
  func.func @transform_12(%arg0: i32) -> (i32, i32) {
    %c0_i32 = arith.constant 0 : i32
    %c0_i32_0 = arith.constant 0 : i32
    %c0_i32_1 = arith.constant 0 : i32
    return %c0_i32, %c0_i32_0 : i32, i32
  }
  func.func @transform_13(%arg0: i32) -> (i32, i32) {
    %c0_i32 = arith.constant 0 : i32
    %c0_i32_0 = arith.constant 0 : i32
    %c0_i32_1 = arith.constant 0 : i32
    return %c0_i32, %c0_i32_0 : i32, i32
  }
  func.func @transform_14(%arg0: i32) -> (i32, i32, i32) {
    %c0_i32 = arith.constant 0 : i32
    %c0_i32_0 = arith.constant 0 : i32
    %c0_i32_1 = arith.constant 0 : i32
    return %arg0, %c0_i32, %c0_i32_0 : i32, i32, i32
  }
}

module attributes {stable_mosaic.version = 11 : i64} {
  func.func @_final_linear_kernel(%arg0: i32, %arg1: memref<1x8x32xf32, #tpu.memory_space<vmem>>, %arg2: memref<32x60xf32, #tpu.memory_space<vmem>>, %arg3: memref<1x60xf32, #tpu.memory_space<vmem>>, %arg4: memref<1x8x60xf32, #tpu.memory_space<vmem>>) attributes {dimension_semantics = [#tpu.dimension_semantics<parallel>], iteration_bounds = array<i64: 2>, scalar_prefetch = 0 : i64, scratch_operands = 0 : i64, tpu.core_type = #tpu.core_type<tc>, window_params = [{transform_indices = @transform_0, window_bounds = array<i64: 1, 8, 32>}, {pipeline_mode = #tpu.pipeline_mode<synchronous>, transform_indices = @transform_1, window_bounds = array<i64: 32, 60>}, {pipeline_mode = #tpu.pipeline_mode<synchronous>, transform_indices = @transform_2, window_bounds = array<i64: 1, 60>}, {transform_indices = @transform_3, window_bounds = array<i64: 1, 8, 60>}]} {
    %c0 = arith.constant 0 : index
    %c0_0 = arith.constant 0 : index
    %c0_1 = arith.constant 0 : index
    %0 = vector.load %arg1[%c0, %c0_0, %c0_1] : memref<1x8x32xf32, #tpu.memory_space<vmem>>, vector<1x8x32xf32>
    %1 = vector.shape_cast %0 : vector<1x8x32xf32> to vector<8x32xf32>
    %c0_2 = arith.constant 0 : index
    %c0_3 = arith.constant 0 : index
    %2 = vector.load %arg2[%c0_2, %c0_3] : memref<32x60xf32, #tpu.memory_space<vmem>>, vector<32x60xf32>
    %cst = arith.constant dense<0.000000e+00> : vector<8x60xf32>
    %3 = tpu.matmul %1, %2, %cst {dimension_numbers = #tpu.dot_dimension_numbers<[1], [0], [0], [1], [0, 0, 1, 1], [], []>} : vector<8x32xf32>, vector<32x60xf32>, vector<8x60xf32> -> vector<8x60xf32>
    %c0_4 = arith.constant 0 : index
    %c0_5 = arith.constant 0 : index
    %4 = vector.load %arg3[%c0_4, %c0_5] : memref<1x60xf32, #tpu.memory_space<vmem>>, vector<1x60xf32>
    %5 = vector.broadcast %4 : vector<1x60xf32> to vector<8x60xf32>
    %6 = arith.addf %3, %5 : vector<8x60xf32>
    %c0_6 = arith.constant 0 : index
    %c0_7 = arith.constant 0 : index
    %c0_8 = arith.constant 0 : index
    %7 = vector.load %arg4[%c0_6, %c0_7, %c0_8] : memref<1x8x60xf32, #tpu.memory_space<vmem>>, vector<1x8x60xf32>
    %8 = vector.shape_cast %7 : vector<1x8x60xf32> to vector<8x60xf32>
    %9 = vector.shape_cast %6 : vector<8x60xf32> to vector<1x8x60xf32>
    tpu.vector_store %arg4[%c0_6, %c0_7, %c0_8], %9 {strides = array<i32>} : memref<1x8x60xf32, #tpu.memory_space<vmem>>, vector<1x8x60xf32>,
    return
  }
  func.func @transform_0(%arg0: i32) -> (i32, i32, i32) {
    %c0_i32 = arith.constant 0 : i32
    %c0_i32_0 = arith.constant 0 : i32
    %c0_i32_1 = arith.constant 0 : i32
    return %arg0, %c0_i32, %c0_i32_0 : i32, i32, i32
  }
  func.func @transform_1(%arg0: i32) -> (i32, i32) {
    %c0_i32 = arith.constant 0 : i32
    %c0_i32_0 = arith.constant 0 : i32
    %c0_i32_1 = arith.constant 0 : i32
    return %c0_i32, %c0_i32_0 : i32, i32
  }
  func.func @transform_2(%arg0: i32) -> (i32, i32) {
    %c0_i32 = arith.constant 0 : i32
    %c0_i32_0 = arith.constant 0 : i32
    %c0_i32_1 = arith.constant 0 : i32
    return %c0_i32, %c0_i32_0 : i32, i32
  }
  func.func @transform_3(%arg0: i32) -> (i32, i32, i32) {
    %c0_i32 = arith.constant 0 : i32
    %c0_i32_0 = arith.constant 0 : i32
    %c0_i32_1 = arith.constant 0 : i32
    return %arg0, %c0_i32, %c0_i32_0 : i32, i32, i32
  }
}

module attributes {stable_mosaic.version = 11 : i64} {
  func.func @_decoder_layer_kernel(%arg0: i32, %arg1: memref<1x8x32xf32, #tpu.memory_space<vmem>>, %arg2: memref<1x8x32xf32, #tpu.memory_space<vmem>>, %arg3: memref<1x8x8xf32, #tpu.memory_space<vmem>>, %arg4: memref<1x8x8xf32, #tpu.memory_space<vmem>>, %arg5: memref<32x96xf32, #tpu.memory_space<vmem>>, %arg6: memref<1x96xf32, #tpu.memory_space<vmem>>, %arg7: memref<32x32xf32, #tpu.memory_space<vmem>>, %arg8: memref<1x32xf32, #tpu.memory_space<vmem>>, %arg9: memref<1x32xf32, #tpu.memory_space<vmem>>, %arg10: memref<1x32xf32, #tpu.memory_space<vmem>>, %arg11: memref<32x32xf32, #tpu.memory_space<vmem>>, %arg12: memref<1x32xf32, #tpu.memory_space<vmem>>, %arg13: memref<32x64xf32, #tpu.memory_space<vmem>>, %arg14: memref<1x64xf32, #tpu.memory_space<vmem>>, %arg15: memref<32x32xf32, #tpu.memory_space<vmem>>, %arg16: memref<1x32xf32, #tpu.memory_space<vmem>>, %arg17: memref<1x32xf32, #tpu.memory_space<vmem>>, %arg18: memref<1x32xf32, #tpu.memory_space<vmem>>, %arg19: memref<32x64xf32, #tpu.memory_space<vmem>>, %arg20: memref<1x64xf32, #tpu.memory_space<vmem>>, %arg21: memref<64x32xf32, #tpu.memory_space<vmem>>, %arg22: memref<1x32xf32, #tpu.memory_space<vmem>>, %arg23: memref<1x32xf32, #tpu.memory_space<vmem>>, %arg24: memref<1x32xf32, #tpu.memory_space<vmem>>, %arg25: memref<1x8x32xf32, #tpu.memory_space<vmem>>, %arg26: memref<1x2x8x8xf32, #tpu.memory_space<vmem>>, %arg27: memref<1x2x8x8xf32, #tpu.memory_space<vmem>>) attributes {dimension_semantics = [#tpu.dimension_semantics<parallel>], iteration_bounds = array<i64: 2>, scalar_prefetch = 0 : i64, scratch_operands = 0 : i64, tpu.core_type = #tpu.core_type<tc>, window_params = [{transform_indices = @transform_0, window_bounds = array<i64: 1, 8, 32>}, {transform_indices = @transform_1, window_bounds = array<i64: 1, 8, 32>}, {transform_indices = @transform_2, window_bounds = array<i64: 1, 8, 8>}, {transform_indices = @transform_3, window_bounds = array<i64: 1, 8, 8>}, {pipeline_mode = #tpu.pipeline_mode<synchronous>, transform_indices = @transform_4, window_bounds = array<i64: 32, 96>}, {pipeline_mode = #tpu.pipeline_mode<synchronous>, transform_indices = @transform_5, window_bounds = array<i64: 1, 96>}, {pipeline_mode = #tpu.pipeline_mode<synchronous>, transform_indices = @transform_6, window_bounds = array<i64: 32, 32>}, {pipeline_mode = #tpu.pipeline_mode<synchronous>, transform_indices = @transform_7, window_bounds = array<i64: 1, 32>}, {pipeline_mode = #tpu.pipeline_mode<synchronous>, transform_indices = @transform_8, window_bounds = array<i64: 1, 32>}, {pipeline_mode = #tpu.pipeline_mode<synchronous>, transform_indices = @transform_9, window_bounds = array<i64: 1, 32>}, {pipeline_mode = #tpu.pipeline_mode<synchronous>, transform_indices = @transform_10, window_bounds = array<i64: 32, 32>}, {pipeline_mode = #tpu.pipeline_mode<synchronous>, transform_indices = @transform_11, window_bounds = array<i64: 1, 32>}, {pipeline_mode = #tpu.pipeline_mode<synchronous>, transform_indices = @transform_12, window_bounds = array<i64: 32, 64>}, {pipeline_mode = #tpu.pipeline_mode<synchronous>, transform_indices = @transform_13, window_bounds = array<i64: 1, 64>}, {pipeline_mode = #tpu.pipeline_mode<synchronous>, transform_indices = @transform_14, window_bounds = array<i64: 32, 32>}, {pipeline_mode = #tpu.pipeline_mode<synchronous>, transform_indices = @transform_15, window_bounds = array<i64: 1, 32>}, {pipeline_mode = #tpu.pipeline_mode<synchronous>, transform_indices = @transform_16, window_bounds = array<i64: 1, 32>}, {pipeline_mode = #tpu.pipeline_mode<synchronous>, transform_indices = @transform_17, window_bounds = array<i64: 1, 32>}, {pipeline_mode = #tpu.pipeline_mode<synchronous>, transform_indices = @transform_18, window_bounds = array<i64: 32, 64>}, {pipeline_mode = #tpu.pipeline_mode<synchronous>, transform_indices = @transform_19, window_bounds = array<i64: 1, 64>}, {pipeline_mode = #tpu.pipeline_mode<synchronous>, transform_indices = @transform_20, window_bounds = array<i64: 64, 32>}, {pipeline_mode = #tpu.pipeline_mode<synchronous>, transform_indices = @transform_21, window_bounds = array<i64: 1, 32>}, {pipeline_mode = #tpu.pipeline_mode<synchronous>, transform_indices = @transform_22, window_bounds = array<i64: 1, 32>}, {pipeline_mode = #tpu.pipeline_mode<synchronous>, transform_indices = @transform_23, window_bounds = array<i64: 1, 32>}, {transform_indices = @transform_24, window_bounds = array<i64: 1, 8, 32>}, {transform_indices = @transform_25, window_bounds = array<i64: 1, 2, 8, 8>}, {transform_indices = @transform_26, window_bounds = array<i64: 1, 2, 8, 8>}]} {
    %c0 = arith.constant 0 : index
    %c0_0 = arith.constant 0 : index
    %c0_1 = arith.constant 0 : index
    %0 = vector.load %arg1[%c0, %c0_0, %c0_1] : memref<1x8x32xf32, #tpu.memory_space<vmem>>, vector<1x8x32xf32>
    %1 = vector.shape_cast %0 : vector<1x8x32xf32> to vector<8x32xf32>
    %c0_2 = arith.constant 0 : index
    %c0_3 = arith.constant 0 : index
    %c0_4 = arith.constant 0 : index
    %2 = vector.load %arg2[%c0_2, %c0_3, %c0_4] : memref<1x8x32xf32, #tpu.memory_space<vmem>>, vector<1x8x32xf32>
    %3 = vector.shape_cast %2 : vector<1x8x32xf32> to vector<8x32xf32>
    %c0_5 = arith.constant 0 : index
    %c0_6 = arith.constant 0 : index
    %4 = vector.load %arg5[%c0_5, %c0_6] : memref<32x96xf32, #tpu.memory_space<vmem>>, vector<32x96xf32>
    %cst = arith.constant dense<0.000000e+00> : vector<8x96xf32>
    %5 = tpu.matmul %1, %4, %cst {dimension_numbers = #tpu.dot_dimension_numbers<[1], [0], [0], [1], [0, 0, 1, 1], [], []>} : vector<8x32xf32>, vector<32x96xf32>, vector<8x96xf32> -> vector<8x96xf32>
    %c0_7 = arith.constant 0 : index
    %c0_8 = arith.constant 0 : index
    %6 = vector.load %arg6[%c0_7, %c0_8] : memref<1x96xf32, #tpu.memory_space<vmem>>, vector<1x96xf32>
    %7 = vector.broadcast %6 : vector<1x96xf32> to vector<8x96xf32>
    %8 = arith.addf %5, %7 : vector<8x96xf32>
    %9 = vector.extract_strided_slice %8 {offsets = [0, 0], sizes = [8, 32], strides = [1, 1]} : vector<8x96xf32> to vector<8x32xf32>
    %10 = vector.extract_strided_slice %8 {offsets = [0, 32], sizes = [8, 32], strides = [1, 1]} : vector<8x96xf32> to vector<8x32xf32>
    %11 = vector.extract_strided_slice %8 {offsets = [0, 64], sizes = [8, 32], strides = [1, 1]} : vector<8x96xf32> to vector<8x32xf32>
    %c0_9 = arith.constant 0 : index
    %c0_10 = arith.constant 0 : index
    %c0_11 = arith.constant 0 : index
    %12 = vector.load %arg3[%c0_9, %c0_10, %c0_11] : memref<1x8x8xf32, #tpu.memory_space<vmem>>, vector<1x8x8xf32>
    %13 = vector.shape_cast %12 : vector<1x8x8xf32> to vector<8x8xf32>
    %c0_12 = arith.constant 0 : index
    %c0_13 = arith.constant 0 : index
    %14 = vector.load %arg7[%c0_12, %c0_13] : memref<32x32xf32, #tpu.memory_space<vmem>>, vector<32x32xf32>
    %c0_14 = arith.constant 0 : index
    %c0_15 = arith.constant 0 : index
    %15 = vector.load %arg8[%c0_14, %c0_15] : memref<1x32xf32, #tpu.memory_space<vmem>>, vector<1x32xf32>
    %cst_16 = arith.constant 0.000000e+00 : f32
    %16 = vector.broadcast %cst_16 : f32 to vector<8x32xf32>
    %17 = vector.extract_strided_slice %9 {offsets = [0, 0], sizes = [8, 16], strides = [1, 1]} : vector<8x32xf32> to vector<8x16xf32>
    %18 = vector.extract_strided_slice %10 {offsets = [0, 0], sizes = [8, 16], strides = [1, 1]} : vector<8x32xf32> to vector<8x16xf32>
    %19 = vector.extract_strided_slice %11 {offsets = [0, 0], sizes = [8, 16], strides = [1, 1]} : vector<8x32xf32> to vector<8x16xf32>
    %cst_17 = arith.constant dense<0.000000e+00> : vector<8x8xf32>
    %20 = tpu.matmul %17, %18, %cst_17 {dimension_numbers = #tpu.dot_dimension_numbers<[1], [1], [0], [0], [0, 0, 1, 0], [], []>} : vector<8x16xf32>, vector<8x16xf32>, vector<8x8xf32> -> vector<8x8xf32>
    %cst_18 = arith.constant 2.500000e-01 : f32
    %21 = vector.broadcast %cst_18 : f32 to vector<8x8xf32>
    %22 = arith.mulf %20, %21 : vector<8x8xf32>
    %cst_19 = arith.constant -1.000000e+09 : f32
    %23 = vector.broadcast %cst_19 : f32 to vector<8x8xf32>
    %24 = arith.mulf %13, %23 : vector<8x8xf32>
    %25 = arith.addf %22, %24 : vector<8x8xf32>
    %cst_20 = arith.constant dense<0xFF800000> : vector<8xf32>
    %26 = vector.multi_reduction <maximumf>, %25, %cst_20 [1] : vector<8x8xf32> to vector<8xf32>
    %27 = vector.shape_cast %26 : vector<8xf32> to vector<8x1xf32>
    %28 = vector.broadcast %27 : vector<8x1xf32> to vector<8x8xf32>
    %29 = arith.subf %25, %28 : vector<8x8xf32>
    %30 = math.exp %29 : vector<8x8xf32>
    %cst_21 = arith.constant dense<0.000000e+00> : vector<8xf32>
    %31 = vector.multi_reduction <add>, %30, %cst_21 [1] : vector<8x8xf32> to vector<8xf32>
    %32 = vector.shape_cast %31 : vector<8xf32> to vector<8x1xf32>
    %33 = vector.broadcast %32 : vector<8x1xf32> to vector<8x8xf32>
    %34 = arith.divf %30, %33 : vector<8x8xf32>
    %c0_22 = arith.constant 0 : index
    %c0_23 = arith.constant 0 : index
    %c0_24 = arith.constant 0 : index
    %c0_25 = arith.constant 0 : index
    %35 = vector.load %arg26[%c0_22, %c0_23, %c0_24, %c0_25] : memref<1x2x8x8xf32, #tpu.memory_space<vmem>>, vector<1x1x8x8xf32>
    %36 = vector.shape_cast %35 : vector<1x1x8x8xf32> to vector<8x8xf32>
    %37 = vector.shape_cast %34 : vector<8x8xf32> to vector<1x1x8x8xf32>
    tpu.vector_store %arg26[%c0_22, %c0_23, %c0_24, %c0_25], %37 {strides = array<i32>} : memref<1x2x8x8xf32, #tpu.memory_space<vmem>>, vector<1x1x8x8xf32>,
    %cst_26 = arith.constant dense<0.000000e+00> : vector<8x16xf32>
    %38 = tpu.matmul %34, %19, %cst_26 {dimension_numbers = #tpu.dot_dimension_numbers<[1], [0], [0], [1], [0, 0, 1, 1], [], []>} : vector<8x8xf32>, vector<8x16xf32>, vector<8x16xf32> -> vector<8x16xf32>
    %39 = vector.extract_strided_slice %14 {offsets = [0, 0], sizes = [16, 32], strides = [1, 1]} : vector<32x32xf32> to vector<16x32xf32>
    %cst_27 = arith.constant dense<0.000000e+00> : vector<8x32xf32>
    %40 = tpu.matmul %38, %39, %cst_27 {dimension_numbers = #tpu.dot_dimension_numbers<[1], [0], [0], [1], [0, 0, 1, 1], [], []>} : vector<8x16xf32>, vector<16x32xf32>, vector<8x32xf32> -> vector<8x32xf32>
    %41 = arith.addf %16, %40 : vector<8x32xf32>
    %42 = vector.extract_strided_slice %9 {offsets = [0, 16], sizes = [8, 16], strides = [1, 1]} : vector<8x32xf32> to vector<8x16xf32>
    %43 = vector.extract_strided_slice %10 {offsets = [0, 16], sizes = [8, 16], strides = [1, 1]} : vector<8x32xf32> to vector<8x16xf32>
    %44 = vector.extract_strided_slice %11 {offsets = [0, 16], sizes = [8, 16], strides = [1, 1]} : vector<8x32xf32> to vector<8x16xf32>
    %cst_28 = arith.constant dense<0.000000e+00> : vector<8x8xf32>
    %45 = tpu.matmul %42, %43, %cst_28 {dimension_numbers = #tpu.dot_dimension_numbers<[1], [1], [0], [0], [0, 0, 1, 0], [], []>} : vector<8x16xf32>, vector<8x16xf32>, vector<8x8xf32> -> vector<8x8xf32>
    %cst_29 = arith.constant 2.500000e-01 : f32
    %46 = vector.broadcast %cst_29 : f32 to vector<8x8xf32>
    %47 = arith.mulf %45, %46 : vector<8x8xf32>
    %cst_30 = arith.constant -1.000000e+09 : f32
    %48 = vector.broadcast %cst_30 : f32 to vector<8x8xf32>
    %49 = arith.mulf %13, %48 : vector<8x8xf32>
    %50 = arith.addf %47, %49 : vector<8x8xf32>
    %cst_31 = arith.constant dense<0xFF800000> : vector<8xf32>
    %51 = vector.multi_reduction <maximumf>, %50, %cst_31 [1] : vector<8x8xf32> to vector<8xf32>
    %52 = vector.shape_cast %51 : vector<8xf32> to vector<8x1xf32>
    %53 = vector.broadcast %52 : vector<8x1xf32> to vector<8x8xf32>
    %54 = arith.subf %50, %53 : vector<8x8xf32>
    %55 = math.exp %54 : vector<8x8xf32>
    %cst_32 = arith.constant dense<0.000000e+00> : vector<8xf32>
    %56 = vector.multi_reduction <add>, %55, %cst_32 [1] : vector<8x8xf32> to vector<8xf32>
    %57 = vector.shape_cast %56 : vector<8xf32> to vector<8x1xf32>
    %58 = vector.broadcast %57 : vector<8x1xf32> to vector<8x8xf32>
    %59 = arith.divf %55, %58 : vector<8x8xf32>
    %c0_33 = arith.constant 0 : index
    %c1 = arith.constant 1 : index
    %c0_34 = arith.constant 0 : index
    %c0_35 = arith.constant 0 : index
    %60 = vector.load %arg26[%c0_33, %c1, %c0_34, %c0_35] : memref<1x2x8x8xf32, #tpu.memory_space<vmem>>, vector<1x1x8x8xf32>
    %61 = vector.shape_cast %60 : vector<1x1x8x8xf32> to vector<8x8xf32>
    %62 = vector.shape_cast %59 : vector<8x8xf32> to vector<1x1x8x8xf32>
    tpu.vector_store %arg26[%c0_33, %c1, %c0_34, %c0_35], %62 {strides = array<i32>} : memref<1x2x8x8xf32, #tpu.memory_space<vmem>>, vector<1x1x8x8xf32>,
    %cst_36 = arith.constant dense<0.000000e+00> : vector<8x16xf32>
    %63 = tpu.matmul %59, %44, %cst_36 {dimension_numbers = #tpu.dot_dimension_numbers<[1], [0], [0], [1], [0, 0, 1, 1], [], []>} : vector<8x8xf32>, vector<8x16xf32>, vector<8x16xf32> -> vector<8x16xf32>
    %64 = vector.extract_strided_slice %14 {offsets = [16, 0], sizes = [16, 32], strides = [1, 1]} : vector<32x32xf32> to vector<16x32xf32>
    %cst_37 = arith.constant dense<0.000000e+00> : vector<8x32xf32>
    %65 = tpu.matmul %63, %64, %cst_37 {dimension_numbers = #tpu.dot_dimension_numbers<[1], [0], [0], [1], [0, 0, 1, 1], [], []>} : vector<8x16xf32>, vector<16x32xf32>, vector<8x32xf32> -> vector<8x32xf32>
    %66 = arith.addf %41, %65 : vector<8x32xf32>
    %67 = vector.broadcast %15 : vector<1x32xf32> to vector<8x32xf32>
    %68 = arith.addf %66, %67 : vector<8x32xf32>
    %69 = arith.addf %68, %1 : vector<8x32xf32>
    %c0_38 = arith.constant 0 : index
    %c0_39 = arith.constant 0 : index
    %70 = vector.load %arg9[%c0_38, %c0_39] : memref<1x32xf32, #tpu.memory_space<vmem>>, vector<1x32xf32>
    %c0_40 = arith.constant 0 : index
    %c0_41 = arith.constant 0 : index
    %71 = vector.load %arg10[%c0_40, %c0_41] : memref<1x32xf32, #tpu.memory_space<vmem>>, vector<1x32xf32>
    %cst_42 = arith.constant dense<0.000000e+00> : vector<8xf32>
    %72 = vector.multi_reduction <add>, %69, %cst_42 [1] : vector<8x32xf32> to vector<8xf32>
    %73 = vector.shape_cast %72 : vector<8xf32> to vector<8x1xf32>
    %cst_43 = arith.constant 3.200000e+01 : f32
    %74 = vector.broadcast %cst_43 : f32 to vector<8x1xf32>
    %75 = arith.divf %73, %74 : vector<8x1xf32>
    %76 = vector.broadcast %75 : vector<8x1xf32> to vector<8x32xf32>
    %77 = arith.subf %69, %76 : vector<8x32xf32>
    %78 = arith.mulf %77, %77 : vector<8x32xf32>
    %cst_44 = arith.constant dense<0.000000e+00> : vector<8xf32>
    %79 = vector.multi_reduction <add>, %78, %cst_44 [1] : vector<8x32xf32> to vector<8xf32>
    %80 = vector.shape_cast %79 : vector<8xf32> to vector<8x1xf32>
    %cst_45 = arith.constant 3.200000e+01 : f32
    %81 = vector.broadcast %cst_45 : f32 to vector<8x1xf32>
    %82 = arith.divf %80, %81 : vector<8x1xf32>
    %83 = vector.broadcast %75 : vector<8x1xf32> to vector<8x32xf32>
    %84 = arith.subf %69, %83 : vector<8x32xf32>
    %cst_46 = arith.constant 9.99999997E-7 : f32
    %85 = vector.broadcast %cst_46 : f32 to vector<8x1xf32>
    %86 = arith.addf %82, %85 : vector<8x1xf32>
    %87 = math.rsqrt %86 : vector<8x1xf32>
    %88 = vector.broadcast %87 : vector<8x1xf32> to vector<8x32xf32>
    %89 = arith.mulf %84, %88 : vector<8x32xf32>
    %90 = vector.broadcast %70 : vector<1x32xf32> to vector<8x32xf32>
    %91 = arith.mulf %89, %90 : vector<8x32xf32>
    %92 = vector.broadcast %71 : vector<1x32xf32> to vector<8x32xf32>
    %93 = arith.addf %91, %92 : vector<8x32xf32>
    %c0_47 = arith.constant 0 : index
    %c0_48 = arith.constant 0 : index
    %94 = vector.load %arg11[%c0_47, %c0_48] : memref<32x32xf32, #tpu.memory_space<vmem>>, vector<32x32xf32>
    %cst_49 = arith.constant dense<0.000000e+00> : vector<8x32xf32>
    %95 = tpu.matmul %93, %94, %cst_49 {dimension_numbers = #tpu.dot_dimension_numbers<[1], [0], [0], [1], [0, 0, 1, 1], [], []>} : vector<8x32xf32>, vector<32x32xf32>, vector<8x32xf32> -> vector<8x32xf32>
    %c0_50 = arith.constant 0 : index
    %c0_51 = arith.constant 0 : index
    %96 = vector.load %arg12[%c0_50, %c0_51] : memref<1x32xf32, #tpu.memory_space<vmem>>, vector<1x32xf32>
    %97 = vector.broadcast %96 : vector<1x32xf32> to vector<8x32xf32>
    %98 = arith.addf %95, %97 : vector<8x32xf32>
    %c0_52 = arith.constant 0 : index
    %c0_53 = arith.constant 0 : index
    %99 = vector.load %arg13[%c0_52, %c0_53] : memref<32x64xf32, #tpu.memory_space<vmem>>, vector<32x64xf32>
    %cst_54 = arith.constant dense<0.000000e+00> : vector<8x64xf32>
    %100 = tpu.matmul %3, %99, %cst_54 {dimension_numbers = #tpu.dot_dimension_numbers<[1], [0], [0], [1], [0, 0, 1, 1], [], []>} : vector<8x32xf32>, vector<32x64xf32>, vector<8x64xf32> -> vector<8x64xf32>
    %c0_55 = arith.constant 0 : index
    %c0_56 = arith.constant 0 : index
    %101 = vector.load %arg14[%c0_55, %c0_56] : memref<1x64xf32, #tpu.memory_space<vmem>>, vector<1x64xf32>
    %102 = vector.broadcast %101 : vector<1x64xf32> to vector<8x64xf32>
    %103 = arith.addf %100, %102 : vector<8x64xf32>
    %104 = vector.extract_strided_slice %103 {offsets = [0, 0], sizes = [8, 32], strides = [1, 1]} : vector<8x64xf32> to vector<8x32xf32>
    %105 = vector.extract_strided_slice %103 {offsets = [0, 32], sizes = [8, 32], strides = [1, 1]} : vector<8x64xf32> to vector<8x32xf32>
    %c0_57 = arith.constant 0 : index
    %c0_58 = arith.constant 0 : index
    %c0_59 = arith.constant 0 : index
    %106 = vector.load %arg4[%c0_57, %c0_58, %c0_59] : memref<1x8x8xf32, #tpu.memory_space<vmem>>, vector<1x8x8xf32>
    %107 = vector.shape_cast %106 : vector<1x8x8xf32> to vector<8x8xf32>
    %c0_60 = arith.constant 0 : index
    %c0_61 = arith.constant 0 : index
    %108 = vector.load %arg15[%c0_60, %c0_61] : memref<32x32xf32, #tpu.memory_space<vmem>>, vector<32x32xf32>
    %c0_62 = arith.constant 0 : index
    %c0_63 = arith.constant 0 : index
    %109 = vector.load %arg16[%c0_62, %c0_63] : memref<1x32xf32, #tpu.memory_space<vmem>>, vector<1x32xf32>
    %cst_64 = arith.constant 0.000000e+00 : f32
    %110 = vector.broadcast %cst_64 : f32 to vector<8x32xf32>
    %111 = vector.extract_strided_slice %98 {offsets = [0, 0], sizes = [8, 16], strides = [1, 1]} : vector<8x32xf32> to vector<8x16xf32>
    %112 = vector.extract_strided_slice %104 {offsets = [0, 0], sizes = [8, 16], strides = [1, 1]} : vector<8x32xf32> to vector<8x16xf32>
    %113 = vector.extract_strided_slice %105 {offsets = [0, 0], sizes = [8, 16], strides = [1, 1]} : vector<8x32xf32> to vector<8x16xf32>
    %cst_65 = arith.constant dense<0.000000e+00> : vector<8x8xf32>
    %114 = tpu.matmul %111, %112, %cst_65 {dimension_numbers = #tpu.dot_dimension_numbers<[1], [1], [0], [0], [0, 0, 1, 0], [], []>} : vector<8x16xf32>, vector<8x16xf32>, vector<8x8xf32> -> vector<8x8xf32>
    %cst_66 = arith.constant 2.500000e-01 : f32
    %115 = vector.broadcast %cst_66 : f32 to vector<8x8xf32>
    %116 = arith.mulf %114, %115 : vector<8x8xf32>
    %cst_67 = arith.constant -1.000000e+09 : f32
    %117 = vector.broadcast %cst_67 : f32 to vector<8x8xf32>
    %118 = arith.mulf %107, %117 : vector<8x8xf32>
    %119 = arith.addf %116, %118 : vector<8x8xf32>
    %cst_68 = arith.constant dense<0xFF800000> : vector<8xf32>
    %120 = vector.multi_reduction <maximumf>, %119, %cst_68 [1] : vector<8x8xf32> to vector<8xf32>
    %121 = vector.shape_cast %120 : vector<8xf32> to vector<8x1xf32>
    %122 = vector.broadcast %121 : vector<8x1xf32> to vector<8x8xf32>
    %123 = arith.subf %119, %122 : vector<8x8xf32>
    %124 = math.exp %123 : vector<8x8xf32>
    %cst_69 = arith.constant dense<0.000000e+00> : vector<8xf32>
    %125 = vector.multi_reduction <add>, %124, %cst_69 [1] : vector<8x8xf32> to vector<8xf32>
    %126 = vector.shape_cast %125 : vector<8xf32> to vector<8x1xf32>
    %127 = vector.broadcast %126 : vector<8x1xf32> to vector<8x8xf32>
    %128 = arith.divf %124, %127 : vector<8x8xf32>
    %c0_70 = arith.constant 0 : index
    %c0_71 = arith.constant 0 : index
    %c0_72 = arith.constant 0 : index
    %c0_73 = arith.constant 0 : index
    %129 = vector.load %arg27[%c0_70, %c0_71, %c0_72, %c0_73] : memref<1x2x8x8xf32, #tpu.memory_space<vmem>>, vector<1x1x8x8xf32>
    %130 = vector.shape_cast %129 : vector<1x1x8x8xf32> to vector<8x8xf32>
    %131 = vector.shape_cast %128 : vector<8x8xf32> to vector<1x1x8x8xf32>
    tpu.vector_store %arg27[%c0_70, %c0_71, %c0_72, %c0_73], %131 {strides = array<i32>} : memref<1x2x8x8xf32, #tpu.memory_space<vmem>>, vector<1x1x8x8xf32>,
    %cst_74 = arith.constant dense<0.000000e+00> : vector<8x16xf32>
    %132 = tpu.matmul %128, %113, %cst_74 {dimension_numbers = #tpu.dot_dimension_numbers<[1], [0], [0], [1], [0, 0, 1, 1], [], []>} : vector<8x8xf32>, vector<8x16xf32>, vector<8x16xf32> -> vector<8x16xf32>
    %133 = vector.extract_strided_slice %108 {offsets = [0, 0], sizes = [16, 32], strides = [1, 1]} : vector<32x32xf32> to vector<16x32xf32>
    %cst_75 = arith.constant dense<0.000000e+00> : vector<8x32xf32>
    %134 = tpu.matmul %132, %133, %cst_75 {dimension_numbers = #tpu.dot_dimension_numbers<[1], [0], [0], [1], [0, 0, 1, 1], [], []>} : vector<8x16xf32>, vector<16x32xf32>, vector<8x32xf32> -> vector<8x32xf32>
    %135 = arith.addf %110, %134 : vector<8x32xf32>
    %136 = vector.extract_strided_slice %98 {offsets = [0, 16], sizes = [8, 16], strides = [1, 1]} : vector<8x32xf32> to vector<8x16xf32>
    %137 = vector.extract_strided_slice %104 {offsets = [0, 16], sizes = [8, 16], strides = [1, 1]} : vector<8x32xf32> to vector<8x16xf32>
    %138 = vector.extract_strided_slice %105 {offsets = [0, 16], sizes = [8, 16], strides = [1, 1]} : vector<8x32xf32> to vector<8x16xf32>
    %cst_76 = arith.constant dense<0.000000e+00> : vector<8x8xf32>
    %139 = tpu.matmul %136, %137, %cst_76 {dimension_numbers = #tpu.dot_dimension_numbers<[1], [1], [0], [0], [0, 0, 1, 0], [], []>} : vector<8x16xf32>, vector<8x16xf32>, vector<8x8xf32> -> vector<8x8xf32>
    %cst_77 = arith.constant 2.500000e-01 : f32
    %140 = vector.broadcast %cst_77 : f32 to vector<8x8xf32>
    %141 = arith.mulf %139, %140 : vector<8x8xf32>
    %cst_78 = arith.constant -1.000000e+09 : f32
    %142 = vector.broadcast %cst_78 : f32 to vector<8x8xf32>
    %143 = arith.mulf %107, %142 : vector<8x8xf32>
    %144 = arith.addf %141, %143 : vector<8x8xf32>
    %cst_79 = arith.constant dense<0xFF800000> : vector<8xf32>
    %145 = vector.multi_reduction <maximumf>, %144, %cst_79 [1] : vector<8x8xf32> to vector<8xf32>
    %146 = vector.shape_cast %145 : vector<8xf32> to vector<8x1xf32>
    %147 = vector.broadcast %146 : vector<8x1xf32> to vector<8x8xf32>
    %148 = arith.subf %144, %147 : vector<8x8xf32>
    %149 = math.exp %148 : vector<8x8xf32>
    %cst_80 = arith.constant dense<0.000000e+00> : vector<8xf32>
    %150 = vector.multi_reduction <add>, %149, %cst_80 [1] : vector<8x8xf32> to vector<8xf32>
    %151 = vector.shape_cast %150 : vector<8xf32> to vector<8x1xf32>
    %152 = vector.broadcast %151 : vector<8x1xf32> to vector<8x8xf32>
    %153 = arith.divf %149, %152 : vector<8x8xf32>
    %c0_81 = arith.constant 0 : index
    %c1_82 = arith.constant 1 : index
    %c0_83 = arith.constant 0 : index
    %c0_84 = arith.constant 0 : index
    %154 = vector.load %arg27[%c0_81, %c1_82, %c0_83, %c0_84] : memref<1x2x8x8xf32, #tpu.memory_space<vmem>>, vector<1x1x8x8xf32>
    %155 = vector.shape_cast %154 : vector<1x1x8x8xf32> to vector<8x8xf32>
    %156 = vector.shape_cast %153 : vector<8x8xf32> to vector<1x1x8x8xf32>
    tpu.vector_store %arg27[%c0_81, %c1_82, %c0_83, %c0_84], %156 {strides = array<i32>} : memref<1x2x8x8xf32, #tpu.memory_space<vmem>>, vector<1x1x8x8xf32>,
    %cst_85 = arith.constant dense<0.000000e+00> : vector<8x16xf32>
    %157 = tpu.matmul %153, %138, %cst_85 {dimension_numbers = #tpu.dot_dimension_numbers<[1], [0], [0], [1], [0, 0, 1, 1], [], []>} : vector<8x8xf32>, vector<8x16xf32>, vector<8x16xf32> -> vector<8x16xf32>
    %158 = vector.extract_strided_slice %108 {offsets = [16, 0], sizes = [16, 32], strides = [1, 1]} : vector<32x32xf32> to vector<16x32xf32>
    %cst_86 = arith.constant dense<0.000000e+00> : vector<8x32xf32>
    %159 = tpu.matmul %157, %158, %cst_86 {dimension_numbers = #tpu.dot_dimension_numbers<[1], [0], [0], [1], [0, 0, 1, 1], [], []>} : vector<8x16xf32>, vector<16x32xf32>, vector<8x32xf32> -> vector<8x32xf32>
    %160 = arith.addf %135, %159 : vector<8x32xf32>
    %161 = vector.broadcast %109 : vector<1x32xf32> to vector<8x32xf32>
    %162 = arith.addf %160, %161 : vector<8x32xf32>
    %163 = arith.addf %162, %93 : vector<8x32xf32>
    %c0_87 = arith.constant 0 : index
    %c0_88 = arith.constant 0 : index
    %164 = vector.load %arg17[%c0_87, %c0_88] : memref<1x32xf32, #tpu.memory_space<vmem>>, vector<1x32xf32>
    %c0_89 = arith.constant 0 : index
    %c0_90 = arith.constant 0 : index
    %165 = vector.load %arg18[%c0_89, %c0_90] : memref<1x32xf32, #tpu.memory_space<vmem>>, vector<1x32xf32>
    %cst_91 = arith.constant dense<0.000000e+00> : vector<8xf32>
    %166 = vector.multi_reduction <add>, %163, %cst_91 [1] : vector<8x32xf32> to vector<8xf32>
    %167 = vector.shape_cast %166 : vector<8xf32> to vector<8x1xf32>
    %cst_92 = arith.constant 3.200000e+01 : f32
    %168 = vector.broadcast %cst_92 : f32 to vector<8x1xf32>
    %169 = arith.divf %167, %168 : vector<8x1xf32>
    %170 = vector.broadcast %169 : vector<8x1xf32> to vector<8x32xf32>
    %171 = arith.subf %163, %170 : vector<8x32xf32>
    %172 = arith.mulf %171, %171 : vector<8x32xf32>
    %cst_93 = arith.constant dense<0.000000e+00> : vector<8xf32>
    %173 = vector.multi_reduction <add>, %172, %cst_93 [1] : vector<8x32xf32> to vector<8xf32>
    %174 = vector.shape_cast %173 : vector<8xf32> to vector<8x1xf32>
    %cst_94 = arith.constant 3.200000e+01 : f32
    %175 = vector.broadcast %cst_94 : f32 to vector<8x1xf32>
    %176 = arith.divf %174, %175 : vector<8x1xf32>
    %177 = vector.broadcast %169 : vector<8x1xf32> to vector<8x32xf32>
    %178 = arith.subf %163, %177 : vector<8x32xf32>
    %cst_95 = arith.constant 9.99999997E-7 : f32
    %179 = vector.broadcast %cst_95 : f32 to vector<8x1xf32>
    %180 = arith.addf %176, %179 : vector<8x1xf32>
    %181 = math.rsqrt %180 : vector<8x1xf32>
    %182 = vector.broadcast %181 : vector<8x1xf32> to vector<8x32xf32>
    %183 = arith.mulf %178, %182 : vector<8x32xf32>
    %184 = vector.broadcast %164 : vector<1x32xf32> to vector<8x32xf32>
    %185 = arith.mulf %183, %184 : vector<8x32xf32>
    %186 = vector.broadcast %165 : vector<1x32xf32> to vector<8x32xf32>
    %187 = arith.addf %185, %186 : vector<8x32xf32>
    %c0_96 = arith.constant 0 : index
    %c0_97 = arith.constant 0 : index
    %188 = vector.load %arg19[%c0_96, %c0_97] : memref<32x64xf32, #tpu.memory_space<vmem>>, vector<32x64xf32>
    %cst_98 = arith.constant dense<0.000000e+00> : vector<8x64xf32>
    %189 = tpu.matmul %187, %188, %cst_98 {dimension_numbers = #tpu.dot_dimension_numbers<[1], [0], [0], [1], [0, 0, 1, 1], [], []>} : vector<8x32xf32>, vector<32x64xf32>, vector<8x64xf32> -> vector<8x64xf32>
    %c0_99 = arith.constant 0 : index
    %c0_100 = arith.constant 0 : index
    %190 = vector.load %arg20[%c0_99, %c0_100] : memref<1x64xf32, #tpu.memory_space<vmem>>, vector<1x64xf32>
    %191 = vector.broadcast %190 : vector<1x64xf32> to vector<8x64xf32>
    %192 = arith.addf %189, %191 : vector<8x64xf32>
    %cst_101 = arith.constant 0.000000e+00 : f32
    %193 = vector.broadcast %cst_101 : f32 to vector<8x64xf32>
    %194 = arith.maximumf %192, %193 : vector<8x64xf32>
    %c0_102 = arith.constant 0 : index
    %c0_103 = arith.constant 0 : index
    %195 = vector.load %arg21[%c0_102, %c0_103] : memref<64x32xf32, #tpu.memory_space<vmem>>, vector<64x32xf32>
    %cst_104 = arith.constant dense<0.000000e+00> : vector<8x32xf32>
    %196 = tpu.matmul %194, %195, %cst_104 {dimension_numbers = #tpu.dot_dimension_numbers<[1], [0], [0], [1], [0, 0, 1, 1], [], []>} : vector<8x64xf32>, vector<64x32xf32>, vector<8x32xf32> -> vector<8x32xf32>
    %c0_105 = arith.constant 0 : index
    %c0_106 = arith.constant 0 : index
    %197 = vector.load %arg22[%c0_105, %c0_106] : memref<1x32xf32, #tpu.memory_space<vmem>>, vector<1x32xf32>
    %198 = vector.broadcast %197 : vector<1x32xf32> to vector<8x32xf32>
    %199 = arith.addf %196, %198 : vector<8x32xf32>
    %200 = arith.addf %199, %187 : vector<8x32xf32>
    %c0_107 = arith.constant 0 : index
    %c0_108 = arith.constant 0 : index
    %201 = vector.load %arg23[%c0_107, %c0_108] : memref<1x32xf32, #tpu.memory_space<vmem>>, vector<1x32xf32>
    %c0_109 = arith.constant 0 : index
    %c0_110 = arith.constant 0 : index
    %202 = vector.load %arg24[%c0_109, %c0_110] : memref<1x32xf32, #tpu.memory_space<vmem>>, vector<1x32xf32>
    %cst_111 = arith.constant dense<0.000000e+00> : vector<8xf32>
    %203 = vector.multi_reduction <add>, %200, %cst_111 [1] : vector<8x32xf32> to vector<8xf32>
    %204 = vector.shape_cast %203 : vector<8xf32> to vector<8x1xf32>
    %cst_112 = arith.constant 3.200000e+01 : f32
    %205 = vector.broadcast %cst_112 : f32 to vector<8x1xf32>
    %206 = arith.divf %204, %205 : vector<8x1xf32>
    %207 = vector.broadcast %206 : vector<8x1xf32> to vector<8x32xf32>
    %208 = arith.subf %200, %207 : vector<8x32xf32>
    %209 = arith.mulf %208, %208 : vector<8x32xf32>
    %cst_113 = arith.constant dense<0.000000e+00> : vector<8xf32>
    %210 = vector.multi_reduction <add>, %209, %cst_113 [1] : vector<8x32xf32> to vector<8xf32>
    %211 = vector.shape_cast %210 : vector<8xf32> to vector<8x1xf32>
    %cst_114 = arith.constant 3.200000e+01 : f32
    %212 = vector.broadcast %cst_114 : f32 to vector<8x1xf32>
    %213 = arith.divf %211, %212 : vector<8x1xf32>
    %214 = vector.broadcast %206 : vector<8x1xf32> to vector<8x32xf32>
    %215 = arith.subf %200, %214 : vector<8x32xf32>
    %cst_115 = arith.constant 9.99999997E-7 : f32
    %216 = vector.broadcast %cst_115 : f32 to vector<8x1xf32>
    %217 = arith.addf %213, %216 : vector<8x1xf32>
    %218 = math.rsqrt %217 : vector<8x1xf32>
    %219 = vector.broadcast %218 : vector<8x1xf32> to vector<8x32xf32>
    %220 = arith.mulf %215, %219 : vector<8x32xf32>
    %221 = vector.broadcast %201 : vector<1x32xf32> to vector<8x32xf32>
    %222 = arith.mulf %220, %221 : vector<8x32xf32>
    %223 = vector.broadcast %202 : vector<1x32xf32> to vector<8x32xf32>
    %224 = arith.addf %222, %223 : vector<8x32xf32>
    %c0_116 = arith.constant 0 : index
    %c0_117 = arith.constant 0 : index
    %c0_118 = arith.constant 0 : index
    %225 = vector.load %arg25[%c0_116, %c0_117, %c0_118] : memref<1x8x32xf32, #tpu.memory_space<vmem>>, vector<1x8x32xf32>
    %226 = vector.shape_cast %225 : vector<1x8x32xf32> to vector<8x32xf32>
    %227 = vector.shape_cast %224 : vector<8x32xf32> to vector<1x8x32xf32>
    tpu.vector_store %arg25[%c0_116, %c0_117, %c0_118], %227 {strides = array<i32>} : memref<1x8x32xf32, #tpu.memory_space<vmem>>, vector<1x8x32xf32>,
    return
  }
  func.func @transform_0(%arg0: i32) -> (i32, i32, i32) {
    %c0_i32 = arith.constant 0 : i32
    %c0_i32_0 = arith.constant 0 : i32
    %c0_i32_1 = arith.constant 0 : i32
    return %arg0, %c0_i32, %c0_i32_0 : i32, i32, i32
  }
  func.func @transform_1(%arg0: i32) -> (i32, i32, i32) {
    %c0_i32 = arith.constant 0 : i32
    %c0_i32_0 = arith.constant 0 : i32
    %c0_i32_1 = arith.constant 0 : i32
    return %arg0, %c0_i32, %c0_i32_0 : i32, i32, i32
  }
  func.func @transform_2(%arg0: i32) -> (i32, i32, i32) {
    %c0_i32 = arith.constant 0 : i32
    %c0_i32_0 = arith.constant 0 : i32
    %c0_i32_1 = arith.constant 0 : i32
    return %arg0, %c0_i32, %c0_i32_0 : i32, i32, i32
  }
  func.func @transform_3(%arg0: i32) -> (i32, i32, i32) {
    %c0_i32 = arith.constant 0 : i32
    %c0_i32_0 = arith.constant 0 : i32
    %c0_i32_1 = arith.constant 0 : i32
    return %arg0, %c0_i32, %c0_i32_0 : i32, i32, i32
  }
  func.func @transform_4(%arg0: i32) -> (i32, i32) {
    %c0_i32 = arith.constant 0 : i32
    %c0_i32_0 = arith.constant 0 : i32
    %c0_i32_1 = arith.constant 0 : i32
    return %c0_i32, %c0_i32_0 : i32, i32
  }
  func.func @transform_5(%arg0: i32) -> (i32, i32) {
    %c0_i32 = arith.constant 0 : i32
    %c0_i32_0 = arith.constant 0 : i32
    %c0_i32_1 = arith.constant 0 : i32
    return %c0_i32, %c0_i32_0 : i32, i32
  }
  func.func @transform_6(%arg0: i32) -> (i32, i32) {
    %c0_i32 = arith.constant 0 : i32
    %c0_i32_0 = arith.constant 0 : i32
    %c0_i32_1 = arith.constant 0 : i32
    return %c0_i32, %c0_i32_0 : i32, i32
  }
  func.func @transform_7(%arg0: i32) -> (i32, i32) {
    %c0_i32 = arith.constant 0 : i32
    %c0_i32_0 = arith.constant 0 : i32
    %c0_i32_1 = arith.constant 0 : i32
    return %c0_i32, %c0_i32_0 : i32, i32
  }
  func.func @transform_8(%arg0: i32) -> (i32, i32) {
    %c0_i32 = arith.constant 0 : i32
    %c0_i32_0 = arith.constant 0 : i32
    %c0_i32_1 = arith.constant 0 : i32
    return %c0_i32, %c0_i32_0 : i32, i32
  }
  func.func @transform_9(%arg0: i32) -> (i32, i32) {
    %c0_i32 = arith.constant 0 : i32
    %c0_i32_0 = arith.constant 0 : i32
    %c0_i32_1 = arith.constant 0 : i32
    return %c0_i32, %c0_i32_0 : i32, i32
  }
  func.func @transform_10(%arg0: i32) -> (i32, i32) {
    %c0_i32 = arith.constant 0 : i32
    %c0_i32_0 = arith.constant 0 : i32
    %c0_i32_1 = arith.constant 0 : i32
    return %c0_i32, %c0_i32_0 : i32, i32
  }
  func.func @transform_11(%arg0: i32) -> (i32, i32) {
    %c0_i32 = arith.constant 0 : i32
    %c0_i32_0 = arith.constant 0 : i32
    %c0_i32_1 = arith.constant 0 : i32
    return %c0_i32, %c0_i32_0 : i32, i32
  }
  func.func @transform_12(%arg0: i32) -> (i32, i32) {
    %c0_i32 = arith.constant 0 : i32
    %c0_i32_0 = arith.constant 0 : i32
    %c0_i32_1 = arith.constant 0 : i32
    return %c0_i32, %c0_i32_0 : i32, i32
  }
  func.func @transform_13(%arg0: i32) -> (i32, i32) {
    %c0_i32 = arith.constant 0 : i32
    %c0_i32_0 = arith.constant 0 : i32
    %c0_i32_1 = arith.constant 0 : i32
    return %c0_i32, %c0_i32_0 : i32, i32
  }
  func.func @transform_14(%arg0: i32) -> (i32, i32) {
    %c0_i32 = arith.constant 0 : i32
    %c0_i32_0 = arith.constant 0 : i32
    %c0_i32_1 = arith.constant 0 : i32
    return %c0_i32, %c0_i32_0 : i32, i32
  }
  func.func @transform_15(%arg0: i32) -> (i32, i32) {
    %c0_i32 = arith.constant 0 : i32
    %c0_i32_0 = arith.constant 0 : i32
    %c0_i32_1 = arith.constant 0 : i32
    return %c0_i32, %c0_i32_0 : i32, i32
  }
  func.func @transform_16(%arg0: i32) -> (i32, i32) {
    %c0_i32 = arith.constant 0 : i32
    %c0_i32_0 = arith.constant 0 : i32
    %c0_i32_1 = arith.constant 0 : i32
    return %c0_i32, %c0_i32_0 : i32, i32
  }
  func.func @transform_17(%arg0: i32) -> (i32, i32) {
    %c0_i32 = arith.constant 0 : i32
    %c0_i32_0 = arith.constant 0 : i32
    %c0_i32_1 = arith.constant 0 : i32
    return %c0_i32, %c0_i32_0 : i32, i32
  }
  func.func @transform_18(%arg0: i32) -> (i32, i32) {
    %c0_i32 = arith.constant 0 : i32
    %c0_i32_0 = arith.constant 0 : i32
    %c0_i32_1 = arith.constant 0 : i32
    return %c0_i32, %c0_i32_0 : i32, i32
  }
  func.func @transform_19(%arg0: i32) -> (i32, i32) {
    %c0_i32 = arith.constant 0 : i32
    %c0_i32_0 = arith.constant 0 : i32
    %c0_i32_1 = arith.constant 0 : i32
    return %c0_i32, %c0_i32_0 : i32, i32
  }
  func.func @transform_20(%arg0: i32) -> (i32, i32) {
    %c0_i32 = arith.constant 0 : i32
    %c0_i32_0 = arith.constant 0 : i32
    %c0_i32_1 = arith.constant 0 : i32
    return %c0_i32, %c0_i32_0 : i32, i32
  }
  func.func @transform_21(%arg0: i32) -> (i32, i32) {
    %c0_i32 = arith.constant 0 : i32
    %c0_i32_0 = arith.constant 0 : i32
    %c0_i32_1 = arith.constant 0 : i32
    return %c0_i32, %c0_i32_0 : i32, i32
  }
  func.func @transform_22(%arg0: i32) -> (i32, i32) {
    %c0_i32 = arith.constant 0 : i32
    %c0_i32_0 = arith.constant 0 : i32
    %c0_i32_1 = arith.constant 0 : i32
    return %c0_i32, %c0_i32_0 : i32, i32
  }
  func.func @transform_23(%arg0: i32) -> (i32, i32) {
    %c0_i32 = arith.constant 0 : i32
    %c0_i32_0 = arith.constant 0 : i32
    %c0_i32_1 = arith.constant 0 : i32
    return %c0_i32, %c0_i32_0 : i32, i32
  }
  func.func @transform_24(%arg0: i32) -> (i32, i32, i32) {
    %c0_i32 = arith.constant 0 : i32
    %c0_i32_0 = arith.constant 0 : i32
    %c0_i32_1 = arith.constant 0 : i32
    return %arg0, %c0_i32, %c0_i32_0 : i32, i32, i32
  }
  func.func @transform_25(%arg0: i32) -> (i32, i32, i32, i32) {
    %c0_i32 = arith.constant 0 : i32
    %c0_i32_0 = arith.constant 0 : i32
    %c0_i32_1 = arith.constant 0 : i32
    %c0_i32_2 = arith.constant 0 : i32
    return %arg0, %c0_i32, %c0_i32_0, %c0_i32_1 : i32, i32, i32, i32
  }
  func.func @transform_26(%arg0: i32) -> (i32, i32, i32, i32) {
    %c0_i32 = arith.constant 0 : i32
    %c0_i32_0 = arith.constant 0 : i32
    %c0_i32_1 = arith.constant 0 : i32
    %c0_i32_2 = arith.constant 0 : i32
    return %arg0, %c0_i32, %c0_i32_0, %c0_i32_1 : i32, i32, i32, i32
  }
}

module attributes {stable_mosaic.version = 11 : i64} {
  func.func @_decoder_layer_kernel(%arg0: i32, %arg1: memref<1x8x32xf32, #tpu.memory_space<vmem>>, %arg2: memref<1x8x32xf32, #tpu.memory_space<vmem>>, %arg3: memref<1x8x8xf32, #tpu.memory_space<vmem>>, %arg4: memref<1x8x8xf32, #tpu.memory_space<vmem>>, %arg5: memref<32x96xf32, #tpu.memory_space<vmem>>, %arg6: memref<1x96xf32, #tpu.memory_space<vmem>>, %arg7: memref<32x32xf32, #tpu.memory_space<vmem>>, %arg8: memref<1x32xf32, #tpu.memory_space<vmem>>, %arg9: memref<1x32xf32, #tpu.memory_space<vmem>>, %arg10: memref<1x32xf32, #tpu.memory_space<vmem>>, %arg11: memref<32x32xf32, #tpu.memory_space<vmem>>, %arg12: memref<1x32xf32, #tpu.memory_space<vmem>>, %arg13: memref<32x64xf32, #tpu.memory_space<vmem>>, %arg14: memref<1x64xf32, #tpu.memory_space<vmem>>, %arg15: memref<32x32xf32, #tpu.memory_space<vmem>>, %arg16: memref<1x32xf32, #tpu.memory_space<vmem>>, %arg17: memref<1x32xf32, #tpu.memory_space<vmem>>, %arg18: memref<1x32xf32, #tpu.memory_space<vmem>>, %arg19: memref<32x64xf32, #tpu.memory_space<vmem>>, %arg20: memref<1x64xf32, #tpu.memory_space<vmem>>, %arg21: memref<64x32xf32, #tpu.memory_space<vmem>>, %arg22: memref<1x32xf32, #tpu.memory_space<vmem>>, %arg23: memref<1x32xf32, #tpu.memory_space<vmem>>, %arg24: memref<1x32xf32, #tpu.memory_space<vmem>>, %arg25: memref<1x8x32xf32, #tpu.memory_space<vmem>>, %arg26: memref<1x2x8x8xf32, #tpu.memory_space<vmem>>, %arg27: memref<1x2x8x8xf32, #tpu.memory_space<vmem>>) attributes {dimension_semantics = [#tpu.dimension_semantics<parallel>], iteration_bounds = array<i64: 2>, scalar_prefetch = 0 : i64, scratch_operands = 0 : i64, tpu.core_type = #tpu.core_type<tc>, window_params = [{transform_indices = @transform_0, window_bounds = array<i64: 1, 8, 32>}, {transform_indices = @transform_1, window_bounds = array<i64: 1, 8, 32>}, {transform_indices = @transform_2, window_bounds = array<i64: 1, 8, 8>}, {transform_indices = @transform_3, window_bounds = array<i64: 1, 8, 8>}, {pipeline_mode = #tpu.pipeline_mode<synchronous>, transform_indices = @transform_4, window_bounds = array<i64: 32, 96>}, {pipeline_mode = #tpu.pipeline_mode<synchronous>, transform_indices = @transform_5, window_bounds = array<i64: 1, 96>}, {pipeline_mode = #tpu.pipeline_mode<synchronous>, transform_indices = @transform_6, window_bounds = array<i64: 32, 32>}, {pipeline_mode = #tpu.pipeline_mode<synchronous>, transform_indices = @transform_7, window_bounds = array<i64: 1, 32>}, {pipeline_mode = #tpu.pipeline_mode<synchronous>, transform_indices = @transform_8, window_bounds = array<i64: 1, 32>}, {pipeline_mode = #tpu.pipeline_mode<synchronous>, transform_indices = @transform_9, window_bounds = array<i64: 1, 32>}, {pipeline_mode = #tpu.pipeline_mode<synchronous>, transform_indices = @transform_10, window_bounds = array<i64: 32, 32>}, {pipeline_mode = #tpu.pipeline_mode<synchronous>, transform_indices = @transform_11, window_bounds = array<i64: 1, 32>}, {pipeline_mode = #tpu.pipeline_mode<synchronous>, transform_indices = @transform_12, window_bounds = array<i64: 32, 64>}, {pipeline_mode = #tpu.pipeline_mode<synchronous>, transform_indices = @transform_13, window_bounds = array<i64: 1, 64>}, {pipeline_mode = #tpu.pipeline_mode<synchronous>, transform_indices = @transform_14, window_bounds = array<i64: 32, 32>}, {pipeline_mode = #tpu.pipeline_mode<synchronous>, transform_indices = @transform_15, window_bounds = array<i64: 1, 32>}, {pipeline_mode = #tpu.pipeline_mode<synchronous>, transform_indices = @transform_16, window_bounds = array<i64: 1, 32>}, {pipeline_mode = #tpu.pipeline_mode<synchronous>, transform_indices = @transform_17, window_bounds = array<i64: 1, 32>}, {pipeline_mode = #tpu.pipeline_mode<synchronous>, transform_indices = @transform_18, window_bounds = array<i64: 32, 64>}, {pipeline_mode = #tpu.pipeline_mode<synchronous>, transform_indices = @transform_19, window_bounds = array<i64: 1, 64>}, {pipeline_mode = #tpu.pipeline_mode<synchronous>, transform_indices = @transform_20, window_bounds = array<i64: 64, 32>}, {pipeline_mode = #tpu.pipeline_mode<synchronous>, transform_indices = @transform_21, window_bounds = array<i64: 1, 32>}, {pipeline_mode = #tpu.pipeline_mode<synchronous>, transform_indices = @transform_22, window_bounds = array<i64: 1, 32>}, {pipeline_mode = #tpu.pipeline_mode<synchronous>, transform_indices = @transform_23, window_bounds = array<i64: 1, 32>}, {transform_indices = @transform_24, window_bounds = array<i64: 1, 8, 32>}, {transform_indices = @transform_25, window_bounds = array<i64: 1, 2, 8, 8>}, {transform_indices = @transform_26, window_bounds = array<i64: 1, 2, 8, 8>}]} {
    %c0 = arith.constant 0 : index
    %c0_0 = arith.constant 0 : index
    %c0_1 = arith.constant 0 : index
    %0 = vector.load %arg1[%c0, %c0_0, %c0_1] : memref<1x8x32xf32, #tpu.memory_space<vmem>>, vector<1x8x32xf32>
    %1 = vector.shape_cast %0 : vector<1x8x32xf32> to vector<8x32xf32>
    %c0_2 = arith.constant 0 : index
    %c0_3 = arith.constant 0 : index
    %c0_4 = arith.constant 0 : index
    %2 = vector.load %arg2[%c0_2, %c0_3, %c0_4] : memref<1x8x32xf32, #tpu.memory_space<vmem>>, vector<1x8x32xf32>
    %3 = vector.shape_cast %2 : vector<1x8x32xf32> to vector<8x32xf32>
    %c0_5 = arith.constant 0 : index
    %c0_6 = arith.constant 0 : index
    %4 = vector.load %arg5[%c0_5, %c0_6] : memref<32x96xf32, #tpu.memory_space<vmem>>, vector<32x96xf32>
    %cst = arith.constant dense<0.000000e+00> : vector<8x96xf32>
    %5 = tpu.matmul %1, %4, %cst {dimension_numbers = #tpu.dot_dimension_numbers<[1], [0], [0], [1], [0, 0, 1, 1], [], []>} : vector<8x32xf32>, vector<32x96xf32>, vector<8x96xf32> -> vector<8x96xf32>
    %c0_7 = arith.constant 0 : index
    %c0_8 = arith.constant 0 : index
    %6 = vector.load %arg6[%c0_7, %c0_8] : memref<1x96xf32, #tpu.memory_space<vmem>>, vector<1x96xf32>
    %7 = vector.broadcast %6 : vector<1x96xf32> to vector<8x96xf32>
    %8 = arith.addf %5, %7 : vector<8x96xf32>
    %9 = vector.extract_strided_slice %8 {offsets = [0, 0], sizes = [8, 32], strides = [1, 1]} : vector<8x96xf32> to vector<8x32xf32>
    %10 = vector.extract_strided_slice %8 {offsets = [0, 32], sizes = [8, 32], strides = [1, 1]} : vector<8x96xf32> to vector<8x32xf32>
    %11 = vector.extract_strided_slice %8 {offsets = [0, 64], sizes = [8, 32], strides = [1, 1]} : vector<8x96xf32> to vector<8x32xf32>
    %c0_9 = arith.constant 0 : index
    %c0_10 = arith.constant 0 : index
    %c0_11 = arith.constant 0 : index
    %12 = vector.load %arg3[%c0_9, %c0_10, %c0_11] : memref<1x8x8xf32, #tpu.memory_space<vmem>>, vector<1x8x8xf32>
    %13 = vector.shape_cast %12 : vector<1x8x8xf32> to vector<8x8xf32>
    %c0_12 = arith.constant 0 : index
    %c0_13 = arith.constant 0 : index
    %14 = vector.load %arg7[%c0_12, %c0_13] : memref<32x32xf32, #tpu.memory_space<vmem>>, vector<32x32xf32>
    %c0_14 = arith.constant 0 : index
    %c0_15 = arith.constant 0 : index
    %15 = vector.load %arg8[%c0_14, %c0_15] : memref<1x32xf32, #tpu.memory_space<vmem>>, vector<1x32xf32>
    %cst_16 = arith.constant 0.000000e+00 : f32
    %16 = vector.broadcast %cst_16 : f32 to vector<8x32xf32>
    %17 = vector.extract_strided_slice %9 {offsets = [0, 0], sizes = [8, 16], strides = [1, 1]} : vector<8x32xf32> to vector<8x16xf32>
    %18 = vector.extract_strided_slice %10 {offsets = [0, 0], sizes = [8, 16], strides = [1, 1]} : vector<8x32xf32> to vector<8x16xf32>
    %19 = vector.extract_strided_slice %11 {offsets = [0, 0], sizes = [8, 16], strides = [1, 1]} : vector<8x32xf32> to vector<8x16xf32>
    %cst_17 = arith.constant dense<0.000000e+00> : vector<8x8xf32>
    %20 = tpu.matmul %17, %18, %cst_17 {dimension_numbers = #tpu.dot_dimension_numbers<[1], [1], [0], [0], [0, 0, 1, 0], [], []>} : vector<8x16xf32>, vector<8x16xf32>, vector<8x8xf32> -> vector<8x8xf32>
    %cst_18 = arith.constant 2.500000e-01 : f32
    %21 = vector.broadcast %cst_18 : f32 to vector<8x8xf32>
    %22 = arith.mulf %20, %21 : vector<8x8xf32>
    %cst_19 = arith.constant -1.000000e+09 : f32
    %23 = vector.broadcast %cst_19 : f32 to vector<8x8xf32>
    %24 = arith.mulf %13, %23 : vector<8x8xf32>
    %25 = arith.addf %22, %24 : vector<8x8xf32>
    %cst_20 = arith.constant dense<0xFF800000> : vector<8xf32>
    %26 = vector.multi_reduction <maximumf>, %25, %cst_20 [1] : vector<8x8xf32> to vector<8xf32>
    %27 = vector.shape_cast %26 : vector<8xf32> to vector<8x1xf32>
    %28 = vector.broadcast %27 : vector<8x1xf32> to vector<8x8xf32>
    %29 = arith.subf %25, %28 : vector<8x8xf32>
    %30 = math.exp %29 : vector<8x8xf32>
    %cst_21 = arith.constant dense<0.000000e+00> : vector<8xf32>
    %31 = vector.multi_reduction <add>, %30, %cst_21 [1] : vector<8x8xf32> to vector<8xf32>
    %32 = vector.shape_cast %31 : vector<8xf32> to vector<8x1xf32>
    %33 = vector.broadcast %32 : vector<8x1xf32> to vector<8x8xf32>
    %34 = arith.divf %30, %33 : vector<8x8xf32>
    %c0_22 = arith.constant 0 : index
    %c0_23 = arith.constant 0 : index
    %c0_24 = arith.constant 0 : index
    %c0_25 = arith.constant 0 : index
    %35 = vector.load %arg26[%c0_22, %c0_23, %c0_24, %c0_25] : memref<1x2x8x8xf32, #tpu.memory_space<vmem>>, vector<1x1x8x8xf32>
    %36 = vector.shape_cast %35 : vector<1x1x8x8xf32> to vector<8x8xf32>
    %37 = vector.shape_cast %34 : vector<8x8xf32> to vector<1x1x8x8xf32>
    tpu.vector_store %arg26[%c0_22, %c0_23, %c0_24, %c0_25], %37 {strides = array<i32>} : memref<1x2x8x8xf32, #tpu.memory_space<vmem>>, vector<1x1x8x8xf32>,
    %cst_26 = arith.constant dense<0.000000e+00> : vector<8x16xf32>
    %38 = tpu.matmul %34, %19, %cst_26 {dimension_numbers = #tpu.dot_dimension_numbers<[1], [0], [0], [1], [0, 0, 1, 1], [], []>} : vector<8x8xf32>, vector<8x16xf32>, vector<8x16xf32> -> vector<8x16xf32>
    %39 = vector.extract_strided_slice %14 {offsets = [0, 0], sizes = [16, 32], strides = [1, 1]} : vector<32x32xf32> to vector<16x32xf32>
    %cst_27 = arith.constant dense<0.000000e+00> : vector<8x32xf32>
    %40 = tpu.matmul %38, %39, %cst_27 {dimension_numbers = #tpu.dot_dimension_numbers<[1], [0], [0], [1], [0, 0, 1, 1], [], []>} : vector<8x16xf32>, vector<16x32xf32>, vector<8x32xf32> -> vector<8x32xf32>
    %41 = arith.addf %16, %40 : vector<8x32xf32>
    %42 = vector.extract_strided_slice %9 {offsets = [0, 16], sizes = [8, 16], strides = [1, 1]} : vector<8x32xf32> to vector<8x16xf32>
    %43 = vector.extract_strided_slice %10 {offsets = [0, 16], sizes = [8, 16], strides = [1, 1]} : vector<8x32xf32> to vector<8x16xf32>
    %44 = vector.extract_strided_slice %11 {offsets = [0, 16], sizes = [8, 16], strides = [1, 1]} : vector<8x32xf32> to vector<8x16xf32>
    %cst_28 = arith.constant dense<0.000000e+00> : vector<8x8xf32>
    %45 = tpu.matmul %42, %43, %cst_28 {dimension_numbers = #tpu.dot_dimension_numbers<[1], [1], [0], [0], [0, 0, 1, 0], [], []>} : vector<8x16xf32>, vector<8x16xf32>, vector<8x8xf32> -> vector<8x8xf32>
    %cst_29 = arith.constant 2.500000e-01 : f32
    %46 = vector.broadcast %cst_29 : f32 to vector<8x8xf32>
    %47 = arith.mulf %45, %46 : vector<8x8xf32>
    %cst_30 = arith.constant -1.000000e+09 : f32
    %48 = vector.broadcast %cst_30 : f32 to vector<8x8xf32>
    %49 = arith.mulf %13, %48 : vector<8x8xf32>
    %50 = arith.addf %47, %49 : vector<8x8xf32>
    %cst_31 = arith.constant dense<0xFF800000> : vector<8xf32>
    %51 = vector.multi_reduction <maximumf>, %50, %cst_31 [1] : vector<8x8xf32> to vector<8xf32>
    %52 = vector.shape_cast %51 : vector<8xf32> to vector<8x1xf32>
    %53 = vector.broadcast %52 : vector<8x1xf32> to vector<8x8xf32>
    %54 = arith.subf %50, %53 : vector<8x8xf32>
    %55 = math.exp %54 : vector<8x8xf32>
    %cst_32 = arith.constant dense<0.000000e+00> : vector<8xf32>
    %56 = vector.multi_reduction <add>, %55, %cst_32 [1] : vector<8x8xf32> to vector<8xf32>
    %57 = vector.shape_cast %56 : vector<8xf32> to vector<8x1xf32>
    %58 = vector.broadcast %57 : vector<8x1xf32> to vector<8x8xf32>
    %59 = arith.divf %55, %58 : vector<8x8xf32>
    %c0_33 = arith.constant 0 : index
    %c1 = arith.constant 1 : index
    %c0_34 = arith.constant 0 : index
    %c0_35 = arith.constant 0 : index
    %60 = vector.load %arg26[%c0_33, %c1, %c0_34, %c0_35] : memref<1x2x8x8xf32, #tpu.memory_space<vmem>>, vector<1x1x8x8xf32>
    %61 = vector.shape_cast %60 : vector<1x1x8x8xf32> to vector<8x8xf32>
    %62 = vector.shape_cast %59 : vector<8x8xf32> to vector<1x1x8x8xf32>
    tpu.vector_store %arg26[%c0_33, %c1, %c0_34, %c0_35], %62 {strides = array<i32>} : memref<1x2x8x8xf32, #tpu.memory_space<vmem>>, vector<1x1x8x8xf32>,
    %cst_36 = arith.constant dense<0.000000e+00> : vector<8x16xf32>
    %63 = tpu.matmul %59, %44, %cst_36 {dimension_numbers = #tpu.dot_dimension_numbers<[1], [0], [0], [1], [0, 0, 1, 1], [], []>} : vector<8x8xf32>, vector<8x16xf32>, vector<8x16xf32> -> vector<8x16xf32>
    %64 = vector.extract_strided_slice %14 {offsets = [16, 0], sizes = [16, 32], strides = [1, 1]} : vector<32x32xf32> to vector<16x32xf32>
    %cst_37 = arith.constant dense<0.000000e+00> : vector<8x32xf32>
    %65 = tpu.matmul %63, %64, %cst_37 {dimension_numbers = #tpu.dot_dimension_numbers<[1], [0], [0], [1], [0, 0, 1, 1], [], []>} : vector<8x16xf32>, vector<16x32xf32>, vector<8x32xf32> -> vector<8x32xf32>
    %66 = arith.addf %41, %65 : vector<8x32xf32>
    %67 = vector.broadcast %15 : vector<1x32xf32> to vector<8x32xf32>
    %68 = arith.addf %66, %67 : vector<8x32xf32>
    %69 = arith.addf %68, %1 : vector<8x32xf32>
    %c0_38 = arith.constant 0 : index
    %c0_39 = arith.constant 0 : index
    %70 = vector.load %arg9[%c0_38, %c0_39] : memref<1x32xf32, #tpu.memory_space<vmem>>, vector<1x32xf32>
    %c0_40 = arith.constant 0 : index
    %c0_41 = arith.constant 0 : index
    %71 = vector.load %arg10[%c0_40, %c0_41] : memref<1x32xf32, #tpu.memory_space<vmem>>, vector<1x32xf32>
    %cst_42 = arith.constant dense<0.000000e+00> : vector<8xf32>
    %72 = vector.multi_reduction <add>, %69, %cst_42 [1] : vector<8x32xf32> to vector<8xf32>
    %73 = vector.shape_cast %72 : vector<8xf32> to vector<8x1xf32>
    %cst_43 = arith.constant 3.200000e+01 : f32
    %74 = vector.broadcast %cst_43 : f32 to vector<8x1xf32>
    %75 = arith.divf %73, %74 : vector<8x1xf32>
    %76 = vector.broadcast %75 : vector<8x1xf32> to vector<8x32xf32>
    %77 = arith.subf %69, %76 : vector<8x32xf32>
    %78 = arith.mulf %77, %77 : vector<8x32xf32>
    %cst_44 = arith.constant dense<0.000000e+00> : vector<8xf32>
    %79 = vector.multi_reduction <add>, %78, %cst_44 [1] : vector<8x32xf32> to vector<8xf32>
    %80 = vector.shape_cast %79 : vector<8xf32> to vector<8x1xf32>
    %cst_45 = arith.constant 3.200000e+01 : f32
    %81 = vector.broadcast %cst_45 : f32 to vector<8x1xf32>
    %82 = arith.divf %80, %81 : vector<8x1xf32>
    %83 = vector.broadcast %75 : vector<8x1xf32> to vector<8x32xf32>
    %84 = arith.subf %69, %83 : vector<8x32xf32>
    %cst_46 = arith.constant 9.99999997E-7 : f32
    %85 = vector.broadcast %cst_46 : f32 to vector<8x1xf32>
    %86 = arith.addf %82, %85 : vector<8x1xf32>
    %87 = math.rsqrt %86 : vector<8x1xf32>
    %88 = vector.broadcast %87 : vector<8x1xf32> to vector<8x32xf32>
    %89 = arith.mulf %84, %88 : vector<8x32xf32>
    %90 = vector.broadcast %70 : vector<1x32xf32> to vector<8x32xf32>
    %91 = arith.mulf %89, %90 : vector<8x32xf32>
    %92 = vector.broadcast %71 : vector<1x32xf32> to vector<8x32xf32>
    %93 = arith.addf %91, %92 : vector<8x32xf32>
    %c0_47 = arith.constant 0 : index
    %c0_48 = arith.constant 0 : index
    %94 = vector.load %arg11[%c0_47, %c0_48] : memref<32x32xf32, #tpu.memory_space<vmem>>, vector<32x32xf32>
    %cst_49 = arith.constant dense<0.000000e+00> : vector<8x32xf32>
    %95 = tpu.matmul %93, %94, %cst_49 {dimension_numbers = #tpu.dot_dimension_numbers<[1], [0], [0], [1], [0, 0, 1, 1], [], []>} : vector<8x32xf32>, vector<32x32xf32>, vector<8x32xf32> -> vector<8x32xf32>
    %c0_50 = arith.constant 0 : index
    %c0_51 = arith.constant 0 : index
    %96 = vector.load %arg12[%c0_50, %c0_51] : memref<1x32xf32, #tpu.memory_space<vmem>>, vector<1x32xf32>
    %97 = vector.broadcast %96 : vector<1x32xf32> to vector<8x32xf32>
    %98 = arith.addf %95, %97 : vector<8x32xf32>
    %c0_52 = arith.constant 0 : index
    %c0_53 = arith.constant 0 : index
    %99 = vector.load %arg13[%c0_52, %c0_53] : memref<32x64xf32, #tpu.memory_space<vmem>>, vector<32x64xf32>
    %cst_54 = arith.constant dense<0.000000e+00> : vector<8x64xf32>
    %100 = tpu.matmul %3, %99, %cst_54 {dimension_numbers = #tpu.dot_dimension_numbers<[1], [0], [0], [1], [0, 0, 1, 1], [], []>} : vector<8x32xf32>, vector<32x64xf32>, vector<8x64xf32> -> vector<8x64xf32>
    %c0_55 = arith.constant 0 : index
    %c0_56 = arith.constant 0 : index
    %101 = vector.load %arg14[%c0_55, %c0_56] : memref<1x64xf32, #tpu.memory_space<vmem>>, vector<1x64xf32>
    %102 = vector.broadcast %101 : vector<1x64xf32> to vector<8x64xf32>
    %103 = arith.addf %100, %102 : vector<8x64xf32>
    %104 = vector.extract_strided_slice %103 {offsets = [0, 0], sizes = [8, 32], strides = [1, 1]} : vector<8x64xf32> to vector<8x32xf32>
    %105 = vector.extract_strided_slice %103 {offsets = [0, 32], sizes = [8, 32], strides = [1, 1]} : vector<8x64xf32> to vector<8x32xf32>
    %c0_57 = arith.constant 0 : index
    %c0_58 = arith.constant 0 : index
    %c0_59 = arith.constant 0 : index
    %106 = vector.load %arg4[%c0_57, %c0_58, %c0_59] : memref<1x8x8xf32, #tpu.memory_space<vmem>>, vector<1x8x8xf32>
    %107 = vector.shape_cast %106 : vector<1x8x8xf32> to vector<8x8xf32>
    %c0_60 = arith.constant 0 : index
    %c0_61 = arith.constant 0 : index
    %108 = vector.load %arg15[%c0_60, %c0_61] : memref<32x32xf32, #tpu.memory_space<vmem>>, vector<32x32xf32>
    %c0_62 = arith.constant 0 : index
    %c0_63 = arith.constant 0 : index
    %109 = vector.load %arg16[%c0_62, %c0_63] : memref<1x32xf32, #tpu.memory_space<vmem>>, vector<1x32xf32>
    %cst_64 = arith.constant 0.000000e+00 : f32
    %110 = vector.broadcast %cst_64 : f32 to vector<8x32xf32>
    %111 = vector.extract_strided_slice %98 {offsets = [0, 0], sizes = [8, 16], strides = [1, 1]} : vector<8x32xf32> to vector<8x16xf32>
    %112 = vector.extract_strided_slice %104 {offsets = [0, 0], sizes = [8, 16], strides = [1, 1]} : vector<8x32xf32> to vector<8x16xf32>
    %113 = vector.extract_strided_slice %105 {offsets = [0, 0], sizes = [8, 16], strides = [1, 1]} : vector<8x32xf32> to vector<8x16xf32>
    %cst_65 = arith.constant dense<0.000000e+00> : vector<8x8xf32>
    %114 = tpu.matmul %111, %112, %cst_65 {dimension_numbers = #tpu.dot_dimension_numbers<[1], [1], [0], [0], [0, 0, 1, 0], [], []>} : vector<8x16xf32>, vector<8x16xf32>, vector<8x8xf32> -> vector<8x8xf32>
    %cst_66 = arith.constant 2.500000e-01 : f32
    %115 = vector.broadcast %cst_66 : f32 to vector<8x8xf32>
    %116 = arith.mulf %114, %115 : vector<8x8xf32>
    %cst_67 = arith.constant -1.000000e+09 : f32
    %117 = vector.broadcast %cst_67 : f32 to vector<8x8xf32>
    %118 = arith.mulf %107, %117 : vector<8x8xf32>
    %119 = arith.addf %116, %118 : vector<8x8xf32>
    %cst_68 = arith.constant dense<0xFF800000> : vector<8xf32>
    %120 = vector.multi_reduction <maximumf>, %119, %cst_68 [1] : vector<8x8xf32> to vector<8xf32>
    %121 = vector.shape_cast %120 : vector<8xf32> to vector<8x1xf32>
    %122 = vector.broadcast %121 : vector<8x1xf32> to vector<8x8xf32>
    %123 = arith.subf %119, %122 : vector<8x8xf32>
    %124 = math.exp %123 : vector<8x8xf32>
    %cst_69 = arith.constant dense<0.000000e+00> : vector<8xf32>
    %125 = vector.multi_reduction <add>, %124, %cst_69 [1] : vector<8x8xf32> to vector<8xf32>
    %126 = vector.shape_cast %125 : vector<8xf32> to vector<8x1xf32>
    %127 = vector.broadcast %126 : vector<8x1xf32> to vector<8x8xf32>
    %128 = arith.divf %124, %127 : vector<8x8xf32>
    %c0_70 = arith.constant 0 : index
    %c0_71 = arith.constant 0 : index
    %c0_72 = arith.constant 0 : index
    %c0_73 = arith.constant 0 : index
    %129 = vector.load %arg27[%c0_70, %c0_71, %c0_72, %c0_73] : memref<1x2x8x8xf32, #tpu.memory_space<vmem>>, vector<1x1x8x8xf32>
    %130 = vector.shape_cast %129 : vector<1x1x8x8xf32> to vector<8x8xf32>
    %131 = vector.shape_cast %128 : vector<8x8xf32> to vector<1x1x8x8xf32>
    tpu.vector_store %arg27[%c0_70, %c0_71, %c0_72, %c0_73], %131 {strides = array<i32>} : memref<1x2x8x8xf32, #tpu.memory_space<vmem>>, vector<1x1x8x8xf32>,
    %cst_74 = arith.constant dense<0.000000e+00> : vector<8x16xf32>
    %132 = tpu.matmul %128, %113, %cst_74 {dimension_numbers = #tpu.dot_dimension_numbers<[1], [0], [0], [1], [0, 0, 1, 1], [], []>} : vector<8x8xf32>, vector<8x16xf32>, vector<8x16xf32> -> vector<8x16xf32>
    %133 = vector.extract_strided_slice %108 {offsets = [0, 0], sizes = [16, 32], strides = [1, 1]} : vector<32x32xf32> to vector<16x32xf32>
    %cst_75 = arith.constant dense<0.000000e+00> : vector<8x32xf32>
    %134 = tpu.matmul %132, %133, %cst_75 {dimension_numbers = #tpu.dot_dimension_numbers<[1], [0], [0], [1], [0, 0, 1, 1], [], []>} : vector<8x16xf32>, vector<16x32xf32>, vector<8x32xf32> -> vector<8x32xf32>
    %135 = arith.addf %110, %134 : vector<8x32xf32>
    %136 = vector.extract_strided_slice %98 {offsets = [0, 16], sizes = [8, 16], strides = [1, 1]} : vector<8x32xf32> to vector<8x16xf32>
    %137 = vector.extract_strided_slice %104 {offsets = [0, 16], sizes = [8, 16], strides = [1, 1]} : vector<8x32xf32> to vector<8x16xf32>
    %138 = vector.extract_strided_slice %105 {offsets = [0, 16], sizes = [8, 16], strides = [1, 1]} : vector<8x32xf32> to vector<8x16xf32>
    %cst_76 = arith.constant dense<0.000000e+00> : vector<8x8xf32>
    %139 = tpu.matmul %136, %137, %cst_76 {dimension_numbers = #tpu.dot_dimension_numbers<[1], [1], [0], [0], [0, 0, 1, 0], [], []>} : vector<8x16xf32>, vector<8x16xf32>, vector<8x8xf32> -> vector<8x8xf32>
    %cst_77 = arith.constant 2.500000e-01 : f32
    %140 = vector.broadcast %cst_77 : f32 to vector<8x8xf32>
    %141 = arith.mulf %139, %140 : vector<8x8xf32>
    %cst_78 = arith.constant -1.000000e+09 : f32
    %142 = vector.broadcast %cst_78 : f32 to vector<8x8xf32>
    %143 = arith.mulf %107, %142 : vector<8x8xf32>
    %144 = arith.addf %141, %143 : vector<8x8xf32>
    %cst_79 = arith.constant dense<0xFF800000> : vector<8xf32>
    %145 = vector.multi_reduction <maximumf>, %144, %cst_79 [1] : vector<8x8xf32> to vector<8xf32>
    %146 = vector.shape_cast %145 : vector<8xf32> to vector<8x1xf32>
    %147 = vector.broadcast %146 : vector<8x1xf32> to vector<8x8xf32>
    %148 = arith.subf %144, %147 : vector<8x8xf32>
    %149 = math.exp %148 : vector<8x8xf32>
    %cst_80 = arith.constant dense<0.000000e+00> : vector<8xf32>
    %150 = vector.multi_reduction <add>, %149, %cst_80 [1] : vector<8x8xf32> to vector<8xf32>
    %151 = vector.shape_cast %150 : vector<8xf32> to vector<8x1xf32>
    %152 = vector.broadcast %151 : vector<8x1xf32> to vector<8x8xf32>
    %153 = arith.divf %149, %152 : vector<8x8xf32>
    %c0_81 = arith.constant 0 : index
    %c1_82 = arith.constant 1 : index
    %c0_83 = arith.constant 0 : index
    %c0_84 = arith.constant 0 : index
    %154 = vector.load %arg27[%c0_81, %c1_82, %c0_83, %c0_84] : memref<1x2x8x8xf32, #tpu.memory_space<vmem>>, vector<1x1x8x8xf32>
    %155 = vector.shape_cast %154 : vector<1x1x8x8xf32> to vector<8x8xf32>
    %156 = vector.shape_cast %153 : vector<8x8xf32> to vector<1x1x8x8xf32>
    tpu.vector_store %arg27[%c0_81, %c1_82, %c0_83, %c0_84], %156 {strides = array<i32>} : memref<1x2x8x8xf32, #tpu.memory_space<vmem>>, vector<1x1x8x8xf32>,
    %cst_85 = arith.constant dense<0.000000e+00> : vector<8x16xf32>
    %157 = tpu.matmul %153, %138, %cst_85 {dimension_numbers = #tpu.dot_dimension_numbers<[1], [0], [0], [1], [0, 0, 1, 1], [], []>} : vector<8x8xf32>, vector<8x16xf32>, vector<8x16xf32> -> vector<8x16xf32>
    %158 = vector.extract_strided_slice %108 {offsets = [16, 0], sizes = [16, 32], strides = [1, 1]} : vector<32x32xf32> to vector<16x32xf32>
    %cst_86 = arith.constant dense<0.000000e+00> : vector<8x32xf32>
    %159 = tpu.matmul %157, %158, %cst_86 {dimension_numbers = #tpu.dot_dimension_numbers<[1], [0], [0], [1], [0, 0, 1, 1], [], []>} : vector<8x16xf32>, vector<16x32xf32>, vector<8x32xf32> -> vector<8x32xf32>
    %160 = arith.addf %135, %159 : vector<8x32xf32>
    %161 = vector.broadcast %109 : vector<1x32xf32> to vector<8x32xf32>
    %162 = arith.addf %160, %161 : vector<8x32xf32>
    %163 = arith.addf %162, %93 : vector<8x32xf32>
    %c0_87 = arith.constant 0 : index
    %c0_88 = arith.constant 0 : index
    %164 = vector.load %arg17[%c0_87, %c0_88] : memref<1x32xf32, #tpu.memory_space<vmem>>, vector<1x32xf32>
    %c0_89 = arith.constant 0 : index
    %c0_90 = arith.constant 0 : index
    %165 = vector.load %arg18[%c0_89, %c0_90] : memref<1x32xf32, #tpu.memory_space<vmem>>, vector<1x32xf32>
    %cst_91 = arith.constant dense<0.000000e+00> : vector<8xf32>
    %166 = vector.multi_reduction <add>, %163, %cst_91 [1] : vector<8x32xf32> to vector<8xf32>
    %167 = vector.shape_cast %166 : vector<8xf32> to vector<8x1xf32>
    %cst_92 = arith.constant 3.200000e+01 : f32
    %168 = vector.broadcast %cst_92 : f32 to vector<8x1xf32>
    %169 = arith.divf %167, %168 : vector<8x1xf32>
    %170 = vector.broadcast %169 : vector<8x1xf32> to vector<8x32xf32>
    %171 = arith.subf %163, %170 : vector<8x32xf32>
    %172 = arith.mulf %171, %171 : vector<8x32xf32>
    %cst_93 = arith.constant dense<0.000000e+00> : vector<8xf32>
    %173 = vector.multi_reduction <add>, %172, %cst_93 [1] : vector<8x32xf32> to vector<8xf32>
    %174 = vector.shape_cast %173 : vector<8xf32> to vector<8x1xf32>
    %cst_94 = arith.constant 3.200000e+01 : f32
    %175 = vector.broadcast %cst_94 : f32 to vector<8x1xf32>
    %176 = arith.divf %174, %175 : vector<8x1xf32>
    %177 = vector.broadcast %169 : vector<8x1xf32> to vector<8x32xf32>
    %178 = arith.subf %163, %177 : vector<8x32xf32>
    %cst_95 = arith.constant 9.99999997E-7 : f32
    %179 = vector.broadcast %cst_95 : f32 to vector<8x1xf32>
    %180 = arith.addf %176, %179 : vector<8x1xf32>
    %181 = math.rsqrt %180 : vector<8x1xf32>
    %182 = vector.broadcast %181 : vector<8x1xf32> to vector<8x32xf32>
    %183 = arith.mulf %178, %182 : vector<8x32xf32>
    %184 = vector.broadcast %164 : vector<1x32xf32> to vector<8x32xf32>
    %185 = arith.mulf %183, %184 : vector<8x32xf32>
    %186 = vector.broadcast %165 : vector<1x32xf32> to vector<8x32xf32>
    %187 = arith.addf %185, %186 : vector<8x32xf32>
    %c0_96 = arith.constant 0 : index
    %c0_97 = arith.constant 0 : index
    %188 = vector.load %arg19[%c0_96, %c0_97] : memref<32x64xf32, #tpu.memory_space<vmem>>, vector<32x64xf32>
    %cst_98 = arith.constant dense<0.000000e+00> : vector<8x64xf32>
    %189 = tpu.matmul %187, %188, %cst_98 {dimension_numbers = #tpu.dot_dimension_numbers<[1], [0], [0], [1], [0, 0, 1, 1], [], []>} : vector<8x32xf32>, vector<32x64xf32>, vector<8x64xf32> -> vector<8x64xf32>
    %c0_99 = arith.constant 0 : index
    %c0_100 = arith.constant 0 : index
    %190 = vector.load %arg20[%c0_99, %c0_100] : memref<1x64xf32, #tpu.memory_space<vmem>>, vector<1x64xf32>
    %191 = vector.broadcast %190 : vector<1x64xf32> to vector<8x64xf32>
    %192 = arith.addf %189, %191 : vector<8x64xf32>
    %cst_101 = arith.constant 0.000000e+00 : f32
    %193 = vector.broadcast %cst_101 : f32 to vector<8x64xf32>
    %194 = arith.maximumf %192, %193 : vector<8x64xf32>
    %c0_102 = arith.constant 0 : index
    %c0_103 = arith.constant 0 : index
    %195 = vector.load %arg21[%c0_102, %c0_103] : memref<64x32xf32, #tpu.memory_space<vmem>>, vector<64x32xf32>
    %cst_104 = arith.constant dense<0.000000e+00> : vector<8x32xf32>
    %196 = tpu.matmul %194, %195, %cst_104 {dimension_numbers = #tpu.dot_dimension_numbers<[1], [0], [0], [1], [0, 0, 1, 1], [], []>} : vector<8x64xf32>, vector<64x32xf32>, vector<8x32xf32> -> vector<8x32xf32>
    %c0_105 = arith.constant 0 : index
    %c0_106 = arith.constant 0 : index
    %197 = vector.load %arg22[%c0_105, %c0_106] : memref<1x32xf32, #tpu.memory_space<vmem>>, vector<1x32xf32>
    %198 = vector.broadcast %197 : vector<1x32xf32> to vector<8x32xf32>
    %199 = arith.addf %196, %198 : vector<8x32xf32>
    %200 = arith.addf %199, %187 : vector<8x32xf32>
    %c0_107 = arith.constant 0 : index
    %c0_108 = arith.constant 0 : index
    %201 = vector.load %arg23[%c0_107, %c0_108] : memref<1x32xf32, #tpu.memory_space<vmem>>, vector<1x32xf32>
    %c0_109 = arith.constant 0 : index
    %c0_110 = arith.constant 0 : index
    %202 = vector.load %arg24[%c0_109, %c0_110] : memref<1x32xf32, #tpu.memory_space<vmem>>, vector<1x32xf32>
    %cst_111 = arith.constant dense<0.000000e+00> : vector<8xf32>
    %203 = vector.multi_reduction <add>, %200, %cst_111 [1] : vector<8x32xf32> to vector<8xf32>
    %204 = vector.shape_cast %203 : vector<8xf32> to vector<8x1xf32>
    %cst_112 = arith.constant 3.200000e+01 : f32
    %205 = vector.broadcast %cst_112 : f32 to vector<8x1xf32>
    %206 = arith.divf %204, %205 : vector<8x1xf32>
    %207 = vector.broadcast %206 : vector<8x1xf32> to vector<8x32xf32>
    %208 = arith.subf %200, %207 : vector<8x32xf32>
    %209 = arith.mulf %208, %208 : vector<8x32xf32>
    %cst_113 = arith.constant dense<0.000000e+00> : vector<8xf32>
    %210 = vector.multi_reduction <add>, %209, %cst_113 [1] : vector<8x32xf32> to vector<8xf32>
    %211 = vector.shape_cast %210 : vector<8xf32> to vector<8x1xf32>
    %cst_114 = arith.constant 3.200000e+01 : f32
    %212 = vector.broadcast %cst_114 : f32 to vector<8x1xf32>
    %213 = arith.divf %211, %212 : vector<8x1xf32>
    %214 = vector.broadcast %206 : vector<8x1xf32> to vector<8x32xf32>
    %215 = arith.subf %200, %214 : vector<8x32xf32>
    %cst_115 = arith.constant 9.99999997E-7 : f32
    %216 = vector.broadcast %cst_115 : f32 to vector<8x1xf32>
    %217 = arith.addf %213, %216 : vector<8x1xf32>
    %218 = math.rsqrt %217 : vector<8x1xf32>
    %219 = vector.broadcast %218 : vector<8x1xf32> to vector<8x32xf32>
    %220 = arith.mulf %215, %219 : vector<8x32xf32>
    %221 = vector.broadcast %201 : vector<1x32xf32> to vector<8x32xf32>
    %222 = arith.mulf %220, %221 : vector<8x32xf32>
    %223 = vector.broadcast %202 : vector<1x32xf32> to vector<8x32xf32>
    %224 = arith.addf %222, %223 : vector<8x32xf32>
    %c0_116 = arith.constant 0 : index
    %c0_117 = arith.constant 0 : index
    %c0_118 = arith.constant 0 : index
    %225 = vector.load %arg25[%c0_116, %c0_117, %c0_118] : memref<1x8x32xf32, #tpu.memory_space<vmem>>, vector<1x8x32xf32>
    %226 = vector.shape_cast %225 : vector<1x8x32xf32> to vector<8x32xf32>
    %227 = vector.shape_cast %224 : vector<8x32xf32> to vector<1x8x32xf32>
    tpu.vector_store %arg25[%c0_116, %c0_117, %c0_118], %227 {strides = array<i32>} : memref<1x8x32xf32, #tpu.memory_space<vmem>>, vector<1x8x32xf32>,
    return
  }
  func.func @transform_0(%arg0: i32) -> (i32, i32, i32) {
    %c0_i32 = arith.constant 0 : i32
    %c0_i32_0 = arith.constant 0 : i32
    %c0_i32_1 = arith.constant 0 : i32
    return %arg0, %c0_i32, %c0_i32_0 : i32, i32, i32
  }
  func.func @transform_1(%arg0: i32) -> (i32, i32, i32) {
    %c0_i32 = arith.constant 0 : i32
    %c0_i32_0 = arith.constant 0 : i32
    %c0_i32_1 = arith.constant 0 : i32
    return %arg0, %c0_i32, %c0_i32_0 : i32, i32, i32
  }
  func.func @transform_2(%arg0: i32) -> (i32, i32, i32) {
    %c0_i32 = arith.constant 0 : i32
    %c0_i32_0 = arith.constant 0 : i32
    %c0_i32_1 = arith.constant 0 : i32
    return %arg0, %c0_i32, %c0_i32_0 : i32, i32, i32
  }
  func.func @transform_3(%arg0: i32) -> (i32, i32, i32) {
    %c0_i32 = arith.constant 0 : i32
    %c0_i32_0 = arith.constant 0 : i32
    %c0_i32_1 = arith.constant 0 : i32
    return %arg0, %c0_i32, %c0_i32_0 : i32, i32, i32
  }
  func.func @transform_4(%arg0: i32) -> (i32, i32) {
    %c0_i32 = arith.constant 0 : i32
    %c0_i32_0 = arith.constant 0 : i32
    %c0_i32_1 = arith.constant 0 : i32
    return %c0_i32, %c0_i32_0 : i32, i32
  }
  func.func @transform_5(%arg0: i32) -> (i32, i32) {
    %c0_i32 = arith.constant 0 : i32
    %c0_i32_0 = arith.constant 0 : i32
    %c0_i32_1 = arith.constant 0 : i32
    return %c0_i32, %c0_i32_0 : i32, i32
  }
  func.func @transform_6(%arg0: i32) -> (i32, i32) {
    %c0_i32 = arith.constant 0 : i32
    %c0_i32_0 = arith.constant 0 : i32
    %c0_i32_1 = arith.constant 0 : i32
    return %c0_i32, %c0_i32_0 : i32, i32
  }
  func.func @transform_7(%arg0: i32) -> (i32, i32) {
    %c0_i32 = arith.constant 0 : i32
    %c0_i32_0 = arith.constant 0 : i32
    %c0_i32_1 = arith.constant 0 : i32
    return %c0_i32, %c0_i32_0 : i32, i32
  }
  func.func @transform_8(%arg0: i32) -> (i32, i32) {
    %c0_i32 = arith.constant 0 : i32
    %c0_i32_0 = arith.constant 0 : i32
    %c0_i32_1 = arith.constant 0 : i32
    return %c0_i32, %c0_i32_0 : i32, i32
  }
  func.func @transform_9(%arg0: i32) -> (i32, i32) {
    %c0_i32 = arith.constant 0 : i32
    %c0_i32_0 = arith.constant 0 : i32
    %c0_i32_1 = arith.constant 0 : i32
    return %c0_i32, %c0_i32_0 : i32, i32
  }
  func.func @transform_10(%arg0: i32) -> (i32, i32) {
    %c0_i32 = arith.constant 0 : i32
    %c0_i32_0 = arith.constant 0 : i32
    %c0_i32_1 = arith.constant 0 : i32
    return %c0_i32, %c0_i32_0 : i32, i32
  }
  func.func @transform_11(%arg0: i32) -> (i32, i32) {
    %c0_i32 = arith.constant 0 : i32
    %c0_i32_0 = arith.constant 0 : i32
    %c0_i32_1 = arith.constant 0 : i32
    return %c0_i32, %c0_i32_0 : i32, i32
  }
  func.func @transform_12(%arg0: i32) -> (i32, i32) {
    %c0_i32 = arith.constant 0 : i32
    %c0_i32_0 = arith.constant 0 : i32
    %c0_i32_1 = arith.constant 0 : i32
    return %c0_i32, %c0_i32_0 : i32, i32
  }
  func.func @transform_13(%arg0: i32) -> (i32, i32) {
    %c0_i32 = arith.constant 0 : i32
    %c0_i32_0 = arith.constant 0 : i32
    %c0_i32_1 = arith.constant 0 : i32
    return %c0_i32, %c0_i32_0 : i32, i32
  }
  func.func @transform_14(%arg0: i32) -> (i32, i32) {
    %c0_i32 = arith.constant 0 : i32
    %c0_i32_0 = arith.constant 0 : i32
    %c0_i32_1 = arith.constant 0 : i32
    return %c0_i32, %c0_i32_0 : i32, i32
  }
  func.func @transform_15(%arg0: i32) -> (i32, i32) {
    %c0_i32 = arith.constant 0 : i32
    %c0_i32_0 = arith.constant 0 : i32
    %c0_i32_1 = arith.constant 0 : i32
    return %c0_i32, %c0_i32_0 : i32, i32
  }
  func.func @transform_16(%arg0: i32) -> (i32, i32) {
    %c0_i32 = arith.constant 0 : i32
    %c0_i32_0 = arith.constant 0 : i32
    %c0_i32_1 = arith.constant 0 : i32
    return %c0_i32, %c0_i32_0 : i32, i32
  }
  func.func @transform_17(%arg0: i32) -> (i32, i32) {
    %c0_i32 = arith.constant 0 : i32
    %c0_i32_0 = arith.constant 0 : i32
    %c0_i32_1 = arith.constant 0 : i32
    return %c0_i32, %c0_i32_0 : i32, i32
  }
  func.func @transform_18(%arg0: i32) -> (i32, i32) {
    %c0_i32 = arith.constant 0 : i32
    %c0_i32_0 = arith.constant 0 : i32
    %c0_i32_1 = arith.constant 0 : i32
    return %c0_i32, %c0_i32_0 : i32, i32
  }
  func.func @transform_19(%arg0: i32) -> (i32, i32) {
    %c0_i32 = arith.constant 0 : i32
    %c0_i32_0 = arith.constant 0 : i32
    %c0_i32_1 = arith.constant 0 : i32
    return %c0_i32, %c0_i32_0 : i32, i32
  }
  func.func @transform_20(%arg0: i32) -> (i32, i32) {
    %c0_i32 = arith.constant 0 : i32
    %c0_i32_0 = arith.constant 0 : i32
    %c0_i32_1 = arith.constant 0 : i32
    return %c0_i32, %c0_i32_0 : i32, i32
  }
  func.func @transform_21(%arg0: i32) -> (i32, i32) {
    %c0_i32 = arith.constant 0 : i32
    %c0_i32_0 = arith.constant 0 : i32
    %c0_i32_1 = arith.constant 0 : i32
    return %c0_i32, %c0_i32_0 : i32, i32
  }
  func.func @transform_22(%arg0: i32) -> (i32, i32) {
    %c0_i32 = arith.constant 0 : i32
    %c0_i32_0 = arith.constant 0 : i32
    %c0_i32_1 = arith.constant 0 : i32
    return %c0_i32, %c0_i32_0 : i32, i32
  }
  func.func @transform_23(%arg0: i32) -> (i32, i32) {
    %c0_i32 = arith.constant 0 : i32
    %c0_i32_0 = arith.constant 0 : i32
    %c0_i32_1 = arith.constant 0 : i32
    return %c0_i32, %c0_i32_0 : i32, i32
  }
  func.func @transform_24(%arg0: i32) -> (i32, i32, i32) {
    %c0_i32 = arith.constant 0 : i32
    %c0_i32_0 = arith.constant 0 : i32
    %c0_i32_1 = arith.constant 0 : i32
    return %arg0, %c0_i32, %c0_i32_0 : i32, i32, i32
  }
  func.func @transform_25(%arg0: i32) -> (i32, i32, i32, i32) {
    %c0_i32 = arith.constant 0 : i32
    %c0_i32_0 = arith.constant 0 : i32
    %c0_i32_1 = arith.constant 0 : i32
    %c0_i32_2 = arith.constant 0 : i32
    return %arg0, %c0_i32, %c0_i32_0, %c0_i32_1 : i32, i32, i32, i32
  }
  func.func @transform_26(%arg0: i32) -> (i32, i32, i32, i32) {
    %c0_i32 = arith.constant 0 : i32
    %c0_i32_0 = arith.constant 0 : i32
    %c0_i32_1 = arith.constant 0 : i32
    %c0_i32_2 = arith.constant 0 : i32
    return %arg0, %c0_i32, %c0_i32_0, %c0_i32_1 : i32, i32, i32, i32
  }
}

</mosaic_0001>

<bundles_post_ra>
// kernel: transformer_forward.9
= control target key start
LH: loop header
LB: loop body
LE: loop exit
PB: predicated region body
PF: predicated region fallthrough
CT: control target
= control target key end

     0   :  { %8 = vsyncpa [#allocation3], 0  ;;  %s511_s0 = inlined_call_operand.vmem [shape: f32[2,8,32], index: 0, kind: input, shape index: {}]   ;;  %s512_s1 = inlined_call_operand.vmem [shape: f32[32,60], index: 1, kind: input, shape index: {}]   ;;  %s513_s2 = inlined_call_operand.vmem [shape: f32[1,60], index: 2, kind: input, shape index: {}]   ;;  %s514_s3 = inlined_call_operand.hbm [shape: f32[2,8,60], index: 3, kind: output, shape index: {}]  }
   0x1   :  { %10 = vsyncpa [#allocation3 + $0x1], 0  ;;  %s411_s12 = smov 0   ;;  %s413_s13 = smov 0  }
   0x2   :  { %s415_s14 = smov 0   ;;  %s417_s15 = smov 0  }
   0x3 LB: > { %s432_s16 = sadd.s32 4294967295, %s389_s15   ;;  %s276_s17 = sadd.s32 4294967294, %s389_s15   ;;  %s389_s15 = sphi %s417_s15, %s520_s15   ;;  %s385_s14 = sphi %s415_s14, %s519_s14   ;;  %s381_s13 = sphi %s413_s13, %s518_s13   ;;  %s377_s12 = sphi %s411_s12, %s517_s12  }
   0x4   : > { %s436_s18 = sadd.s32 1, %s389_s15   ;;  %s91_s19 = sadd.s32 1, %s385_s14 }
   0x5   : > { %s88_s20 = ssub.s32 %s389_s15, %s436_s18  ;;  %p101_p0 = scmp.ne.s32.totalorder %s385_s14, %s381_s13 }
   0x6   : > { %p89_p1 = scmp.eq.s32.totalorder %s88_s20, 0  ;;  %p102_p2 = scmp.eq.s32.totalorder %s432_s16, 1 }
   0x7   : > { %p107_p3 = scmp.ne.s32.totalorder %s381_s13, %s377_s12  ;;  %p108_p4 = scmp.eq.s32.totalorder %s276_s17, 1 }
   0x8   : > { %s447_s21 = scalar_select %p89_p1, %s385_s14, %s91_s19  }
   0x9   : > { %p449_p5 = por %p102_p2, %p101_p0  ;;  %p453_p6 = por %p108_p4, %p107_p3 }
   0xa   : > { %p279_p7 = scmp.ge.s32.totalorder %s389_s15, 1  ;;  %p139_p8 = scmp.lt.s32.totalorder %s389_s15, 3 }
   0xc   : > { %p140_p9 = pnand %p279_p7, %p139_p8 }
   0xd   : > { %p162_p10 = scmp.lt.s32.totalorder (!%p140_p9), %s432_s16, 1  ;;  %s159_s10 = sand.u32 (!%p140_p9), 1, %s381_s13  }
   0xe   : > { %143 = sbr.rel (%p140_p9) target bundleno = 158 (0x9e), region = 32  ;;  %s280_s11 = sshll.u32 (!%p140_p9), %s159_s10, 3 }
   0xf   : > { %s284_s17 = sshll.u32 (!%p140_p9), %s432_s16, 3  ;;  %s161_s27 = scalar_lea.vmem (!%p140_p9), [#allocation2], %s280_s11 }
  0x10   : > { %s212_s24 = scalar_lea.hbm (!%p140_p9), %s514_s3, %s284_s17  ;;  %s214_s28 = sshll.u32 (!%p140_p9), %s161_s27, 4  ;;  %s215_s28 = int_to_ptr.vmem [resolvable:$true] %s214_s28 }
  0x11   : > { %s216_s29 = sshll.u32 (!%p140_p9), %s212_s24, 4  ;;  %s347_s7 = scalar_lea.hbm (!%p140_p9), %s514_s3, 16  ;;  %s217_s29 = int_to_ptr.hbm [resolvable:$true] %s216_s29 }
  0x13   : > { %v170_v0 = vld [vmem:[%s512_s1 + $0x18] sm:$0xff]  ;;  %v169_v1 = vld [vmem:[%s512_s1 + $0x10] sm:$0xff]  ;;  %v168_v2 = vld [vmem:[%s512_s1 + $0x8] sm:$0xff]  ;;  %s163_s30 = scalar_select %p162_p10, %s432_s16, 1  ;;  %vm175_vm0 = vcmask 261120   ;;  %vm199_vm1 = vcmask 490496  }
  0x14   : > { %191 = vmatpush.msra.mxu0 %v170_v0  ;;  %v167_v3 = vld [vmem:[%s512_s1] sm:$0xff]  ;;  %s341_s16 = sshra.s32 %s217_s29, 4  ;;  %s342_s16 = int_to_ptr.hbm [resolvable:$true] %s341_s16 }
  0x15   : > { %s281_s6 = sshll.u32 %s163_s30, 3  ;;  %v326_v5 = vld [vmem:[%s513_s2] ss:$0 sm:$0xff]  ;;  %s202_s30 = scalar_lea.sflag [#allocation3], %s159_s10 }
  0x16   : > { %192 = vmatpush.msra.mxu0 %v169_v1  ;;  %s165_s9 = scalar_lea.vmem %s511_s0, %s281_s6  ;;  %s343_s4 = scalar_lea.hbm %s342_s16, 8 }
  0x17   : > { %v166_v4 = vld [vmem:[%s165_s9] sm:$0xff]  ;;  %p344_p11 = scmp.ne.s32.totalorder %s342_s16, %s343_s4  ;;  %p348_p0 = scmp.lt.s32.totalorder %s342_s16, %s514_s3 }
  0x18   : > { %193 = vmatpush.msra.mxu0 %v168_v2  ;;  %p349_p1 = scmp.lt.s32.totalorder %s347_s7, %s343_s4 }
  0x19   : > { %p345_p12 = pnand %p344_p11, %p449_p5 }
  0x1a   : > { %194 = vmatpush.msra.mxu0 %v167_v3  ;;  %p350_p2 = por %p349_p1, %p348_p0 }
  0x1b   : > { %282 = vmatmul.msk.f32.vlgmr.msra.gmra.mxu0 %vm175_vm0, %v166_v4  ;;  %p346_p13 = pneg %p345_p12 }
  0x1d   : > { %p351_p3 = pnand %p350_p2, %p346_p13 }
  0x98   : > { %v196_v6 = vpop.f32.mrf.mxu0 }
  0x99   : > { %v197_v7 = vadd.f32 %v326_v5, %v196_v6 }
  0x9b   : > { %200 = vst.msk [vmem:[%s161_s27] sm:$0xff] %vm199_vm1, %v197_v7 }
  0x9c   : > { %354 = shalt.err (!%p351_p3)
}
  0x9d   : > { %287 = dma.vmem_to_hbm [thread:$0]  (%p449_p5), %s215_s28, 128, %s217_s29, %s202_s30  }
  0x9e PF: > { %p293_p4 = scmp.ge.s32.totalorder %s389_s15, 2  ;;  %s228_s10 = sand.u32 1, %s377_s12  }
  0x9f   : > { %s229_s11 = scalar_lea.sflag [#allocation3], %s228_s10 }
  0xa0   : > { %p290_p7 = pnand %p293_p4, %p453_p6 }
  0xa2   : > { %p291_p8 = pneg %p290_p7 }
  0xa4   : > { %372 = dma.done.wait (%p291_p8), %s229_s11, 128  }
  0xa5   : > { %374 = vsyncadd (%p291_p8), %s229_s11, 4294967168  ;;  %p13_p9 = scmp.ge.s32.totalorder %s436_s18, 4   ;;  %s517_s12 = smov %s381_s13 }
  0xa6   : > { %s518_s13 = smov %s385_s14  ;;  %s519_s14 = smov %s447_s21 }
  0xa7   : > { %s520_s15 = smov %s436_s18  ;;  %15 = sbr.rel (!%p13_p9) target bundleno = 3 (0x3), region = 67 }
  0xac   :  { %235 = vsyncpa [#allocation3], 1 }
  0xad   :  { %237 = vsyncpa [#allocation3 + $0x1], 1 }

// kernel: transformer_forward.5
= control target key start
LH: loop header
LB: loop body
LE: loop exit
PB: predicated region body
PF: predicated region fallthrough
CT: control target
= control target key end

     0   :  { %s1084_s29 = smov 0   ;;  %s1222_s0 = inlined_call_operand.vmem [shape: f32[2,8,32], index: 0, kind: input, shape index: {}]   ;;  %s1223_s1 = inlined_call_operand.vmem [shape: f32[2,8,8], index: 1, kind: input, shape index: {}]   ;;  %s1224_s2 = inlined_call_operand.vmem [shape: f32[32,96], index: 2, kind: input, shape index: {}]   ;;  %s1225_s3 = inlined_call_operand.vmem [shape: f32[1,96], index: 3, kind: input, shape index: {}]   ;;  %s1226_s4 = inlined_call_operand.vmem [shape: f32[32,32], index: 4, kind: input, shape index: {}]   ;;  %s1227_s5 = inlined_call_operand.vmem [shape: f32[1,32], index: 5, kind: input, shape index: {}]   ;;  %s1228_s6 = inlined_call_operand.vmem [shape: f32[1,32], index: 6, kind: input, shape index: {}]   ;;  %s1229_s7 = inlined_call_operand.vmem [shape: f32[1,32], index: 7, kind: input, shape index: {}]   ;;  %s1230_s8 = inlined_call_operand.vmem [shape: f32[32,64], index: 8, kind: input, shape index: {}]   ;;  %s1231_s9 = inlined_call_operand.vmem [shape: f32[1,64], index: 9, kind: input, shape index: {}]   ;;  %s1232_s10 = inlined_call_operand.vmem [shape: f32[64,32], index: 10, kind: input, shape index: {}]   ;;  %s1233_s11 = inlined_call_operand.vmem [shape: f32[1,32], index: 11, kind: input, shape index: {}]   ;;  %s1234_s12 = inlined_call_operand.vmem [shape: f32[1,32], index: 12, kind: input, shape index: {}]   ;;  %s1235_s13 = inlined_call_operand.vmem [shape: f32[1,32], index: 13, kind: input, shape index: {}]   ;;  %s1236_s14 = inlined_call_operand.vmem [shape: f32[2,8,32], index: 14, kind: output, shape index: {}]  }
   0x1 LB: > { %s938_s30 = sadd.s32 4294967295, %s1001_s29   ;;  %p942_p0 = scmp.ge.s32.totalorder %s1001_s29, 1  ;;  %s1001_s29 = sphi %s1084_s29, %s24_s29  }
   0x2   : > { %p420_p1 = scmp.lt.s32.totalorder %s1001_s29, 3 }
   0x4   : > { %p421_p2 = pnand %p942_p0, %p420_p1 }
   0x5   : > { %p468_p3 = scmp.lt.s32.totalorder (!%p421_p2), %s938_s30, 1  ;;  %s1004_s15 = smov (!%p421_p2), 96  }
   0x6   : > { %424 = sbr.rel (%p421_p2) target bundleno = 2140 (0x85c), region = 76  ;;  %s1005_s16 = smov (!%p421_p2), 112  }
   0x7   : > { %s1006_s20 = smov (!%p421_p2), 48   ;;  %s1007_s21 = smov (!%p421_p2), 64  }
   0xb   : > { %v484_v0 = vld [vmem:[%s1224_s2 + $0x18] sm:$0xff]  ;;  %v483_v1 = vld [vmem:[%s1224_s2 + $0x10] sm:$0xff]  ;;  %v482_v2 = vld [vmem:[%s1224_s2 + $0x8] sm:$0xff]  ;;  %s1238_s30 = smov (!%p468_p3, %s938_s30), 1  ;;  %vm489_vm0 = vcmask 261120   ;;  %vm522_vm1 = vcmask 130048  }
   0xc   : > { %505 = vmatpush.msra.mxu0 %v484_v0  ;;  %v481_v3 = vld [vmem:[%s1224_s2] sm:$0xff]  ;;  %s1104_s23 = sshll.u32 %s1238_s30, 3  ;;  %s1003_s30 = smov 80   ;;  %vm550_vm2 = vcmask 64512   ;;  %v515_v35 = vld [vmem:[%s1226_s4 + $0x8] sm:$0xff]  ;;  %v517_v48 = vld [vmem:[%s1226_s4 + $0x18] sm:$0xff] }
   0xd   : > { %s471_s26 = scalar_lea.vmem %s1222_s0, %s1104_s23  ;;  %v973_v5 = vld [vmem:[%s1225_s3] ss:$0 sm:$0xff]  ;;  %s475_s19 = scalar_lea.vmem %s1223_s1, %s1104_s23  ;;  %v516_v49 = vld [vmem:[%s1226_s4 + $0x10] sm:$0xff]  ;;  %vm815_vm15 = vcmask 523264  }
   0xe   : > { %506 = vmatpush.msra.mxu0 %v483_v1  ;;  %v1110_v4 = vld [vmem:[%s471_s26] sm:$0xff] }
   0xf   : > { %v513_v9 = vld [vmem:[%s475_s19] sm:$0xff] }
  0x10   : > { %507 = vmatpush.msra.mxu0 %v482_v2  ;;  %v548_v10 = vmul.f32 -1e+09, %v513_v9  ;;  %v514_v37 = vld [vmem:[%s1226_s4] sm:$0xff] }
  0x11   : > { %v974_v63 = vld [vmem:[%s1227_s5] ss:$0 sm:$0xff] }
  0x12   : > { %508 = vmatpush.msra.mxu0 %v481_v3 }
  0x13   : > { %946 = vmatmul.msk.f32.vlgmr.msra.gmra.mxu0 %vm489_vm0, %v1110_v4 }
  0x90   : > { %v510_v6 = vpop.f32.mrf.mxu0 }
  0x91   : > { %v511_v7 = vadd.f32 %v973_v5, %v510_v6 }
  0x93   : > { %603 = vrot.lane.b32.xlu2 %v511_v7, %s1003_s30  ;;  %520 = vrot.lane.b32.xlu0 %v511_v7, %s1004_s15  ;;  %s479_s30 = scalar_lea.vmem %s1236_s14, %s1104_s23 }
  0x9b   : > { %601 = vrot.lane.b32.xlu2 %v511_v7, %s1005_s16 }
  0xed   : > { %v604_v32 = vpop.permute.xlu2 %603 }
  0xf5   : > { %v602_v36 = vpop.permute.xlu2 %601 }
 0x105   : > { %v521_v8 = vpop.permute.xlu0 %520 }
 0x106   : > { %947 = vmatpush.xpose.msk.msra.mxu1 %vm522_vm1, %v521_v8 }
 0x109   : > { %948 = vmatmul.msk.f32.vlgmr.msra.gmra.mxu1 %vm522_vm1, %v511_v7 }
 0x10a   : > { %698 = vmatpush.msrb.mxu1 %v517_v48 }
 0x10c   : > { %699 = vmatpush.msrb.mxu1 %v516_v49  ;;  %v978_v49 = vld [vmem:[%s1233_s11] ss:$0 sm:$0xff] }
 0x186   : > { %v544_v11 = vpop.f32.mrf.mxu1 }
 0x187   : > { %v547_v12 = vmul.f32 0.25, %v544_v11 }
 0x189   : > { %v549_v13 = vadd.f32 %v548_v10, %v547_v12 }
 0x18b   : > { %v551_v14 = vsel %vm550_vm2, %v549_v13, -inf }
 0x18c   : > { %552 = vmax.xlane.f32.xlu0 %v551_v14 }
 0x1a0   : > { %655 = vrot.lane.b32.xlu0 %v511_v7, %s1006_s20 }
 0x1ff   : > { %v553_v15 = vpop.xlane.xlu0 %552 }
 0x200   : > { %v554_v16 = vsub.f32 %v549_v13, %v553_v15 }
 0x202   : > { %v555_v17 = vmul.f32 1.442695, %v554_v16 }
 0x204   : > { %981 = vpow2.f32 %v555_v17 }
 0x20a   : > { %v982_v18 = vpop.eup %981 }
 0x20b   : > { %v557_v19 = vsel %vm550_vm2, %v982_v18, 0.0 }
 0x20c   : > { %558 = vadd.xlane.f32.xlu1 %v557_v19  ;;  %v773_v19 = vld [vmem:[%s1230_s8 + $0x10] sm:$0xff] }
 0x212   : > { %v656_v20 = vpop.permute.xlu0 %655 }
 0x213   : > { %676 = vmatpush.msra.mxu2 %v656_v20  ;;  %v772_v20 = vld [vmem:[%s1230_s8 + $0x8] sm:$0xff] }
 0x225   : > { %575 = vrot.lane.b32.xlu1 %v511_v7, %s1007_s21  ;;  %v1008_v7 = vmov 32.0  }
 0x27f   : > { %v559_v21 = vpop.xlane.xlu1 %558 }
 0x280   : > { %983 = vrcp.f32 %v559_v21  ;;  %v571_v27 = vand.u32 2147483648, %v559_v21  ;;  %vm565_vm4 = vweird.f32 %v559_v21  ;;  %v569_v28 = vand.u32 2147483647, %v559_v21 }
 0x282   : > { %v572_v30 = vor.u32 1.1754944e-38, %v571_v27  ;;  %vm570_vm6 = vcmp.eq.f32.partialorder %v569_v28, 8.507059e+37  ;;  %v807_v27 = vld [vmem:[%s1232_s10 + $0x20] sm:$0xff] }
 0x286   : > { %v984_v22 = vpop.eup %983 }
 0x287   : > { %v561_v23 = vmul.f32 %v984_v22, %v559_v21  ;;  %vm566_vm3 = vweird.f32 %v984_v22  ;;  %v771_v21 = vld [vmem:[%s1230_s8] sm:$0xff] }
 0x288   : > { %vm567_vm5 = vmor %vm565_vm4, %vm566_vm3 }
 0x289   : > { %v562_v24 = vsub.f32 1.0, %v561_v23  ;;  %v809_v23 = vld [vmem:[%s1232_s10 + $0x30] sm:$0xff] }
 0x28b   : > { %v563_v25 = vmul.f32 %v984_v22, %v562_v24  ;;  %v808_v24 = vld [vmem:[%s1232_s10 + $0x28] sm:$0xff] }
 0x28d   : > { %v564_v26 = vadd.f32 %v984_v22, %v563_v25 }
 0x28f   : > { %v568_v29 = vsel %vm567_vm5, %v984_v22, %v564_v26  ;;  %v810_v22 = vld [vmem:[%s1232_s10 + $0x38] sm:$0xff] }
 0x290   : > { %v573_v31 = vsel %vm570_vm6, %v572_v30, %v568_v29  ;;  %827 = vmatpush.msrb.mxu2 %v810_v22  ;;  %v806_v29 = vld [vmem:[%s1232_s10 + $0x18] sm:$0xff] }
 0x291   : > { %v574_v34 = vmul.f32 %v982_v18, %v573_v31  ;;  %v774_v18 = vld [vmem:[%s1230_s8 + $0x18] sm:$0xff] }
 0x292   : > { %794 = vmatpush.msrb.mxu0 %v774_v18  ;;  %828 = vmatpush.msrb.mxu2 %v809_v23 }
 0x294   : > { %795 = vmatpush.msrb.mxu0 %v773_v19  ;;  %829 = vmatpush.msrb.mxu2 %v808_v24 }
 0x296   : > { %796 = vmatpush.msrb.mxu0 %v772_v20  ;;  %830 = vmatpush.msrb.mxu2 %v807_v27 }
 0x297   : > { %v576_v33 = vpop.permute.xlu1 %575 }
 0x298   : > { %596 = vmatpush.msra.mxu3 %v576_v33  ;;  %797 = vmatpush.msrb.mxu0 %v771_v21 }
 0x299   : > { %949 = vmatmul.msk.f32.vlgmr.msra.gmra.mxu3 %vm550_vm2, %v574_v34  ;;  %831 = vmatpush.msrb.mxu2 %v806_v29 }
 0x29a   : > { %950 = vmatpush.xpose.msk.msrb.mxu3 %vm522_vm1, %v604_v32 }
 0x29e   : > { %721 = vmatpush.msra.mxu3 %v515_v35 }
 0x2a0   : > { %722 = vmatpush.msra.mxu3 %v514_v37 }
 0x2a1   : > { %951 = vmatmul.msk.f32.vlgmr.msrb.gmra.mxu3 %vm522_vm1, %v602_v36  ;;  %v975_v36 = vld [vmem:[%s1228_s6] ss:$0 sm:$0xff] }
 0x31c   : > { %v598_v38 = vpop.f32.mrf.mxu3 }
 0x31d   : > { %954 = vmatmul.msk.f32.vlgmr.msra.gmra.mxu3 %vm522_vm1, %v598_v38 }
 0x324   : > { %v626_v39 = vpop.f32.mrf.mxu3 }
 0x325   : > { %v629_v40 = vmul.f32 0.25, %v626_v39  ;;  %v976_v39 = vld [vmem:[%s1229_s7] ss:$0 sm:$0xff] }
 0x327   : > { %v630_v41 = vadd.f32 %v629_v40, %v548_v10 }
 0x329   : > { %v631_v42 = vsel %vm550_vm2, %v630_v41, -inf }
 0x32a   : > { %632 = vmax.xlane.f32.xlu2 %v631_v42  ;;  %v805_v42 = vld [vmem:[%s1232_s10 + $0x10] sm:$0xff] }
 0x32b   : > { %832 = vmatpush.msrb.mxu2 %v805_v42 }
 0x39d   : > { %v633_v43 = vpop.xlane.xlu2 %632 }
 0x39e   : > { %v634_v44 = vsub.f32 %v630_v41, %v633_v43  ;;  %v804_v43 = vld [vmem:[%s1232_s10 + $0x8] sm:$0xff] }
 0x39f   : > { %833 = vmatpush.msrb.mxu2 %v804_v43 }
 0x3a0   : > { %v635_v45 = vmul.f32 1.442695, %v634_v44  ;;  %v724_v0 = vpop.f32.mrf.mxu3  ;;  %v803_v44 = vld [vmem:[%s1232_s10] sm:$0xff] }
 0x3a1   : > { %834 = vmatpush.msrb.mxu2 %v803_v44 }
 0x3a2   : > { %985 = vpow2.f32 %v635_v45  ;;  %v977_v45 = vld [vmem:[%s1231_s9] ss:$0 sm:$0xff] }
 0x3a8   : > { %v986_v46 = vpop.eup %985 }
 0x3a9   : > { %v637_v47 = vsel %vm550_vm2, %v986_v46, 0.0 }
 0x3aa   : > { %638 = vadd.xlane.f32.xlu1 %v637_v47 }
 0x41d   : > { %v639_v50 = vpop.xlane.xlu1 %638 }
 0x41e   : > { %987 = vrcp.f32 %v639_v50  ;;  %v651_v54 = vand.u32 2147483648, %v639_v50  ;;  %v649_v56 = vand.u32 2147483647, %v639_v50  ;;  %vm645_vm8 = vweird.f32 %v639_v50 }
 0x41f   : > { %989 = vrcp.f32 %v1008_v7  ;;  %v980_v7 = vld [vmem:[%s1235_s13] ss:$0 sm:$0xff] }
 0x420   : > { %v652_v58 = vor.u32 1.1754944e-38, %v651_v54  ;;  %vm650_vm10 = vcmp.eq.f32.partialorder %v649_v56, 8.507059e+37 }
 0x424   : > { %v988_v51 = vpop.eup %987 }
 0x425   : > { %v641_v52 = vmul.f32 %v988_v51, %v639_v50  ;;  %vm646_vm7 = vweird.f32 %v988_v51  ;;  %v990_v8 = vpop.eup %989 }
 0x426   : > { %vm647_vm9 = vmor %vm645_vm8, %vm646_vm7  ;;  %v738_v9 = vmul.f32 32.0, %v990_v8  ;;  %vm742_vm11 = vweird.f32 %v990_v8 }
 0x427   : > { %v642_v53 = vsub.f32 1.0, %v641_v52 }
 0x428   : > { %v739_v10 = vsub.f32 1.0, %v738_v9 }
 0x429   : > { %v643_v55 = vmul.f32 %v988_v51, %v642_v53 }
 0x42a   : > { %v740_v11 = vmul.f32 %v990_v8, %v739_v10 }
 0x42b   : > { %v644_v57 = vadd.f32 %v988_v51, %v643_v55 }
 0x42c   : > { %v741_v12 = vadd.f32 %v990_v8, %v740_v11 }
 0x42d   : > { %v648_v59 = vsel %vm647_vm9, %v988_v51, %v644_v57 }
 0x42e   : > { %v653_v60 = vsel %vm650_vm10, %v652_v58, %v648_v59  ;;  %v1150_v13 = vsel %vm742_vm11, %v990_v8, %v741_v12 }
 0x42f   : > { %v654_v61 = vmul.f32 %v986_v46, %v653_v60 }
 0x431   : > { %952 = vmatmul.msk.f32.vlgmr.msra.gmra.mxu2 %vm550_vm2, %v654_v61 }
 0x4b4   : > { %v678_v62 = vpop.f32.mrf.mxu2 }
 0x4b5   : > { %953 = vmatmul.msk.f32.vlgmr.msrb.gmra.mxu1 %vm522_vm1, %v678_v62 }
 0x532   : > { %v701_v1 = vpop.f32.mrf.mxu1 }
 0x533   : > { %v725_v2 = vadd.f32 %v724_v0, %v701_v1 }
 0x535   : > { %v730_v3 = vadd.f32 %v974_v63, %v725_v2 }
 0x537   : > { %v731_v5 = vadd.f32 %v730_v3, %v1110_v4 }
 0x539   : > { %v734_v6 = vsel %vm489_vm0, %v731_v5, 0.0 }
 0x53a   : > { %735 = vadd.xlane.f32.xlu2 %v734_v6 }
 0x5ad   : > { %v736_v14 = vpop.xlane.xlu2 %735 }
 0x5ae   : > { %v744_v15 = vmul.f32 %v1150_v13, %v736_v14 }
 0x5b0   : > { %v745_v16 = vsub.f32 %v731_v5, %v744_v15  ;;  %v979_v5 = vld [vmem:[%s1234_s12] ss:$0 sm:$0xff] }
 0x5b2   : > { %v746_v17 = vmul.f32 %v745_v16, %v745_v16 }
 0x5b4   : > { %v747_v4 = vsel %vm489_vm0, %v746_v17, 0.0 }
 0x5b5   : > { %748 = vadd.xlane.f32.xlu2 %v747_v4 }
 0x628   : > { %v749_v25 = vpop.xlane.xlu2 %748 }
 0x629   : > { %v750_v26 = vmul.f32 %v749_v25, %v1150_v13 }
 0x62b   : > { %v751_v28 = vadd.f32 1e-06, %v750_v26 }
 0x62d   : > { %991 = vrsqrt.f32 %v751_v28  ;;  %vm758_vm13 = vweird.f32 %v751_v28 }
 0x633   : > { %v992_v30 = vpop.eup %991 }
 0x634   : > { %v753_v31 = vmul.f32 %v992_v30, %v751_v28  ;;  %vm759_vm12 = vweird.f32 %v992_v30 }
 0x635   : > { %vm760_vm14 = vmor %vm758_vm13, %vm759_vm12 }
 0x636   : > { %v754_v32 = vmul.f32 %v992_v30, %v753_v31 }
 0x638   : > { %v755_v33 = vmul.f32 0.5, %v754_v32 }
 0x63a   : > { %v756_v34 = vsub.f32 1.5, %v755_v33 }
 0x63c   : > { %v757_v35 = vmul.f32 %v992_v30, %v756_v34 }
 0x63e   : > { %v761_v37 = vsel %vm760_vm14, %v992_v30, %v757_v35 }
 0x63f   : > { %v762_v38 = vmul.f32 %v761_v37, %v745_v16 }
 0x641   : > { %v766_v40 = vmul.f32 %v975_v36, %v762_v38 }
 0x643   : > { %v770_v41 = vadd.f32 %v976_v39, %v766_v40 }
 0x645   : > { %955 = vmatmul.msk.f32.vlgmr.msrb.gmra.mxu0 %vm489_vm0, %v770_v41 }
 0x6c2   : > { %v799_v46 = vpop.f32.mrf.mxu0 }
 0x6c3   : > { %v800_v47 = vadd.f32 %v977_v45, %v799_v46 }
 0x6c5   : > { %v802_v48 = vmax.f32 %v800_v47, 0.0 }
 0x6c7   : > { %956 = vmatmul.msk.f32.vlgmr.msrb.gmra.mxu2 %vm815_vm15, %v802_v48 }
 0x74a   : > { %v836_v50 = vpop.f32.mrf.mxu2 }
 0x74b   : > { %v837_v51 = vadd.f32 %v978_v49, %v836_v50 }
 0x74d   : > { %v839_v52 = vadd.f32 %v837_v51, %v770_v41 }
 0x74f   : > { %v842_v53 = vsel %vm489_vm0, %v839_v52, 0.0 }
 0x750   : > { %843 = vadd.xlane.f32.xlu0 %v842_v53 }
 0x7c3   : > { %v844_v54 = vpop.xlane.xlu0 %843 }
 0x7c4   : > { %v845_v55 = vmul.f32 %v844_v54, %v1150_v13 }
 0x7c6   : > { %v846_v56 = vsub.f32 %v839_v52, %v845_v55 }
 0x7c8   : > { %v847_v57 = vmul.f32 %v846_v56, %v846_v56 }
 0x7ca   : > { %v848_v58 = vsel %vm489_vm0, %v847_v57, 0.0 }
 0x7cb   : > { %849 = vadd.xlane.f32.xlu2 %v848_v58 }
 0x83e   : > { %v850_v59 = vpop.xlane.xlu2 %849 }
 0x83f   : > { %v851_v60 = vmul.f32 %v850_v59, %v1150_v13 }
 0x841   : > { %v852_v61 = vadd.f32 1e-06, %v851_v60 }
 0x843   : > { %993 = vrsqrt.f32 %v852_v61  ;;  %vm859_vm2 = vweird.f32 %v852_v61 }
 0x849   : > { %v994_v62 = vpop.eup %993 }
 0x84a   : > { %v854_v63 = vmul.f32 %v994_v62, %v852_v61  ;;  %vm860_vm1 = vweird.f32 %v994_v62 }
 0x84b   : > { %vm861_vm3 = vmor %vm859_vm2, %vm860_vm1 }
 0x84c   : > { %v855_v0 = vmul.f32 %v994_v62, %v854_v63 }
 0x84e   : > { %v856_v1 = vmul.f32 0.5, %v855_v0 }
 0x850   : > { %v857_v2 = vsub.f32 1.5, %v856_v1 }
 0x852   : > { %v858_v3 = vmul.f32 %v994_v62, %v857_v2 }
 0x854   : > { %v862_v6 = vsel %vm861_vm3, %v994_v62, %v858_v3 }
 0x855   : > { %v863_v8 = vmul.f32 %v862_v6, %v846_v56 }
 0x857   : > { %v867_v9 = vmul.f32 %v979_v5, %v863_v8 }
 0x859   : > { %v871_v10 = vadd.f32 %v980_v7, %v867_v9 }
 0x85b   : > { %872 = vst.msk [vmem:[%s479_s30] sm:$0xff] %vm489_vm0, %v871_v10 }
 0x85c PF: > { %s24_s29 = sadd.s32 1, %s1001_s29  }
 0x85d   : > { %p21_p4 = scmp.ge.s32.totalorder %s24_s29, 4  }
 0x85f   :  { %23 = sbr.rel (!%p21_p4) target bundleno = 1 (0x1), region = 109 }

// kernel: transformer_forward.7
= control target key start
LH: loop header
LB: loop body
LE: loop exit
PB: predicated region body
PF: predicated region fallthrough
CT: control target
= control target key end

     0   :  { %s2480_s0 = inlined_call_operand.vmem [shape: f32[2,8,32], index: 0, kind: input, shape index: {}]   ;;  %s2481_s1 = inlined_call_operand.vmem [shape: f32[2,8,32], index: 1, kind: input, shape index: {}]   ;;  %s2482_s2 = inlined_call_operand.vmem [shape: f32[2,8,8], index: 2, kind: input, shape index: {}]   ;;  %s2483_s3 = inlined_call_operand.vmem [shape: f32[2,8,8], index: 3, kind: input, shape index: {}]   ;;  %s2484_s4 = inlined_call_operand.vmem [shape: f32[32,96], index: 4, kind: input, shape index: {}]   ;;  %s2485_s5 = inlined_call_operand.vmem [shape: f32[1,96], index: 5, kind: input, shape index: {}]   ;;  %s2486_s6 = inlined_call_operand.vmem [shape: f32[32,32], index: 6, kind: input, shape index: {}]   ;;  %s2487_s7 = inlined_call_operand.vmem [shape: f32[1,32], index: 7, kind: input, shape index: {}]   ;;  %s2488_s8 = inlined_call_operand.vmem [shape: f32[1,32], index: 8, kind: input, shape index: {}]   ;;  %s2489_s9 = inlined_call_operand.vmem [shape: f32[1,32], index: 9, kind: input, shape index: {}]   ;;  %s2490_s10 = inlined_call_operand.vmem [shape: f32[32,32], index: 10, kind: input, shape index: {}]   ;;  %s2491_s11 = inlined_call_operand.vmem [shape: f32[1,32], index: 11, kind: input, shape index: {}]   ;;  %s2492_s12 = inlined_call_operand.vmem [shape: f32[32,64], index: 12, kind: input, shape index: {}]   ;;  %s2493_s13 = inlined_call_operand.vmem [shape: f32[1,64], index: 13, kind: input, shape index: {}]   ;;  %s2494_s14 = inlined_call_operand.vmem [shape: f32[32,32], index: 14, kind: input, shape index: {}]   ;;  %s2495_s15 = inlined_call_operand.vmem [shape: f32[1,32], index: 15, kind: input, shape index: {}]   ;;  %s2496_s16 = inlined_call_operand.vmem [shape: f32[1,32], index: 16, kind: input, shape index: {}]   ;;  %s2497_s17 = inlined_call_operand.vmem [shape: f32[1,32], index: 17, kind: input, shape index: {}]   ;;  %s2498_s18 = inlined_call_operand.vmem [shape: f32[32,64], index: 18, kind: input, shape index: {}]   ;;  %s2499_s19 = inlined_call_operand.vmem [shape: f32[1,64], index: 19, kind: input, shape index: {}]   ;;  %s2500_s20 = inlined_call_operand.vmem [shape: f32[64,32], index: 20, kind: input, shape index: {}]   ;;  %s2501_s21 = inlined_call_operand.vmem [shape: f32[1,32], index: 21, kind: input, shape index: {}]   ;;  %s2502_s22 = inlined_call_operand.vmem [shape: f32[1,32], index: 22, kind: input, shape index: {}]   ;;  %s2503_s23 = inlined_call_operand.vmem [shape: f32[1,32], index: 23, kind: input, shape index: {}]   ;;  %s2504_s24 = inlined_call_operand.vmem [shape: f32[2,8,32], index: 24, kind: output, shape index: {0}]   ;;  %s2505_s25 = inlined_call_operand.hbm [shape: f32[2,2,8,8], index: 25, kind: output, shape index: {1}]   ;;  %s2506_s26 = inlined_call_operand.hbm [shape: f32[2,2,8,8], index: 26, kind: output, shape index: {2}]  }
   0x1   :  { %2525 = sst [smem:[#allocation15_spill]] %s2480_s0 }
   0x2   :  { %2526 = sst [smem:[#allocation16_spill]] %s2481_s1 }
   0x3   :  { %2527 = sst [smem:[#allocation17_spill]] %s2482_s2 }
   0x4   :  { %2528 = sst [smem:[#allocation18_spill]] %s2483_s3 }
   0x5   :  { %2529 = sst [smem:[#allocation19_spill]] %s2484_s4 }
   0x6   :  { %2530 = sst [smem:[#allocation20_spill]] %s2485_s5 }
   0x7   :  { %2531 = sst [smem:[#allocation21_spill]] %s2486_s6 }
   0x8   :  { %2532 = sst [smem:[#allocation22_spill]] %s2487_s7 }
   0x9   :  { %2533 = sst [smem:[#allocation23_spill]] %s2488_s8 }
   0xa   :  { %2534 = sst [smem:[#allocation24_spill]] %s2489_s9 }
   0xb   :  { %2535 = sst [smem:[#allocation25_spill]] %s2490_s10 }
   0xc   :  { %2536 = sst [smem:[#allocation26_spill]] %s2491_s11 }
   0xd   :  { %2537 = sst [smem:[#allocation27_spill]] %s2492_s12 }
   0xe   :  { %2538 = sst [smem:[#allocation28_spill]] %s2493_s13 }
   0xf   :  { %2539 = sst [smem:[#allocation29_spill]] %s2503_s23 }
  0x10   :  { %2540 = sst [smem:[#allocation30_spill]] %s2504_s24 }
  0x11   :  { %32 = vsyncpa [#allocation3], 0 }
  0x12   :  { %34 = vsyncpa [#allocation3 + $0x1], 0 }
  0x13   :  { %35 = vsyncpa [#allocation5], 0 }
  0x14   :  { %37 = vsyncpa [#allocation5 + $0x1], 0  ;;  %s2141_s27 = smov 0   ;;  %s2143_s3 = smov 0  }
  0x15   :  { %s2145_s7 = smov 0   ;;  %s2147_s28 = smov 0  }
  0x16 LB: > { %2541 = sst [smem:[#allocation8_spill]] %s1984_s27  ;;  %s2162_s8 = sadd.s32 4294967295, %s1996_s28   ;;  %s1996_s28 = sphi %s2147_s28, %s2574_s28   ;;  %s1992_s7 = sphi %s2145_s7, %s2577_s7   ;;  %s1988_s3 = sphi %s2143_s3, %s2576_s3   ;;  %s1984_s27 = sphi %s2141_s27, %s2575_s27  }
  0x17   : > { %2542 = sst [smem:[#allocation9_spill]] %s1988_s3  ;;  %s1769_s4 = sadd.s32 4294967294, %s1996_s28  }
  0x18   : > { %2543 = sst [smem:[#allocation10_spill]] %s1992_s7  ;;  %s2166_s29 = sadd.s32 1, %s1996_s28  }
  0x19   : > { %2544 = sst [smem:[#allocation11_spill]] %s1996_s28  ;;  %s600_s0 = sadd.s32 1, %s1992_s7 }
  0x1a   : > { %2545 = sst [smem:[#allocation12_spill]] %s2166_s29  ;;  %s597_s9 = ssub.s32 %s1996_s28, %s2166_s29 }
  0x1b   : > { %p610_p0 = scmp.ne.s32.totalorder %s1992_s7, %s1988_s3  ;;  %p598_p1 = scmp.eq.s32.totalorder %s597_s9, 0 }
  0x1c   : > { %p611_p2 = scmp.eq.s32.totalorder %s2162_s8, 1  ;;  %p616_p3 = scmp.ne.s32.totalorder %s1988_s3, %s1984_s27 }
  0x1d   : > { %p617_p4 = scmp.eq.s32.totalorder %s1769_s4, 1  ;;  %p1772_p7 = scmp.ge.s32.totalorder %s1996_s28, 1 }
  0x1e   : > { %s2177_s30 = scalar_select %p598_p1, %s1992_s7, %s600_s0  }
  0x1f   : > { %p2179_p5 = por %p611_p2, %p610_p0  ;;  %p2183_p6 = por %p617_p4, %p616_p3 }
  0x20   : > { %2546 = sst [smem:[#allocation13_spill]] %s2177_s30  ;;  %p749_p8 = scmp.lt.s32.totalorder %s1996_s28, 3 }
  0x21   : > { %s2548_s5 = scalar_select %p2183_p6, 1, 0 }
  0x22   : > { %p750_p9 = pnand %p1772_p7, %p749_p8 }
  0x23   : > { %2549 = sst [smem:[#allocation14_spill]] %s2548_s5  ;;  %p839_p10 = scmp.lt.s32.totalorder (!%p750_p9), %s2162_s8, 1 }
  0x24   : > { %753 = sbr.rel (%p750_p9) target bundleno = 3322 (0xcfa), region = 116  ;;  %s2550_s1 = sld [smem:[#allocation19_spill]] (!%p750_p9) }
  0x25   : > { %s2551_s0 = sld [smem:[#allocation15_spill]] (!%p750_p9)  ;;  %s2518_s29 = smov (!%p750_p9), 96  }
  0x26   : > { %s2552_s28 = sld [smem:[#allocation20_spill]] (!%p750_p9)  ;;  %s2519_s5 = smov (!%p750_p9), 112  }
  0x27   : > { %s2002_s30 = smov (!%p750_p9), 64   ;;  %s2228_s9 = sand.u32 (!%p750_p9), 1, %s1988_s3  }
  0x28   : > { %s2556_s12 = sld [smem:[#allocation27_spill]] (!%p750_p9)  ;;  %s2561_s23 = smov (!%p750_p9), 112  }
  0x29   : > { %s840_s7 = scalar_select %p839_p10, %s2162_s8, 1  ;;  %vm869_vm0 = vcmask 261120   ;;  %vm902_vm1 = vcmask 130048   ;;  %vm930_vm2 = vcmask 64512  }
  0x2a   : > { %v864_v0 = vld [vmem:[%s2550_s1 + $0x18] sm:$0xff]  ;;  %v863_v1 = vld [vmem:[%s2550_s1 + $0x10] sm:$0xff]  ;;  %v862_v2 = vld [vmem:[%s2550_s1 + $0x8] sm:$0xff]  ;;  %s2560_s13 = sld [smem:[#allocation28_spill]] }
  0x2b   : > { %885 = vmatpush.msra.mxu0 %v864_v0  ;;  %v861_v3 = vld [vmem:[%s2550_s1] sm:$0xff]  ;;  %s2203_s10 = sshll.u32 %s840_s7, 3  ;;  %s2517_s7 = smov 80  }
  0x2c   : > { %s842_s27 = scalar_lea.vmem %s2551_s0, %s2203_s10  ;;  %v1865_v5 = vld [vmem:[%s2552_s28] ss:$0 sm:$0xff]  ;;  %s2553_s28 = sld [smem:[#allocation17_spill]] }
  0x2d   : > { %886 = vmatpush.msra.mxu0 %v863_v1  ;;  %v2209_v4 = vld [vmem:[%s842_s27] sm:$0xff]  ;;  %s2001_s0 = smov 48   ;;  %s2516_s27 = sshll.u32 %s2228_s9, 4 }
  0x2e   : > { %s2233_s6 = scalar_lea.vmem [#allocation2], %s2516_s27  ;;  %s2557_s1 = sld [smem:[#allocation16_spill]] }
  0x2f   : > { %887 = vmatpush.msra.mxu0 %v862_v2  ;;  %s2564_s11 = sld [smem:[#allocation26_spill]]  ;;  %s2565_s27 = smov 96  }
  0x31   : > { %888 = vmatpush.msra.mxu0 %v861_v3 }
  0x32   : > { %1780 = vmatmul.msk.f32.vlgmr.msra.gmra.mxu0 %vm869_vm0, %v2209_v4  ;;  %s850_s4 = scalar_lea.vmem %s2553_s28, %s2203_s10 }
  0x33   : > { %v893_v9 = vld [vmem:[%s850_s4] sm:$0xff]  ;;  %s2563_s4 = sld [smem:[#allocation24_spill]] }
  0x34   : > { %v928_v10 = vmul.f32 -1e+09, %v893_v9  ;;  %v1187_v9 = vld [vmem:[%s2556_s12 + $0x10] sm:$0xff]  ;;  %s846_s3 = scalar_lea.vmem %s2557_s1, %s2203_s10 }
  0xaf   : > { %v890_v6 = vpop.f32.mrf.mxu0 }
  0xb0   : > { %v891_v7 = vadd.f32 %v1865_v5, %v890_v6 }
  0xb2   : > { %984 = vrot.lane.b32.xlu2 %v891_v7, %s2517_s7  ;;  %900 = vrot.lane.b32.xlu0 %v891_v7, %s2518_s29  ;;  %s2555_s7 = sld [smem:[#allocation22_spill]] }
  0xb3   : > { %s2562_s29 = sld [smem:[#allocation23_spill]] }
  0xb8   : > { %v1866_v63 = vld [vmem:[%s2555_s7] ss:$0 sm:$0xff]  ;;  %s1811_s7 = sshll.u32 %s2162_s8, 4 }
  0xb9   : > { %s1593_s24 = scalar_lea.hbm %s2505_s25, %s1811_s7 }
  0xba   : > { %982 = vrot.lane.b32.xlu2 %v891_v7, %s2519_s5  ;;  %s2568_s5 = sshll.u32 %s2228_s9, 4 }
 0x10c   : > { %v985_v33 = vpop.permute.xlu2 %984 }
 0x114   : > { %v983_v36 = vpop.permute.xlu2 %982 }
 0x124   : > { %v901_v8 = vpop.permute.xlu0 %900 }
 0x125   : > { %1781 = vmatpush.xpose.msk.msra.mxu1 %vm902_vm1, %v901_v8  ;;  %v1188_v8 = vld [vmem:[%s2556_s12 + $0x18] sm:$0xff] }
 0x128   : > { %1782 = vmatmul.msk.f32.vlgmr.msra.gmra.mxu1 %vm902_vm1, %v891_v7 }
 0x1a5   : > { %v924_v11 = vpop.f32.mrf.mxu1 }
 0x1a6   : > { %v927_v12 = vmul.f32 0.25, %v924_v11  ;;  %v1185_v11 = vld [vmem:[%s2556_s12] sm:$0xff] }
 0x1a8   : > { %v929_v13 = vadd.f32 %v928_v10, %v927_v12  ;;  %v860_v12 = vld [vmem:[%s846_s3] sm:$0xff]  ;;  %s2558_s3 = sld [smem:[#allocation25_spill]] }
 0x1aa   : > { %v931_v14 = vsel %vm930_vm2, %v929_v13, -inf }
 0x1ab   : > { %932 = vmax.xlane.f32.xlu0 %v931_v14 }
 0x1ae   : > { %s2559_s1 = smov %s2558_s3 }
 0x1bf   : > { %1038 = vrot.lane.b32.xlu0 %v891_v7, %s2001_s0  ;;  %s2554_s0 = sld [smem:[#allocation21_spill]] }
 0x1c5   : > { %v895_v35 = vld [vmem:[%s2554_s0 + $0x8] sm:$0xff]  ;;  %v894_v37 = vld [vmem:[%s2554_s0] sm:$0xff]  ;;  %v897_v48 = vld [vmem:[%s2554_s0 + $0x18] sm:$0xff] }
 0x1c6   : > { %1081 = vmatpush.msrb.mxu1 %v897_v48  ;;  %v896_v61 = vld [vmem:[%s2554_s0 + $0x10] sm:$0xff]  ;;  %s2339_s0 = scalar_lea.vmem [#allocation4], %s2568_s5  ;;  %s1594_s5 = sshll.u32 %s2233_s6, 4  ;;  %s1595_s5 = int_to_ptr.vmem [resolvable:$true] %s1594_s5 }
 0x1c8   : > { %1082 = vmatpush.msrb.mxu1 %v896_v61 }
 0x21e   : > { %v933_v15 = vpop.xlane.xlu0 %932 }
 0x21f   : > { %v934_v16 = vsub.f32 %v929_v13, %v933_v15 }
 0x221   : > { %v935_v17 = vmul.f32 1.442695, %v934_v16 }
 0x223   : > { %1878 = vpow2.f32 %v935_v17 }
 0x229   : > { %v1879_v18 = vpop.eup %1878 }
 0x22a   : > { %v937_v19 = vsel %vm930_vm2, %v1879_v18, 0.0 }
 0x22b   : > { %938 = vadd.xlane.f32.xlu1 %v937_v19 }
 0x231   : > { %v1039_v20 = vpop.permute.xlu0 %1038 }
 0x232   : > { %1059 = vmatpush.msra.mxu2 %v1039_v20 }
 0x234   : > { %1208 = vmatpush.msrb.mxu2 %v1188_v8 }
 0x236   : > { %1209 = vmatpush.msrb.mxu2 %v1187_v9 }
 0x244   : > { %956 = vrot.lane.b32.xlu1 %v891_v7, %s2002_s30  ;;  %v2003_v7 = vmov 32.0   ;;  %s1574_s30 = scalar_lea.sflag [#allocation3], %s2228_s9 }
 0x29e   : > { %v939_v21 = vpop.xlane.xlu1 %938 }
 0x29f   : > { %1880 = vrcp.f32 %v939_v21  ;;  %v951_v25 = vand.u32 2147483648, %v939_v21  ;;  %v949_v27 = vand.u32 2147483647, %v939_v21  ;;  %vm945_vm4 = vweird.f32 %v939_v21 }
 0x2a1   : > { %v952_v29 = vor.u32 1.1754944e-38, %v951_v25  ;;  %vm950_vm6 = vcmp.eq.f32.partialorder %v949_v27, 8.507059e+37  ;;  %v1155_v25 = vld [vmem:[%s2559_s1 + $0x8] sm:$0xff]  ;;  %v1869_v27 = vld [vmem:[%s2560_s13] ss:$0 sm:$0xff] }
 0x2a5   : > { %v1881_v22 = vpop.eup %1880 }
 0x2a6   : > { %v941_v23 = vmul.f32 %v1881_v22, %v939_v21  ;;  %vm946_vm3 = vweird.f32 %v1881_v22 }
 0x2a7   : > { %vm947_vm5 = vmor %vm945_vm4, %vm946_vm3 }
 0x2a8   : > { %v942_v24 = vsub.f32 1.0, %v941_v23  ;;  %v1157_v23 = vld [vmem:[%s2558_s3 + $0x18] sm:$0xff]  ;;  %s2566_s3 = sld [smem:[#allocation18_spill]] }
 0x2a9   : > { %1177 = vmatpush.msrb.mxu0 %v1157_v23 }
 0x2aa   : > { %v943_v26 = vmul.f32 %v1881_v22, %v942_v24  ;;  %v1156_v24 = vld [vmem:[%s2559_s1 + $0x10] sm:$0xff] }
 0x2ab   : > { %1178 = vmatpush.msrb.mxu0 %v1156_v24 }
 0x2ac   : > { %v944_v28 = vadd.f32 %v1881_v22, %v943_v26  ;;  %v1154_v26 = vld [vmem:[%s2559_s1] sm:$0xff] }
 0x2ad   : > { %1179 = vmatpush.msrb.mxu0 %v1155_v25 }
 0x2ae   : > { %v948_v30 = vsel %vm947_vm5, %v1881_v22, %v944_v28 }
 0x2af   : > { %v953_v31 = vsel %vm950_vm6, %v952_v29, %v948_v30  ;;  %1180 = vmatpush.msrb.mxu0 %v1154_v26 }
 0x2b0   : > { %v954_v32 = vmul.f32 %v1879_v18, %v953_v31 }
 0x2b2   : > { %955 = vst.msk [vmem:[%s2233_s6] sm:$0xff] %vm930_vm2, %v954_v32 }
 0x2b6   : > { %v957_v34 = vpop.permute.xlu1 %956 }
 0x2b7   : > { %977 = vmatpush.msra.mxu3 %v957_v34 }
 0x2b8   : > { %1783 = vmatmul.msk.f32.vlgmr.msra.gmra.mxu3 %vm930_vm2, %v954_v32 }
 0x2b9   : > { %1784 = vmatpush.xpose.msk.msrb.mxu3 %vm902_vm1, %v985_v33 }
 0x2bd   : > { %1104 = vmatpush.msra.mxu3 %v895_v35 }
 0x2bf   : > { %1105 = vmatpush.msra.mxu3 %v894_v37 }
 0x2c0   : > { %1785 = vmatmul.msk.f32.vlgmr.msrb.gmra.mxu3 %vm902_vm1, %v983_v36 }
 0x33b   : > { %v979_v38 = vpop.f32.mrf.mxu3 }
 0x33c   : > { %1789 = vmatmul.msk.f32.vlgmr.msra.gmra.mxu3 %vm902_vm1, %v979_v38 }
 0x343   : > { %v1007_v39 = vpop.f32.mrf.mxu3 }
 0x344   : > { %v1010_v40 = vmul.f32 0.25, %v1007_v39  ;;  %v1867_v39 = vld [vmem:[%s2562_s29] ss:$0 sm:$0xff]  ;;  %s854_s29 = scalar_lea.vmem %s2566_s3, %s2203_s10 }
 0x346   : > { %v1011_v41 = vadd.f32 %v1010_v40, %v928_v10  ;;  %v1186_v10 = vld [vmem:[%s2556_s12 + $0x8] sm:$0xff] }
 0x347   : > { %1210 = vmatpush.msrb.mxu2 %v1186_v10 }
 0x348   : > { %v1012_v42 = vsel %vm930_vm2, %v1011_v41, -inf }
 0x349   : > { %1013 = vmax.xlane.f32.xlu2 %v1012_v42  ;;  %1211 = vmatpush.msrb.mxu2 %v1185_v11  ;;  %v1868_v42 = vld [vmem:[%s2563_s4] ss:$0 sm:$0xff]  ;;  %s1596_s4 = sshll.u32 %s1593_s24, 4  ;;  %s1597_s4 = int_to_ptr.hbm [resolvable:$true] %s1596_s4 }
 0x34a   : > { %s1916_s1 = sshra.s32 %s1597_s4, 4  ;;  %s1917_s1 = int_to_ptr.hbm [resolvable:$true] %s1916_s1 }
 0x34b   : > { %p1923_p0 = scmp.lt.s32.totalorder %s1917_s1, %s2505_s25 }
 0x3bc   : > { %v1014_v43 = vpop.xlane.xlu2 %1013 }
 0x3bd   : > { %v1015_v44 = vsub.f32 %v1011_v41, %v1014_v43 }
 0x3bf   : > { %v1016_v45 = vmul.f32 1.442695, %v1015_v44  ;;  %v1107_v0 = vpop.f32.mrf.mxu3 }
 0x3c1   : > { %1882 = vpow2.f32 %v1016_v45 }
 0x3c7   : > { %v1883_v46 = vpop.eup %1882 }
 0x3c8   : > { %v1018_v47 = vsel %vm930_vm2, %v1883_v46, 0.0 }
 0x3c9   : > { %1019 = vadd.xlane.f32.xlu1 %v1018_v47 }
 0x43c   : > { %v1020_v49 = vpop.xlane.xlu1 %1019 }
 0x43d   : > { %1884 = vrcp.f32 %v1020_v49  ;;  %v1032_v53 = vand.u32 2147483648, %v1020_v49  ;;  %v1030_v55 = vand.u32 2147483647, %v1020_v49  ;;  %vm1026_vm8 = vweird.f32 %v1020_v49 }
 0x43e   : > { %1886 = vrcp.f32 %v2003_v7 }
 0x43f   : > { %v1033_v57 = vor.u32 1.1754944e-38, %v1032_v53  ;;  %vm1031_vm10 = vcmp.eq.f32.partialorder %v1030_v55, 8.507059e+37 }
 0x443   : > { %v1885_v50 = vpop.eup %1884 }
 0x444   : > { %v1022_v51 = vmul.f32 %v1885_v50, %v1020_v49  ;;  %vm1027_vm7 = vweird.f32 %v1885_v50 }
 0x445   : > { %vm1028_vm9 = vmor %vm1026_vm8, %vm1027_vm7 }
 0x446   : > { %v1023_v52 = vsub.f32 1.0, %v1022_v51  ;;  %v1216_v51 = vld [vmem:[%s854_s29] sm:$0xff] }
 0x448   : > { %v1024_v54 = vmul.f32 %v1885_v50, %v1023_v52  ;;  %v1249_v52 = vmul.f32 -1e+09, %v1216_v51 }
 0x44a   : > { %v1025_v56 = vadd.f32 %v1885_v50, %v1024_v54 }
 0x44c   : > { %v1029_v58 = vsel %vm1028_vm9, %v1885_v50, %v1025_v56 }
 0x44d   : > { %v1034_v59 = vsel %vm1031_vm10, %v1033_v57, %v1029_v58 }
 0x44e   : > { %v1035_v60 = vmul.f32 %v1883_v46, %v1034_v59  ;;  %v1870_v46 = vld [vmem:[%s2564_s11] ss:$0 sm:$0xff]  ;;  %s1918_s11 = scalar_lea.hbm %s1917_s1, 16 }
 0x44f   : > { %p1919_p11 = scmp.ne.s32.totalorder %s1917_s1, %s1918_s11 }
 0x450   : > { %1786 = vst.msk [vmem:[%s2233_s6 + $0x8] sm:$0xff] %vm930_vm2, %v1035_v60  ;;  %1787 = vmatmul.msk.f32.vlgmr.msra.gmra.mxu2 %vm930_vm2, %v1035_v60 }
 0x451   : > { %p1920_p12 = pnand %p1919_p11, %p2179_p5 }
 0x453   : > { %p1921_p13 = pneg %p1920_p12 }
 0x458   : > { %1791 = vmatmul.msk.f32.vlgmr.msrb.gmra.mxu2 %vm869_vm0, %v860_v12 }
 0x4d3   : > { %v1061_v62 = vpop.f32.mrf.mxu2 }
 0x4d4   : > { %1788 = vmatmul.msk.f32.vlgmr.msrb.gmra.mxu1 %vm902_vm1, %v1061_v62 }
 0x4db   : > { %v1213_v28 = vpop.f32.mrf.mxu2 }
 0x4dc   : > { %v2300_v29 = vadd.f32 %v1869_v27, %v1213_v28 }
 0x4de   : > { %1304 = vrot.lane.b32.xlu0 %v2300_v29, %s2561_s23  ;;  %1792 = vmatpush.xpose.msk.msra.mxu1 %vm902_vm1, %v2300_v29 }
 0x550   : > { %v1305_v45 = vpop.permute.xlu0 %1304 }
 0x551   : > { %v1084_v1 = vpop.f32.mrf.mxu1  ;;  %1795 = vmatpush.xpose.msk.msra.mxu0 %vm902_vm1, %v1305_v45 }
 0x552   : > { %v1108_v2 = vadd.f32 %v1107_v0, %v1084_v1 }
 0x554   : > { %v1113_v3 = vadd.f32 %v1866_v63, %v1108_v2 }
 0x556   : > { %v1114_v5 = vadd.f32 %v1113_v3, %v2209_v4  ;;  %v1887_v4 = vpop.eup %1886 }
 0x557   : > { %v1121_v13 = vmul.f32 32.0, %v1887_v4  ;;  %vm1125_vm11 = vweird.f32 %v1887_v4 }
 0x558   : > { %v1117_v6 = vsel %vm869_vm0, %v1114_v5, 0.0 }
 0x559   : > { %1118 = vadd.xlane.f32.xlu2 %v1117_v6  ;;  %v1122_v14 = vsub.f32 1.0, %v1121_v13 }
 0x55b   : > { %v1123_v15 = vmul.f32 %v1887_v4, %v1122_v14 }
 0x55d   : > { %v1124_v16 = vadd.f32 %v1887_v4, %v1123_v15 }
 0x55f   : > { %v2281_v17 = vsel %vm1125_vm11, %v1887_v4, %v1124_v16  ;;  %vm1511_vm11 = vcmask 523264  }
 0x5cc   : > { %v1119_v18 = vpop.xlane.xlu2 %1118 }
 0x5cd   : > { %v1127_v19 = vmul.f32 %v2281_v17, %v1119_v18 }
 0x5cf   : > { %v1128_v20 = vsub.f32 %v1114_v5, %v1127_v19 }
 0x5d1   : > { %v1129_v21 = vmul.f32 %v1128_v20, %v1128_v20 }
 0x5d3   : > { %v1130_v22 = vsel %vm869_vm0, %v1129_v21, 0.0 }
 0x5d4   : > { %1131 = vadd.xlane.f32.xlu2 %v1130_v22 }
 0x647   : > { %v1132_v30 = vpop.xlane.xlu2 %1131 }
 0x648   : > { %v1133_v31 = vmul.f32 %v1132_v30, %v2281_v17 }
 0x64a   : > { %v1134_v32 = vadd.f32 1e-06, %v1133_v31 }
 0x64c   : > { %1888 = vrsqrt.f32 %v1134_v32  ;;  %vm1141_vm13 = vweird.f32 %v1134_v32 }
 0x652   : > { %v1889_v33 = vpop.eup %1888 }
 0x653   : > { %v1136_v34 = vmul.f32 %v1889_v33, %v1134_v32  ;;  %vm1142_vm12 = vweird.f32 %v1889_v33 }
 0x654   : > { %vm1143_vm14 = vmor %vm1141_vm13, %vm1142_vm12 }
 0x655   : > { %v1137_v35 = vmul.f32 %v1889_v33, %v1136_v34  ;;  %v1217_v34 = vld [vmem:[%s2494_s14] sm:$0xff] }
 0x657   : > { %v1138_v36 = vmul.f32 0.5, %v1137_v35  ;;  %v1220_v35 = vld [vmem:[%s2494_s14 + $0x18] sm:$0xff] }
 0x658   : > { %1401 = vmatpush.msrb.mxu1 %v1220_v35 }
 0x659   : > { %v1139_v37 = vsub.f32 1.5, %v1138_v36 }
 0x65b   : > { %v1140_v38 = vmul.f32 %v1889_v33, %v1139_v37  ;;  %v1219_v37 = vld [vmem:[%s2494_s14 + $0x10] sm:$0xff] }
 0x65c   : > { %1402 = vmatpush.msrb.mxu1 %v1219_v37 }
 0x65d   : > { %v1144_v40 = vsel %vm1143_vm14, %v1889_v33, %v1140_v38 }
 0x65e   : > { %v1145_v41 = vmul.f32 %v1144_v40, %v1128_v20  ;;  %v1218_v20 = vld [vmem:[%s2494_s14 + $0x8] sm:$0xff] }
 0x660   : > { %v1149_v43 = vmul.f32 %v1867_v39, %v1145_v41  ;;  %v1871_v39 = vld [vmem:[%s2495_s15] ss:$0 sm:$0xff] }
 0x662   : > { %v2313_v44 = vadd.f32 %v1868_v42, %v1149_v43 }
 0x664   : > { %1790 = vmatmul.msk.f32.vlgmr.msrb.gmra.mxu0 %vm869_vm0, %v2313_v44 }
 0x6e1   : > { %v1182_v47 = vpop.f32.mrf.mxu0 }
 0x6e2   : > { %v1183_v48 = vadd.f32 %v1870_v46, %v1182_v47 }
 0x6e4   : > { %1302 = vrot.lane.b32.xlu2 %v1183_v48, %s2561_s23  ;;  %1793 = vmatmul.msk.f32.vlgmr.msra.gmra.mxu1 %vm902_vm1, %v1183_v48  ;;  %s2567_s23 = smov 80  }
 0x6ec   : > { %1276 = vrot.lane.b32.xlu2 %v2300_v29, %s2565_s27  ;;  %s1922_s27 = scalar_lea.hbm %s2505_s25, 32 }
 0x6ed   : > { %p1924_p1 = scmp.lt.s32.totalorder %s1922_s27, %s1918_s11 }
 0x6ef   : > { %p1925_p2 = por %p1924_p1, %p1923_p0 }
 0x6f1   : > { %p1926_p3 = pnand %p1925_p2, %p1921_p13 }
 0x73e   : > { %v1303_v49 = vpop.permute.xlu2 %1302 }
 0x73f   : > { %1796 = vmatmul.msk.f32.vlgmr.msra.gmra.mxu0 %vm902_vm1, %v1303_v49 }
 0x746   : > { %v1277_v50 = vpop.permute.xlu2 %1276 }
 0x747   : > { %1297 = vmatpush.msrb.mxu3 %v1277_v50 }
 0x749   : > { %1424 = vmatpush.msra.mxu3 %v1218_v20 }
 0x74b   : > { %1425 = vmatpush.msra.mxu3 %v1217_v34 }
 0x761   : > { %v1245_v53 = vpop.f32.mrf.mxu1 }
 0x762   : > { %v1248_v54 = vmul.f32 0.25, %v1245_v53  ;;  %v1468_v53 = vld [vmem:[%s2498_s18 + $0x8] sm:$0xff] }
 0x764   : > { %v1250_v55 = vadd.f32 %v1249_v52, %v1248_v54  ;;  %v1467_v54 = vld [vmem:[%s2498_s18] sm:$0xff] }
 0x766   : > { %v1251_v56 = vsel %vm930_vm2, %v1250_v55, -inf }
 0x767   : > { %1252 = vmax.xlane.f32.xlu1 %v1251_v56  ;;  %v1505_v56 = vld [vmem:[%s2500_s20 + $0x30] sm:$0xff] }
 0x7bc   : > { %v1327_v57 = vpop.f32.mrf.mxu0 }
 0x7bd   : > { %v1330_v58 = vmul.f32 0.25, %v1327_v57  ;;  %v1504_v57 = vld [vmem:[%s2500_s20 + $0x28] sm:$0xff] }
 0x7bf   : > { %v1331_v59 = vadd.f32 %v1330_v58, %v1249_v52  ;;  %v1470_v52 = vld [vmem:[%s2498_s18 + $0x18] sm:$0xff] }
 0x7c0   : > { %1490 = vmatpush.msrb.mxu0 %v1470_v52 }
 0x7c1   : > { %v1332_v60 = vsel %vm930_vm2, %v1331_v59, -inf }
 0x7c2   : > { %1333 = vmax.xlane.f32.xlu0 %v1332_v60  ;;  %v1503_v60 = vld [vmem:[%s2500_s20 + $0x20] sm:$0xff] }
 0x7da   : > { %v1253_v61 = vpop.xlane.xlu1 %1252 }
 0x7db   : > { %v1254_v62 = vsub.f32 %v1250_v55, %v1253_v61  ;;  %v1506_v55 = vld [vmem:[%s2500_s20 + $0x38] sm:$0xff] }
 0x7dd   : > { %v1255_v63 = vmul.f32 1.442695, %v1254_v62  ;;  %v1502_v62 = vld [vmem:[%s2500_s20 + $0x18] sm:$0xff] }
 0x7df   : > { %1890 = vpow2.f32 %v1255_v63 }
 0x7e5   : > { %v1891_v0 = vpop.eup %1890 }
 0x7e6   : > { %v1257_v1 = vsel %vm930_vm2, %v1891_v0, 0.0 }
 0x7e7   : > { %1258 = vadd.xlane.f32.xlu1 %v1257_v1 }
 0x835   : > { %v1334_v2 = vpop.xlane.xlu0 %1333 }
 0x836   : > { %v1335_v3 = vsub.f32 %v1331_v59, %v1334_v2 }
 0x838   : > { %v1336_v5 = vmul.f32 1.442695, %v1335_v3 }
 0x83a   : > { %1892 = vpow2.f32 %v1336_v5 }
 0x840   : > { %v1893_v6 = vpop.eup %1892 }
 0x841   : > { %v1338_v7 = vsel %vm930_vm2, %v1893_v6, 0.0 }
 0x842   : > { %1339 = vadd.xlane.f32.xlu1 %v1338_v7 }
 0x85a   : > { %v1259_v8 = vpop.xlane.xlu1 %1258 }
 0x85b   : > { %1894 = vrcp.f32 %v1259_v8  ;;  %1358 = vrot.lane.b32.xlu1 %v2300_v29, %s2567_s23  ;;  %v1271_v11 = vand.u32 2147483648, %v1259_v8  ;;  %v1269_v13 = vand.u32 2147483647, %v1259_v8  ;;  %vm1265_vm3 = vweird.f32 %v1259_v8  ;;  %s1610_s23 = scalar_lea.hbm %s2506_s26, %s1811_s7 }
 0x85d   : > { %v1272_v15 = vor.u32 1.1754944e-38, %v1271_v11  ;;  %vm1270_vm5 = vcmp.eq.f32.partialorder %v1269_v13, 8.507059e+37  ;;  %v1501_v11 = vld [vmem:[%s2500_s20 + $0x10] sm:$0xff]  ;;  %v1499_v13 = vld [vmem:[%s2500_s20] sm:$0xff] }
 0x861   : > { %v1895_v9 = vpop.eup %1894 }
 0x862   : > { %v1261_v10 = vmul.f32 %v1895_v9, %v1259_v8  ;;  %vm1266_vm15 = vweird.f32 %v1895_v9 }
 0x863   : > { %vm1267_vm4 = vmor %vm1265_vm3, %vm1266_vm15 }
 0x864   : > { %v1262_v4 = vsub.f32 1.0, %v1261_v10 }
 0x866   : > { %v1263_v12 = vmul.f32 %v1895_v9, %v1262_v4 }
 0x868   : > { %v1264_v14 = vadd.f32 %v1895_v9, %v1263_v12  ;;  %v1500_v12 = vld [vmem:[%s2500_s20 + $0x8] sm:$0xff] }
 0x86a   : > { %v1268_v16 = vsel %vm1267_vm4, %v1895_v9, %v1264_v14  ;;  %v1873_v9 = vld [vmem:[%s2497_s17] ss:$0 sm:$0xff] }
 0x86b   : > { %v1273_v18 = vsel %vm1270_vm5, %v1272_v15, %v1268_v16  ;;  %v1874_v14 = vld [vmem:[%s2499_s19] ss:$0 sm:$0xff] }
 0x86c   : > { %v1274_v19 = vmul.f32 %v1891_v0, %v1273_v18 }
 0x86e   : > { %1794 = vmatmul.msk.f32.vlgmr.msrb.gmra.mxu3 %vm930_vm2, %v1274_v19  ;;  %1275 = vst.msk [vmem:[%s2339_s0] sm:$0xff] %vm930_vm2, %v1274_v19  ;;  %v1875_v19 = vld [vmem:[%s2501_s21] ss:$0 sm:$0xff] }
 0x8b5   : > { %v1340_v21 = vpop.xlane.xlu1 %1339 }
 0x8b6   : > { %1896 = vrcp.f32 %v1340_v21  ;;  %v1352_v25 = vand.u32 2147483648, %v1340_v21  ;;  %v1350_v27 = vand.u32 2147483647, %v1340_v21  ;;  %vm1346_vm7 = vweird.f32 %v1340_v21 }
 0x8b8   : > { %v1353_v29 = vor.u32 1.1754944e-38, %v1352_v25  ;;  %vm1351_vm9 = vcmp.eq.f32.partialorder %v1350_v27, 8.507059e+37 }
 0x8bc   : > { %v1897_v22 = vpop.eup %1896 }
 0x8bd   : > { %v1342_v23 = vmul.f32 %v1897_v22, %v1340_v21  ;;  %vm1347_vm6 = vweird.f32 %v1897_v22 }
 0x8be   : > { %vm1348_vm8 = vmor %vm1346_vm7, %vm1347_vm6 }
 0x8bf   : > { %v1343_v24 = vsub.f32 1.0, %v1342_v23 }
 0x8c1   : > { %v1344_v26 = vmul.f32 %v1897_v22, %v1343_v24 }
 0x8c3   : > { %v1345_v28 = vadd.f32 %v1897_v22, %v1344_v26 }
 0x8c5   : > { %v1349_v30 = vsel %vm1348_vm8, %v1897_v22, %v1345_v28 }
 0x8c6   : > { %v1354_v31 = vsel %vm1351_vm9, %v1353_v29, %v1349_v30 }
 0x8c7   : > { %v1355_v32 = vmul.f32 %v1893_v6, %v1354_v31  ;;  %v1872_v6 = vld [vmem:[%s2496_s16] ss:$0 sm:$0xff] }
 0x8c9   : > { %1797 = vst.msk [vmem:[%s2339_s0 + $0x8] sm:$0xff] %vm930_vm2, %v1355_v32 }
 0x8cd   : > { %v1359_v33 = vpop.permute.xlu1 %1358 }
 0x8ce   : > { %1379 = vmatpush.msra.mxu2 %v1359_v33 }
 0x8cf   : > { %1798 = vmatmul.msk.f32.vlgmr.msra.gmra.mxu2 %vm930_vm2, %v1355_v32 }
 0x8d0   : > { %1523 = vmatpush.msrb.mxu2 %v1506_v55 }
 0x8d2   : > { %1524 = vmatpush.msrb.mxu2 %v1505_v56 }
 0x8d4   : > { %1525 = vmatpush.msrb.mxu2 %v1504_v57 }
 0x8d6   : > { %1526 = vmatpush.msrb.mxu2 %v1503_v60 }
 0x8d8   : > { %1527 = vmatpush.msrb.mxu2 %v1502_v62 }
 0x8da   : > { %1528 = vmatpush.msrb.mxu2 %v1501_v11 }
 0x8dc   : > { %1529 = vmatpush.msrb.mxu2 %v1500_v12 }
 0x8de   : > { %1530 = vmatpush.msrb.mxu2 %v1499_v13 }
 0x8f1   : > { %v1299_v36 = vpop.f32.mrf.mxu3 }
 0x8f2   : > { %1800 = vmatmul.msk.f32.vlgmr.msra.gmra.mxu3 %vm902_vm1, %v1299_v36 }
 0x952   : > { %v1381_v38 = vpop.f32.mrf.mxu2 }
 0x953   : > { %1799 = vmatmul.msk.f32.vlgmr.msrb.gmra.mxu1 %vm902_vm1, %v1381_v38 }
 0x975   : > { %v1427_v40 = vpop.f32.mrf.mxu3 }
 0x9d0   : > { %v1404_v41 = vpop.f32.mrf.mxu1 }
 0x9d1   : > { %v1428_v42 = vadd.f32 %v1427_v40, %v1404_v41 }
 0x9d3   : > { %v1433_v43 = vadd.f32 %v1871_v39, %v1428_v42 }
 0x9d5   : > { %v1434_v45 = vadd.f32 %v1433_v43, %v2313_v44  ;;  %v1469_v44 = vld [vmem:[%s2498_s18 + $0x10] sm:$0xff] }
 0x9d6   : > { %1491 = vmatpush.msrb.mxu0 %v1469_v44 }
 0x9d7   : > { %v1437_v46 = vsel %vm869_vm0, %v1434_v45, 0.0 }
 0x9d8   : > { %1438 = vadd.xlane.f32.xlu2 %v1437_v46  ;;  %1492 = vmatpush.msrb.mxu0 %v1468_v53 }
 0x9da   : > { %1493 = vmatpush.msrb.mxu0 %v1467_v54 }
 0xa4b   : > { %v1439_v47 = vpop.xlane.xlu2 %1438 }
 0xa4c   : > { %v1440_v48 = vmul.f32 %v1439_v47, %v2281_v17 }
 0xa4e   : > { %v1441_v49 = vsub.f32 %v1434_v45, %v1440_v48 }
 0xa50   : > { %v1442_v50 = vmul.f32 %v1441_v49, %v1441_v49 }
 0xa52   : > { %v1443_v51 = vsel %vm869_vm0, %v1442_v50, 0.0 }
 0xa53   : > { %1444 = vadd.xlane.f32.xlu0 %v1443_v51 }
 0xac6   : > { %v1445_v58 = vpop.xlane.xlu0 %1444 }
 0xac7   : > { %v1446_v59 = vmul.f32 %v1445_v58, %v2281_v17 }
 0xac9   : > { %v1447_v61 = vadd.f32 1e-06, %v1446_v59 }
 0xacb   : > { %1898 = vrsqrt.f32 %v1447_v61  ;;  %vm1454_vm2 = vweird.f32 %v1447_v61 }
 0xad1   : > { %v1899_v63 = vpop.eup %1898 }
 0xad2   : > { %v1449_v0 = vmul.f32 %v1899_v63, %v1447_v61  ;;  %vm1455_vm1 = vweird.f32 %v1899_v63 }
 0xad3   : > { %vm1456_vm10 = vmor %vm1454_vm2, %vm1455_vm1 }
 0xad4   : > { %v1450_v1 = vmul.f32 %v1899_v63, %v1449_v0 }
 0xad6   : > { %v1451_v2 = vmul.f32 0.5, %v1450_v1 }
 0xad8   : > { %v1452_v3 = vsub.f32 1.5, %v1451_v2 }
 0xada   : > { %v1453_v5 = vmul.f32 %v1899_v63, %v1452_v3 }
 0xadc   : > { %v1457_v7 = vsel %vm1456_vm10, %v1899_v63, %v1453_v5 }
 0xadd   : > { %v1458_v8 = vmul.f32 %v1457_v7, %v1441_v49 }
 0xadf   : > { %v1462_v10 = vmul.f32 %v1872_v6, %v1458_v8 }
 0xae1   : > { %v1466_v4 = vadd.f32 %v1873_v9, %v1462_v10 }
 0xae3   : > { %1801 = vmatmul.msk.f32.vlgmr.msrb.gmra.mxu0 %vm869_vm0, %v1466_v4 }
 0xb60   : > { %v1495_v15 = vpop.f32.mrf.mxu0 }
 0xb61   : > { %v1496_v16 = vadd.f32 %v1874_v14, %v1495_v15 }
 0xb63   : > { %v1498_v18 = vmax.f32 %v1496_v16, 0.0 }
 0xb65   : > { %1802 = vmatmul.msk.f32.vlgmr.msrb.gmra.mxu2 %vm1511_vm11, %v1498_v18 }
 0xbe8   : > { %v1532_v20 = vpop.f32.mrf.mxu2 }
 0xbe9   : > { %v1533_v21 = vadd.f32 %v1875_v19, %v1532_v20 }
 0xbeb   : > { %v1535_v22 = vadd.f32 %v1533_v21, %v1466_v4 }
 0xbed   : > { %v1538_v23 = vsel %vm869_vm0, %v1535_v22, 0.0 }
 0xbee   : > { %1539 = vadd.xlane.f32.xlu1 %v1538_v23 }
 0xc61   : > { %v1540_v24 = vpop.xlane.xlu1 %1539 }
 0xc62   : > { %v1541_v25 = vmul.f32 %v1540_v24, %v2281_v17 }
 0xc64   : > { %v1542_v26 = vsub.f32 %v1535_v22, %v1541_v25 }
 0xc66   : > { %v1543_v27 = vmul.f32 %v1542_v26, %v1542_v26 }
 0xc68   : > { %v1544_v28 = vsel %vm869_vm0, %v1543_v27, 0.0 }
 0xc69   : > { %1545 = vadd.xlane.f32.xlu0 %v1544_v28 }
 0xc6a   : > { %1929 = shalt.err (!%p1926_p3)
}
 0xc6b   : > { %s2004_s6 = smov 128   ;;  %s2005_s7 = smov 8  }
 0xc6c   : > { %1813 = dma.vmem_to_hbm [thread:$0]  (%p2179_p5), %s1595_s5, 256, %s1597_s4, %s1574_s30, %s2004_s6, %s2004_s6, %s2005_s7  }
 0xc6d   : > { %s1611_s24 = sshll.u32 %s2339_s0, 4  ;;  %s1613_s3 = sshll.u32 %s1610_s23, 4  ;;  %s1612_s24 = int_to_ptr.vmem [resolvable:$true] %s1611_s24  ;;  %s1614_s3 = int_to_ptr.hbm [resolvable:$true] %s1613_s3 }
 0xc6e   : > { %s1579_s12 = scalar_lea.sflag [#allocation5], %s2228_s9  ;;  %s1944_s29 = sshra.s32 %s1614_s3, 4  ;;  %s1945_s29 = int_to_ptr.hbm [resolvable:$true] %s1944_s29 }
 0xc6f   : > { %s1946_s13 = scalar_lea.hbm %s1945_s29, 16  ;;  %s1950_s8 = scalar_lea.hbm %s2506_s26, 32 }
 0xc70   : > { %p1947_p4 = scmp.ne.s32.totalorder %s1945_s29, %s1946_s13  ;;  %p1951_p9 = scmp.lt.s32.totalorder %s1945_s29, %s2506_s26 }
 0xc71   : > { %p1952_p10 = scmp.lt.s32.totalorder %s1950_s8, %s1946_s13 }
 0xc72   : > { %p1948_p7 = pnand %p1947_p4, %p2179_p5 }
 0xc73   : > { %p1953_p11 = por %p1952_p10, %p1951_p9 }
 0xc74   : > { %p1949_p8 = pneg %p1948_p7 }
 0xc76   : > { %p1954_p12 = pnand %p1953_p11, %p1949_p8 }
 0xc78   : > { %1957 = shalt.err (!%p1954_p12)
}
 0xc79   : > { %1814 = dma.vmem_to_hbm [thread:$0]  (%p2179_p5), %s1612_s24, 256, %s1614_s3, %s1579_s12, %s2004_s6, %s2004_s6, %s2005_s7  }
 0xc7a   : > { %v1876_v38 = vld [vmem:[%s2502_s22] ss:$0 sm:$0xff]  ;;  %s2569_s5 = sld [smem:[#allocation29_spill]] }
 0xc7b   : > { %s2570_s6 = sld [smem:[#allocation30_spill]] }
 0xc81   : > { %s858_s7 = scalar_lea.vmem %s2570_s6, %s2203_s10 }
 0xcdc   : > { %v1546_v29 = vpop.xlane.xlu0 %1545 }
 0xcdd   : > { %v1547_v30 = vmul.f32 %v1546_v29, %v2281_v17  ;;  %v1877_v17 = vld [vmem:[%s2569_s5] ss:$0 sm:$0xff] }
 0xcdf   : > { %v1548_v31 = vadd.f32 1e-06, %v1547_v30 }
 0xce1   : > { %1900 = vrsqrt.f32 %v1548_v31  ;;  %vm1555_vm13 = vweird.f32 %v1548_v31 }
 0xce7   : > { %v1901_v32 = vpop.eup %1900 }
 0xce8   : > { %v1550_v33 = vmul.f32 %v1901_v32, %v1548_v31  ;;  %vm1556_vm12 = vweird.f32 %v1901_v32 }
 0xce9   : > { %vm1557_vm14 = vmor %vm1555_vm13, %vm1556_vm12 }
 0xcea   : > { %v1551_v34 = vmul.f32 %v1901_v32, %v1550_v33 }
 0xcec   : > { %v1552_v35 = vmul.f32 0.5, %v1551_v34 }
 0xcee   : > { %v1553_v36 = vsub.f32 1.5, %v1552_v35 }
 0xcf0   : > { %v1554_v37 = vmul.f32 %v1901_v32, %v1553_v36 }
 0xcf2   : > { %v1558_v39 = vsel %vm1557_vm14, %v1901_v32, %v1554_v37 }
 0xcf3   : > { %v1559_v40 = vmul.f32 %v1558_v39, %v1542_v26 }
 0xcf5   : > { %v1563_v41 = vmul.f32 %v1876_v38, %v1559_v40 }
 0xcf7   : > { %v1567_v42 = vadd.f32 %v1877_v17, %v1563_v41 }
 0xcf9   : > { %1568 = vst.msk [vmem:[%s858_s7] sm:$0xff] %vm869_vm0, %v1567_v42 }
 0xcfa PF: > { %s2571_s24 = sld [smem:[#allocation11_spill]] }
 0xcfb   : > { %s2572_s3 = sld [smem:[#allocation8_spill]] }
 0xd00   : > { %p1824_p5 = scmp.ge.s32.totalorder %s2571_s24, 2 }
 0xd01   : > { %s1635_s29 = sand.u32 1, %s2572_s3  }
 0xd02   : > { %p1818_p13 = pnand %p1824_p5, %p2183_p6  ;;  %s1636_s13 = scalar_lea.sflag [#allocation3], %s1635_s29 }
 0xd04   : > { %p1819_p0 = pneg %p1818_p13 }
 0xd06   : > { %1975 = dma.done.wait (%p1819_p0), %s1636_s13, 256  }
 0xd07   : > { %1977 = vsyncadd (%p1819_p0), %s1636_s13, 4294967040  ;;  %s1646_s11 = scalar_lea.sflag [#allocation5], %s1635_s29 }
 0xd08   : > { %1979 = dma.done.wait (%p1819_p0), %s1646_s11, 256  }
 0xd09   : > { %1981 = vsyncadd (%p1819_p0), %s1646_s11, 4294967040  ;;  %s2574_s28 = sld [smem:[#allocation12_spill]] }
 0xd0a   : > { %s2575_s27 = sld [smem:[#allocation9_spill]] }
 0xd0b   : > { %s2576_s3 = sld [smem:[#allocation10_spill]] }
 0xd0c   : > { %s2577_s7 = sld [smem:[#allocation13_spill]] }
 0xd0f   : > { %p40_p1 = scmp.ge.s32.totalorder %s2574_s28, 4  }
 0xd11   :  { %42 = sbr.rel (!%p40_p1) target bundleno = 22 (0x16), region = 191 }
 0xd16   :  { %1652 = vsyncpa [#allocation3], 1 }
 0xd17   :  { %1654 = vsyncpa [#allocation3 + $0x1], 1 }
 0xd18   :  { %1655 = vsyncpa [#allocation5], 1 }
 0xd19   :  { %1657 = vsyncpa [#allocation5 + $0x1], 1 }

// kernel: transformer_forward.8
= control target key start
LH: loop header
LB: loop body
LE: loop exit
PB: predicated region body
PF: predicated region fallthrough
CT: control target
= control target key end

     0   :  { %s2800_s0 = inlined_call_operand.vmem [shape: f32[2,8,32], index: 0, kind: input, shape index: {}]   ;;  %s2801_s1 = inlined_call_operand.vmem [shape: f32[2,8,32], index: 1, kind: input, shape index: {}]   ;;  %s2802_s2 = inlined_call_operand.vmem [shape: f32[2,8,8], index: 2, kind: input, shape index: {}]   ;;  %s2803_s3 = inlined_call_operand.vmem [shape: f32[2,8,8], index: 3, kind: input, shape index: {}]   ;;  %s2804_s4 = inlined_call_operand.vmem [shape: f32[32,96], index: 4, kind: input, shape index: {}]   ;;  %s2805_s5 = inlined_call_operand.vmem [shape: f32[1,96], index: 5, kind: input, shape index: {}]   ;;  %s2806_s6 = inlined_call_operand.vmem [shape: f32[32,32], index: 6, kind: input, shape index: {}]   ;;  %s2807_s7 = inlined_call_operand.vmem [shape: f32[1,32], index: 7, kind: input, shape index: {}]   ;;  %s2808_s8 = inlined_call_operand.vmem [shape: f32[1,32], index: 8, kind: input, shape index: {}]   ;;  %s2809_s9 = inlined_call_operand.vmem [shape: f32[1,32], index: 9, kind: input, shape index: {}]   ;;  %s2810_s10 = inlined_call_operand.vmem [shape: f32[32,32], index: 10, kind: input, shape index: {}]   ;;  %s2811_s11 = inlined_call_operand.vmem [shape: f32[1,32], index: 11, kind: input, shape index: {}]   ;;  %s2812_s12 = inlined_call_operand.vmem [shape: f32[32,64], index: 12, kind: input, shape index: {}]   ;;  %s2813_s13 = inlined_call_operand.vmem [shape: f32[1,64], index: 13, kind: input, shape index: {}]   ;;  %s2814_s14 = inlined_call_operand.vmem [shape: f32[32,32], index: 14, kind: input, shape index: {}]   ;;  %s2815_s15 = inlined_call_operand.vmem [shape: f32[1,32], index: 15, kind: input, shape index: {}]   ;;  %s2816_s16 = inlined_call_operand.vmem [shape: f32[1,32], index: 16, kind: input, shape index: {}]   ;;  %s2817_s17 = inlined_call_operand.vmem [shape: f32[1,32], index: 17, kind: input, shape index: {}]   ;;  %s2818_s18 = inlined_call_operand.vmem [shape: f32[32,64], index: 18, kind: input, shape index: {}]   ;;  %s2819_s19 = inlined_call_operand.hbm [shape: f32[1,64], index: 19, kind: input, shape index: {}]   ;;  %s2820_s20 = inlined_call_operand.vmem [shape: f32[64,32], index: 20, kind: input, shape index: {}]   ;;  %s2821_s21 = inlined_call_operand.hbm [shape: f32[1,32], index: 21, kind: input, shape index: {}]   ;;  %s2822_s22 = inlined_call_operand.hbm [shape: f32[1,32], index: 22, kind: input, shape index: {}]   ;;  %s2823_s23 = inlined_call_operand.hbm [shape: f32[1,32], index: 23, kind: input, shape index: {}]   ;;  %s2824_s24 = inlined_call_operand.vmem [shape: f32[2,8,32], index: 24, kind: output, shape index: {0}]   ;;  %s2825_s25 = inlined_call_operand.hbm [shape: f32[2,2,8,8], index: 25, kind: output, shape index: {1}]   ;;  %s2826_s26 = inlined_call_operand.hbm [shape: f32[2,2,8,8], index: 26, kind: output, shape index: {2}]  }
   0x1   :  { %2843 = sst [smem:[#allocation24_spill]] %s2800_s0 }
   0x2   :  { %2844 = sst [smem:[#allocation25_spill]] %s2801_s1 }
   0x3   :  { %2845 = sst [smem:[#allocation26_spill]] %s2802_s2 }
   0x4   :  { %2846 = sst [smem:[#allocation27_spill]] %s2803_s3 }
   0x5   :  { %2847 = sst [smem:[#allocation28_spill]] %s2804_s4 }
   0x6   :  { %2848 = sst [smem:[#allocation29_spill]] %s2805_s5 }
   0x7   :  { %2849 = sst [smem:[#allocation30_spill]] %s2806_s6 }
   0x8   :  { %2850 = sst [smem:[#allocation31_spill]] %s2807_s7 }
   0x9   :  { %2851 = sst [smem:[#allocation32_spill]] %s2808_s8 }
   0xa   :  { %2852 = sst [smem:[#allocation33_spill]] %s2809_s9 }
   0xb   :  { %2853 = sst [smem:[#allocation34_spill]] %s2810_s10 }
   0xc   :  { %2854 = sst [smem:[#allocation35_spill]] %s2811_s11 }
   0xd   :  { %2855 = sst [smem:[#allocation36_spill]] %s2812_s12 }
   0xe   :  { %2856 = sst [smem:[#allocation37_spill]] %s2813_s13 }
   0xf   :  { %2857 = sst [smem:[#allocation38_spill]] %s2819_s19 }
  0x10   :  { %2858 = sst [smem:[#allocation39_spill]] %s2821_s21 }
  0x11   :  { %2859 = sst [smem:[#allocation40_spill]] %s2822_s22 }
  0x12   :  { %2860 = sst [smem:[#allocation41_spill]] %s2824_s24 }
  0x13   :  { %32 = vsyncpa [#allocation3], 0 }
  0x14   :  { %33 = vsyncpa [#allocation6], 0 }
  0x15   :  { %34 = vsyncpa [#allocation9], 0 }
  0x16   :  { %35 = vsyncpa [#allocation4], 0 }
  0x17   :  { %37 = vsyncpa [#allocation4 + $0x1], 0 }
  0x18   :  { %38 = vsyncpa [#allocation12], 0 }
  0x19   :  { %40 = vsyncpa [#allocation12 + $0x1], 0  ;;  %s2426_s27 = smov 0   ;;  %s2428_s3 = smov 0  }
  0x1a   :  { %s2430_s7 = smov 0   ;;  %s2432_s28 = smov 0  }
  0x1b LB: > { %2861 = sst [smem:[#allocation18_spill]] %s2265_s27  ;;  %s2447_s8 = sadd.s32 4294967295, %s2277_s28   ;;  %s2277_s28 = sphi %s2432_s28, %s2897_s28   ;;  %s2273_s7 = sphi %s2430_s7, %s2899_s7   ;;  %s2269_s3 = sphi %s2428_s3, %s2901_s3   ;;  %s2265_s27 = sphi %s2426_s27, %s2900_s27  }
  0x1c   : > { %2862 = sst [smem:[#allocation19_spill]] %s2273_s7  ;;  %s1869_s4 = sadd.s32 4294967294, %s2277_s28  }
  0x1d   : > { %2863 = sst [smem:[#allocation20_spill]] %s2277_s28  ;;  %s2451_s29 = sadd.s32 1, %s2277_s28  }
  0x1e   : > { %2864 = sst [smem:[#allocation21_spill]] %s2451_s29  ;;  %s603_s0 = sadd.s32 1, %s2273_s7 }
  0x1f   : > { %s600_s9 = ssub.s32 %s2277_s28, %s2451_s29  ;;  %p613_p0 = scmp.ne.s32.totalorder %s2273_s7, %s2269_s3 }
  0x20   : > { %p601_p1 = scmp.eq.s32.totalorder %s600_s9, 0  ;;  %p614_p2 = scmp.eq.s32.totalorder %s2447_s8, 1 }
  0x21   : > { %p619_p3 = scmp.ne.s32.totalorder %s2269_s3, %s2265_s27  ;;  %p620_p4 = scmp.eq.s32.totalorder %s1869_s4, 1 }
  0x22   : > { %s2462_s30 = scalar_select %p601_p1, %s2273_s7, %s603_s0  }
  0x23   : > { %p2464_p5 = por %p614_p2, %p613_p0  ;;  %p2468_p6 = por %p620_p4, %p619_p3 }
  0x24   : > { %2865 = sst [smem:[#allocation22_spill]] %s2462_s30  ;;  %p1870_p7 = scmp.ge.s32.totalorder %s2277_s28, 1 }
  0x25   : > { %s2867_s5 = scalar_select %p2468_p6, 1, 0 }
  0x26   : > { %p653_p8 = scmp.lt.s32.totalorder %s2277_s28, 3  ;;  %p1961_p9 = scmp.eq.s32.totalorder %s2447_s8, 0 }
  0x27   : > { %2868 = sst [smem:[#allocation23_spill]] %s2867_s5  ;;  %s2279_s0 = smov [#allocation5]  }
  0x28   : > { %p2475_p10 = pnand %p1870_p7, %p653_p8  ;;  %s2870_s21 = sld [smem:[#allocation39_spill]] }
  0x29   : > { %s727_s9 = sshll.u32 %s2279_s0, 4  ;;  %s2871_s19 = sld [smem:[#allocation38_spill]]  ;;  %s728_s9 = int_to_ptr.vmem [resolvable:$true] %s727_s9 }
  0x2a   : > { %p1941_p11 = pneg %p2475_p10  ;;  %s2873_s22 = sld [smem:[#allocation40_spill]] }
  0x2b   : > { %s2280_s0 = smov [#allocation2]   ;;  %s2281_s28 = smov [#allocation7]  }
  0x2c   : > { %p2489_p12 = pnand %p1961_p9, %p1941_p11  ;;  %s712_s27 = sshll.u32 %s2280_s0, 4  ;;  %s713_s27 = int_to_ptr.vmem [resolvable:$true] %s712_s27 }
  0x2d   : > { %s739_s24 = sshll.u32 %s2281_s28, 4  ;;  %s2282_s6 = smov [#allocation8]   ;;  %s740_s24 = int_to_ptr.vmem [resolvable:$true] %s739_s24 }
  0x2e   : > { %s725_s4 = sshll.u32 %s2870_s21, 4  ;;  %s751_s1 = sshll.u32 %s2282_s6, 4  ;;  %s726_s4 = int_to_ptr.hbm [resolvable:$true] %s725_s4  ;;  %s752_s1 = int_to_ptr.vmem [resolvable:$true] %s751_s1 }
  0x2f   : > { %s710_s29 = sshll.u32 %s2871_s19, 4  ;;  %s749_s19 = sshll.u32 %s2823_s23, 4  ;;  %s711_s29 = int_to_ptr.hbm [resolvable:$true] %s710_s29  ;;  %s750_s19 = int_to_ptr.hbm [resolvable:$true] %s749_s19 }
  0x30   : > { %s737_s21 = sshll.u32 %s2873_s22, 4  ;;  %792 = sbr.rel (%p2475_p10) target bundleno = 3344 (0xd10), region = 116  ;;  %s738_s21 = int_to_ptr.hbm [resolvable:$true] %s737_s21 }
  0x31   : > { %1947 = dma.hbm_to_vmem [thread:$0]  (!%p2489_p12), %s726_s4, 16, %s728_s9, [#allocation6]  }
  0x32   : > { %1944 = dma.hbm_to_vmem [thread:$0]  (!%p2489_p12), %s711_s29, 16, %s713_s27, [#allocation3]  }
  0x33   : > { %1950 = dma.hbm_to_vmem [thread:$0]  (!%p2489_p12), %s738_s21, 16, %s740_s24, [#allocation6]  }
  0x34   : > { %1953 = dma.hbm_to_vmem [thread:$0]  (!%p2489_p12), %s750_s19, 16, %s752_s1, [#allocation9]  }
  0x35   : > { %2244 = dma.done.wait (%p1961_p9), [#allocation3], 16  }
  0x36   : > { %2246 = vsyncadd (%p1961_p9), [#allocation3], 4294967280 }
  0x37   : > { %2248 = dma.done.wait (%p1961_p9), [#allocation6], 32  }
  0x38   : > { %2250 = vsyncadd (%p1961_p9), [#allocation6], 4294967264 }
  0x39   : > { %2252 = dma.done.wait (%p1961_p9), [#allocation9], 16  }
  0x3a   : > { %2254 = vsyncadd (%p1961_p9), [#allocation9], 4294967280  ;;  %p898_p13 = scmp.lt.s32.totalorder %s2447_s8, 1  ;;  %s2874_s28 = sld [smem:[#allocation28_spill]]  ;;  %vm928_vm0 = vcmask 261120   ;;  %vm961_vm1 = vcmask 130048  }
  0x3b   : > { %s2876_s0 = sld [smem:[#allocation24_spill]]  ;;  %s2837_s5 = smov 80   ;;  %vm989_vm2 = vcmask 64512  }
  0x3c   : > { %s899_s19 = scalar_select %p898_p13, %s2447_s8, 1 }
  0x3d   : > { %s2838_s10 = smov 96   ;;  %s2839_s4 = smov 112  }
  0x3e   : > { %s2523_s21 = sshll.u32 %s899_s19, 3  ;;  %s2286_s6 = smov 48  }
  0x3f   : > { %s2287_s1 = smov 64   ;;  %s2560_s19 = sand.u32 1, %s2269_s3  }
  0x40   : > { %s2875_s29 = smov %s2874_s28  ;;  %v923_v0 = vld [vmem:[%s2874_s28 + $0x18] sm:$0xff]  ;;  %s2877_s28 = sld [smem:[#allocation29_spill]] }
  0x41   : > { %v922_v1 = vld [vmem:[%s2875_s29 + $0x10] sm:$0xff]  ;;  %s901_s7 = scalar_lea.vmem %s2876_s0, %s2523_s21  ;;  %944 = vmatpush.msra.mxu0 %v923_v0  ;;  %v921_v2 = vld [vmem:[%s2875_s29 + $0x8] sm:$0xff]  ;;  %v920_v3 = vld [vmem:[%s2875_s29] sm:$0xff]  ;;  %s2836_s24 = sshll.u32 %s2560_s19, 4 }
  0x42   : > { %v2541_v4 = vld [vmem:[%s901_s7] sm:$0xff]  ;;  %s2878_s7 = sld [smem:[#allocation26_spill]]  ;;  %s2565_s27 = scalar_lea.vmem [#allocation10], %s2836_s24 }
  0x43   : > { %945 = vmatpush.msra.mxu0 %v922_v1  ;;  %s2879_s0 = sld [smem:[#allocation30_spill]]  ;;  %s2892_s24 = sshll.u32 %s2560_s19, 4 }
  0x44   : > { %s2881_s12 = sld [smem:[#allocation36_spill]]  ;;  %s1653_s22 = sshll.u32 %s2565_s27, 4  ;;  %s1654_s22 = int_to_ptr.vmem [resolvable:$true] %s1653_s22 }
  0x45   : > { %946 = vmatpush.msra.mxu0 %v921_v2  ;;  %s2884_s13 = sld [smem:[#allocation37_spill]] }
  0x46   : > { %v2014_v5 = vld [vmem:[%s2877_s28] ss:$0 sm:$0xff]  ;;  %s2888_s11 = sld [smem:[#allocation35_spill]] }
  0x47   : > { %947 = vmatpush.msra.mxu0 %v920_v3 }
  0x48   : > { %1888 = vmatmul.msk.f32.vlgmr.msra.gmra.mxu0 %vm928_vm0, %v2541_v4  ;;  %s909_s30 = scalar_lea.vmem %s2878_s7, %s2523_s21  ;;  %s2889_s7 = smov 96  }
  0x49   : > { %v952_v9 = vld [vmem:[%s909_s30] sm:$0xff]  ;;  %v954_v35 = vld [vmem:[%s2879_s0 + $0x8] sm:$0xff]  ;;  %v956_v48 = vld [vmem:[%s2879_s0 + $0x18] sm:$0xff] }
  0x4a   : > { %v987_v10 = vmul.f32 -1e+09, %v952_v9  ;;  %v953_v37 = vld [vmem:[%s2879_s0] sm:$0xff]  ;;  %v955_v61 = vld [vmem:[%s2879_s0 + $0x10] sm:$0xff]  ;;  %s2671_s0 = scalar_lea.vmem [#allocation11], %s2892_s24  ;;  %s2191_s24 = scalar_lea.hbm %s2825_s25, 32 }
  0x4b   : > { %v1246_v9 = vld [vmem:[%s2881_s12 + $0x10] sm:$0xff] }
  0xc5   : > { %v949_v6 = vpop.f32.mrf.mxu0 }
  0xc6   : > { %v950_v7 = vadd.f32 %v2014_v5, %v949_v6 }
  0xc8   : > { %1043 = vrot.lane.b32.xlu2 %v950_v7, %s2837_s5  ;;  %959 = vrot.lane.b32.xlu0 %v950_v7, %s2838_s10  ;;  %s2882_s10 = sld [smem:[#allocation25_spill]] }
  0xc9   : > { %s2890_s5 = sld [smem:[#allocation27_spill]] }
  0xd0   : > { %1041 = vrot.lane.b32.xlu2 %v950_v7, %s2839_s4  ;;  %s905_s4 = scalar_lea.vmem %s2882_s10, %s2523_s21  ;;  %s2883_s10 = sld [smem:[#allocation34_spill]] }
 0x122   : > { %v1044_v33 = vpop.permute.xlu2 %1043 }
 0x12a   : > { %v1042_v36 = vpop.permute.xlu2 %1041 }
 0x13a   : > { %v960_v8 = vpop.permute.xlu0 %959 }
 0x13b   : > { %1889 = vmatpush.xpose.msk.msra.mxu1 %vm961_vm1, %v960_v8  ;;  %v1247_v8 = vld [vmem:[%s2881_s12 + $0x18] sm:$0xff] }
 0x13e   : > { %1890 = vmatmul.msk.f32.vlgmr.msra.gmra.mxu1 %vm961_vm1, %v950_v7 }
 0x13f   : > { %1140 = vmatpush.msrb.mxu1 %v956_v48 }
 0x141   : > { %1141 = vmatpush.msrb.mxu1 %v955_v61 }
 0x1bb   : > { %v983_v11 = vpop.f32.mrf.mxu1 }
 0x1bc   : > { %v986_v12 = vmul.f32 0.25, %v983_v11  ;;  %v1244_v11 = vld [vmem:[%s2881_s12] sm:$0xff] }
 0x1be   : > { %v988_v13 = vadd.f32 %v987_v10, %v986_v12  ;;  %v919_v12 = vld [vmem:[%s905_s4] sm:$0xff]  ;;  %s2886_s4 = sld [smem:[#allocation32_spill]] }
 0x1c0   : > { %v990_v14 = vsel %vm989_vm2, %v988_v13, -inf }
 0x1c1   : > { %991 = vmax.xlane.f32.xlu0 %v990_v14 }
 0x1d5   : > { %1097 = vrot.lane.b32.xlu0 %v950_v7, %s2286_s6  ;;  %s2880_s6 = sld [smem:[#allocation31_spill]] }
 0x1db   : > { %v2015_v63 = vld [vmem:[%s2880_s6] ss:$0 sm:$0xff]  ;;  %s2885_s6 = smov 112  }
 0x234   : > { %v992_v15 = vpop.xlane.xlu0 %991 }
 0x235   : > { %v993_v16 = vsub.f32 %v988_v13, %v992_v15 }
 0x237   : > { %v994_v17 = vmul.f32 1.442695, %v993_v16 }
 0x239   : > { %2027 = vpow2.f32 %v994_v17 }
 0x23f   : > { %v2028_v18 = vpop.eup %2027 }
 0x240   : > { %v996_v19 = vsel %vm989_vm2, %v2028_v18, 0.0 }
 0x241   : > { %997 = vadd.xlane.f32.xlu1 %v996_v19 }
 0x247   : > { %v1098_v20 = vpop.permute.xlu0 %1097 }
 0x248   : > { %1118 = vmatpush.msra.mxu2 %v1098_v20 }
 0x24a   : > { %1267 = vmatpush.msrb.mxu2 %v1247_v8 }
 0x24c   : > { %1268 = vmatpush.msrb.mxu2 %v1246_v9 }
 0x25a   : > { %1015 = vrot.lane.b32.xlu1 %v950_v7, %s2287_s1  ;;  %v2288_v7 = vmov 32.0   ;;  %s2887_s1 = sld [smem:[#allocation33_spill]] }
 0x2b4   : > { %v998_v21 = vpop.xlane.xlu1 %997 }
 0x2b5   : > { %2029 = vrcp.f32 %v998_v21  ;;  %v1010_v25 = vand.u32 2147483648, %v998_v21  ;;  %v1008_v27 = vand.u32 2147483647, %v998_v21  ;;  %vm1004_vm4 = vweird.f32 %v998_v21 }
 0x2b7   : > { %v1011_v29 = vor.u32 1.1754944e-38, %v1010_v25  ;;  %vm1009_vm6 = vcmp.eq.f32.partialorder %v1008_v27, 8.507059e+37  ;;  %v1214_v25 = vld [vmem:[%s2883_s10 + $0x8] sm:$0xff]  ;;  %v2018_v27 = vld [vmem:[%s2884_s13] ss:$0 sm:$0xff] }
 0x2bb   : > { %v2030_v22 = vpop.eup %2029 }
 0x2bc   : > { %v1000_v23 = vmul.f32 %v2030_v22, %v998_v21  ;;  %vm1005_vm3 = vweird.f32 %v2030_v22 }
 0x2bd   : > { %vm1006_vm5 = vmor %vm1004_vm4, %vm1005_vm3 }
 0x2be   : > { %v1001_v24 = vsub.f32 1.0, %v1000_v23  ;;  %v1216_v23 = vld [vmem:[%s2883_s10 + $0x18] sm:$0xff] }
 0x2bf   : > { %1236 = vmatpush.msrb.mxu0 %v1216_v23 }
 0x2c0   : > { %v1002_v26 = vmul.f32 %v2030_v22, %v1001_v24  ;;  %v1215_v24 = vld [vmem:[%s2883_s10 + $0x10] sm:$0xff] }
 0x2c1   : > { %1237 = vmatpush.msrb.mxu0 %v1215_v24 }
 0x2c2   : > { %v1003_v28 = vadd.f32 %v2030_v22, %v1002_v26  ;;  %v1213_v26 = vld [vmem:[%s2883_s10] sm:$0xff] }
 0x2c3   : > { %1238 = vmatpush.msrb.mxu0 %v1214_v25 }
 0x2c4   : > { %v1007_v30 = vsel %vm1006_vm5, %v2030_v22, %v1003_v28 }
 0x2c5   : > { %v1012_v31 = vsel %vm1009_vm6, %v1011_v29, %v1007_v30  ;;  %1239 = vmatpush.msrb.mxu0 %v1213_v26 }
 0x2c6   : > { %v1013_v32 = vmul.f32 %v2028_v18, %v1012_v31 }
 0x2c8   : > { %1014 = vst.msk [vmem:[%s2565_s27] sm:$0xff] %vm989_vm2, %v1013_v32 }
 0x2cc   : > { %v1016_v34 = vpop.permute.xlu1 %1015 }
 0x2cd   : > { %1036 = vmatpush.msra.mxu3 %v1016_v34 }
 0x2ce   : > { %1891 = vmatmul.msk.f32.vlgmr.msra.gmra.mxu3 %vm989_vm2, %v1013_v32 }
 0x2cf   : > { %1892 = vmatpush.xpose.msk.msrb.mxu3 %vm961_vm1, %v1044_v33 }
 0x2d3   : > { %1163 = vmatpush.msra.mxu3 %v954_v35 }
 0x2d5   : > { %1164 = vmatpush.msra.mxu3 %v953_v37 }
 0x2d6   : > { %1893 = vmatmul.msk.f32.vlgmr.msrb.gmra.mxu3 %vm961_vm1, %v1042_v36 }
 0x351   : > { %v1038_v38 = vpop.f32.mrf.mxu3 }
 0x352   : > { %1897 = vmatmul.msk.f32.vlgmr.msra.gmra.mxu3 %vm961_vm1, %v1038_v38 }
 0x359   : > { %v1066_v39 = vpop.f32.mrf.mxu3 }
 0x35a   : > { %v1069_v40 = vmul.f32 0.25, %v1066_v39  ;;  %v2016_v39 = vld [vmem:[%s2886_s4] ss:$0 sm:$0xff]  ;;  %s913_s4 = scalar_lea.vmem %s2890_s5, %s2523_s21 }
 0x35c   : > { %v1070_v41 = vadd.f32 %v1069_v40, %v987_v10  ;;  %v1245_v10 = vld [vmem:[%s2881_s12 + $0x8] sm:$0xff] }
 0x35d   : > { %1269 = vmatpush.msrb.mxu2 %v1245_v10 }
 0x35e   : > { %v1071_v42 = vsel %vm989_vm2, %v1070_v41, -inf }
 0x35f   : > { %1072 = vmax.xlane.f32.xlu2 %v1071_v42  ;;  %1270 = vmatpush.msrb.mxu2 %v1244_v11  ;;  %v2017_v42 = vld [vmem:[%s2887_s1] ss:$0 sm:$0xff] }
 0x3d2   : > { %v1073_v43 = vpop.xlane.xlu2 %1072 }
 0x3d3   : > { %v1074_v44 = vsub.f32 %v1070_v41, %v1073_v43 }
 0x3d5   : > { %v1075_v45 = vmul.f32 1.442695, %v1074_v44  ;;  %v1166_v0 = vpop.f32.mrf.mxu3 }
 0x3d7   : > { %2031 = vpow2.f32 %v1075_v45 }
 0x3dd   : > { %v2032_v46 = vpop.eup %2031 }
 0x3de   : > { %v1077_v47 = vsel %vm989_vm2, %v2032_v46, 0.0 }
 0x3df   : > { %1078 = vadd.xlane.f32.xlu1 %v1077_v47 }
 0x452   : > { %v1079_v49 = vpop.xlane.xlu1 %1078 }
 0x453   : > { %2033 = vrcp.f32 %v1079_v49  ;;  %v1091_v53 = vand.u32 2147483648, %v1079_v49  ;;  %v1089_v55 = vand.u32 2147483647, %v1079_v49  ;;  %vm1085_vm8 = vweird.f32 %v1079_v49 }
 0x454   : > { %2035 = vrcp.f32 %v2288_v7 }
 0x455   : > { %v1092_v57 = vor.u32 1.1754944e-38, %v1091_v53  ;;  %vm1090_vm10 = vcmp.eq.f32.partialorder %v1089_v55, 8.507059e+37 }
 0x459   : > { %v2034_v50 = vpop.eup %2033 }
 0x45a   : > { %v1081_v51 = vmul.f32 %v2034_v50, %v1079_v49  ;;  %vm1086_vm7 = vweird.f32 %v2034_v50 }
 0x45b   : > { %vm1087_vm9 = vmor %vm1085_vm8, %vm1086_vm7 }
 0x45c   : > { %v1082_v52 = vsub.f32 1.0, %v1081_v51  ;;  %v1275_v51 = vld [vmem:[%s913_s4] sm:$0xff]  ;;  %s1633_s4 = scalar_lea.sflag [#allocation4], %s2560_s19 }
 0x45e   : > { %v1083_v54 = vmul.f32 %v2034_v50, %v1082_v52  ;;  %v1308_v52 = vmul.f32 -1e+09, %v1275_v51 }
 0x460   : > { %v1084_v56 = vadd.f32 %v2034_v50, %v1083_v54 }
 0x462   : > { %v1088_v58 = vsel %vm1087_vm9, %v2034_v50, %v1084_v56 }
 0x463   : > { %v1093_v59 = vsel %vm1090_vm10, %v1092_v57, %v1088_v58 }
 0x464   : > { %v1094_v60 = vmul.f32 %v2032_v46, %v1093_v59  ;;  %v2019_v46 = vld [vmem:[%s2888_s11] ss:$0 sm:$0xff] }
 0x466   : > { %1894 = vst.msk [vmem:[%s2565_s27 + $0x8] sm:$0xff] %vm989_vm2, %v1094_v60  ;;  %1895 = vmatmul.msk.f32.vlgmr.msra.gmra.mxu2 %vm989_vm2, %v1094_v60 }
 0x46e   : > { %1899 = vmatmul.msk.f32.vlgmr.msrb.gmra.mxu2 %vm928_vm0, %v919_v12 }
 0x4e9   : > { %v1120_v62 = vpop.f32.mrf.mxu2 }
 0x4ea   : > { %1896 = vmatmul.msk.f32.vlgmr.msrb.gmra.mxu1 %vm961_vm1, %v1120_v62 }
 0x4f1   : > { %v1272_v28 = vpop.f32.mrf.mxu2 }
 0x4f2   : > { %v2632_v29 = vadd.f32 %v2018_v27, %v1272_v28 }
 0x4f4   : > { %1363 = vrot.lane.b32.xlu0 %v2632_v29, %s2885_s6  ;;  %1900 = vmatpush.xpose.msk.msra.mxu1 %vm961_vm1, %v2632_v29 }
 0x566   : > { %v1364_v45 = vpop.permute.xlu0 %1363 }
 0x567   : > { %v1143_v1 = vpop.f32.mrf.mxu1  ;;  %1903 = vmatpush.xpose.msk.msra.mxu0 %vm961_vm1, %v1364_v45 }
 0x568   : > { %v1167_v2 = vadd.f32 %v1166_v0, %v1143_v1 }
 0x56a   : > { %v1172_v3 = vadd.f32 %v2015_v63, %v1167_v2 }
 0x56c   : > { %v1173_v5 = vadd.f32 %v1172_v3, %v2541_v4  ;;  %v2036_v4 = vpop.eup %2035 }
 0x56d   : > { %v1180_v13 = vmul.f32 32.0, %v2036_v4  ;;  %vm1184_vm11 = vweird.f32 %v2036_v4 }
 0x56e   : > { %v1176_v6 = vsel %vm928_vm0, %v1173_v5, 0.0 }
 0x56f   : > { %1177 = vadd.xlane.f32.xlu2 %v1176_v6  ;;  %v1181_v14 = vsub.f32 1.0, %v1180_v13 }
 0x571   : > { %v1182_v15 = vmul.f32 %v2036_v4, %v1181_v14 }
 0x573   : > { %v1183_v16 = vadd.f32 %v2036_v4, %v1182_v15 }
 0x575   : > { %v2613_v17 = vsel %vm1184_vm11, %v2036_v4, %v1183_v16  ;;  %vm1570_vm11 = vcmask 523264  }
 0x5e2   : > { %v1178_v18 = vpop.xlane.xlu2 %1177 }
 0x5e3   : > { %v1186_v19 = vmul.f32 %v2613_v17, %v1178_v18 }
 0x5e5   : > { %v1187_v20 = vsub.f32 %v1173_v5, %v1186_v19 }
 0x5e7   : > { %v1188_v21 = vmul.f32 %v1187_v20, %v1187_v20 }
 0x5e9   : > { %v1189_v22 = vsel %vm928_vm0, %v1188_v21, 0.0 }
 0x5ea   : > { %1190 = vadd.xlane.f32.xlu2 %v1189_v22 }
 0x65d   : > { %v1191_v30 = vpop.xlane.xlu2 %1190 }
 0x65e   : > { %v1192_v31 = vmul.f32 %v1191_v30, %v2613_v17 }
 0x660   : > { %v1193_v32 = vadd.f32 1e-06, %v1192_v31 }
 0x662   : > { %2037 = vrsqrt.f32 %v1193_v32  ;;  %vm1200_vm13 = vweird.f32 %v1193_v32 }
 0x668   : > { %v2038_v33 = vpop.eup %2037 }
 0x669   : > { %v1195_v34 = vmul.f32 %v2038_v33, %v1193_v32  ;;  %vm1201_vm12 = vweird.f32 %v2038_v33 }
 0x66a   : > { %vm1202_vm14 = vmor %vm1200_vm13, %vm1201_vm12 }
 0x66b   : > { %v1196_v35 = vmul.f32 %v2038_v33, %v1195_v34  ;;  %v1276_v34 = vld [vmem:[%s2814_s14] sm:$0xff] }
 0x66d   : > { %v1197_v36 = vmul.f32 0.5, %v1196_v35  ;;  %v1279_v35 = vld [vmem:[%s2814_s14 + $0x18] sm:$0xff] }
 0x66e   : > { %1460 = vmatpush.msrb.mxu1 %v1279_v35 }
 0x66f   : > { %v1198_v37 = vsub.f32 1.5, %v1197_v36 }
 0x671   : > { %v1199_v38 = vmul.f32 %v2038_v33, %v1198_v37  ;;  %v1278_v37 = vld [vmem:[%s2814_s14 + $0x10] sm:$0xff] }
 0x672   : > { %1461 = vmatpush.msrb.mxu1 %v1278_v37 }
 0x673   : > { %v1203_v40 = vsel %vm1202_vm14, %v2038_v33, %v1199_v38 }
 0x674   : > { %v1204_v41 = vmul.f32 %v1203_v40, %v1187_v20  ;;  %v1277_v20 = vld [vmem:[%s2814_s14 + $0x8] sm:$0xff] }
 0x676   : > { %v1208_v43 = vmul.f32 %v2016_v39, %v1204_v41  ;;  %v2020_v39 = vld [vmem:[%s2815_s15] ss:$0 sm:$0xff] }
 0x678   : > { %v2645_v44 = vadd.f32 %v2017_v42, %v1208_v43 }
 0x67a   : > { %1898 = vmatmul.msk.f32.vlgmr.msrb.gmra.mxu0 %vm928_vm0, %v2645_v44 }
 0x6f7   : > { %v1241_v47 = vpop.f32.mrf.mxu0 }
 0x6f8   : > { %v1242_v48 = vadd.f32 %v2019_v46, %v1241_v47 }
 0x6fa   : > { %1361 = vrot.lane.b32.xlu2 %v1242_v48, %s2885_s6  ;;  %1901 = vmatmul.msk.f32.vlgmr.msra.gmra.mxu1 %vm961_vm1, %v1242_v48  ;;  %s2891_s6 = smov 80  }
 0x702   : > { %1335 = vrot.lane.b32.xlu2 %v2632_v29, %s2889_s7 }
 0x754   : > { %v1362_v49 = vpop.permute.xlu2 %1361 }
 0x755   : > { %1904 = vmatmul.msk.f32.vlgmr.msra.gmra.mxu0 %vm961_vm1, %v1362_v49 }
 0x75c   : > { %v1336_v50 = vpop.permute.xlu2 %1335 }
 0x75d   : > { %1356 = vmatpush.msrb.mxu3 %v1336_v50 }
 0x75f   : > { %1483 = vmatpush.msra.mxu3 %v1277_v20 }
 0x761   : > { %1484 = vmatpush.msra.mxu3 %v1276_v34 }
 0x777   : > { %v1304_v53 = vpop.f32.mrf.mxu1 }
 0x778   : > { %v1307_v54 = vmul.f32 0.25, %v1304_v53  ;;  %v1527_v53 = vld [vmem:[%s2818_s18 + $0x8] sm:$0xff] }
 0x77a   : > { %v1309_v55 = vadd.f32 %v1308_v52, %v1307_v54  ;;  %v1526_v54 = vld [vmem:[%s2818_s18] sm:$0xff] }
 0x77c   : > { %v1310_v56 = vsel %vm989_vm2, %v1309_v55, -inf }
 0x77d   : > { %1311 = vmax.xlane.f32.xlu1 %v1310_v56  ;;  %v1564_v56 = vld [vmem:[%s2820_s20 + $0x30] sm:$0xff] }
 0x7d2   : > { %v1386_v57 = vpop.f32.mrf.mxu0 }
 0x7d3   : > { %v1389_v58 = vmul.f32 0.25, %v1386_v57  ;;  %v1563_v57 = vld [vmem:[%s2820_s20 + $0x28] sm:$0xff] }
 0x7d5   : > { %v1390_v59 = vadd.f32 %v1389_v58, %v1308_v52  ;;  %v1529_v52 = vld [vmem:[%s2818_s18 + $0x18] sm:$0xff] }
 0x7d6   : > { %1549 = vmatpush.msrb.mxu0 %v1529_v52 }
 0x7d7   : > { %v1391_v60 = vsel %vm989_vm2, %v1390_v59, -inf }
 0x7d8   : > { %1392 = vmax.xlane.f32.xlu0 %v1391_v60  ;;  %v1562_v60 = vld [vmem:[%s2820_s20 + $0x20] sm:$0xff] }
 0x7f0   : > { %v1312_v61 = vpop.xlane.xlu1 %1311 }
 0x7f1   : > { %v1313_v62 = vsub.f32 %v1309_v55, %v1312_v61  ;;  %v1565_v55 = vld [vmem:[%s2820_s20 + $0x38] sm:$0xff] }
 0x7f3   : > { %v1314_v63 = vmul.f32 1.442695, %v1313_v62  ;;  %v1561_v62 = vld [vmem:[%s2820_s20 + $0x18] sm:$0xff] }
 0x7f5   : > { %2039 = vpow2.f32 %v1314_v63 }
 0x7fb   : > { %v2040_v0 = vpop.eup %2039 }
 0x7fc   : > { %v1316_v1 = vsel %vm989_vm2, %v2040_v0, 0.0 }
 0x7fd   : > { %1317 = vadd.xlane.f32.xlu1 %v1316_v1 }
 0x84b   : > { %v1393_v2 = vpop.xlane.xlu0 %1392 }
 0x84c   : > { %v1394_v3 = vsub.f32 %v1390_v59, %v1393_v2 }
 0x84e   : > { %v1395_v5 = vmul.f32 1.442695, %v1394_v3 }
 0x850   : > { %2041 = vpow2.f32 %v1395_v5 }
 0x856   : > { %v2042_v6 = vpop.eup %2041 }
 0x857   : > { %v1397_v7 = vsel %vm989_vm2, %v2042_v6, 0.0 }
 0x858   : > { %1398 = vadd.xlane.f32.xlu1 %v1397_v7 }
 0x870   : > { %v1318_v8 = vpop.xlane.xlu1 %1317 }
 0x871   : > { %2043 = vrcp.f32 %v1318_v8  ;;  %1417 = vrot.lane.b32.xlu1 %v2632_v29, %s2891_s6  ;;  %v1330_v11 = vand.u32 2147483648, %v1318_v8  ;;  %v1328_v13 = vand.u32 2147483647, %v1318_v8  ;;  %vm1324_vm3 = vweird.f32 %v1318_v8  ;;  %s1919_s6 = sshll.u32 %s2447_s8, 4 }
 0x872   : > { %s1652_s28 = scalar_lea.hbm %s2825_s25, %s1919_s6  ;;  %s1669_s30 = scalar_lea.hbm %s2826_s26, %s1919_s6 }
 0x873   : > { %v1331_v15 = vor.u32 1.1754944e-38, %v1330_v11  ;;  %vm1329_vm5 = vcmp.eq.f32.partialorder %v1328_v13, 8.507059e+37  ;;  %v1560_v11 = vld [vmem:[%s2820_s20 + $0x10] sm:$0xff]  ;;  %v1558_v13 = vld [vmem:[%s2820_s20] sm:$0xff]  ;;  %s1655_s5 = sshll.u32 %s1652_s28, 4  ;;  %s1656_s5 = int_to_ptr.hbm [resolvable:$true] %s1655_s5 }
 0x874   : > { %s2185_s10 = sshra.s32 %s1656_s5, 4  ;;  %s2186_s10 = int_to_ptr.hbm [resolvable:$true] %s2185_s10 }
 0x875   : > { %s2187_s11 = scalar_lea.hbm %s2186_s10, 16  ;;  %p2192_p3 = scmp.lt.s32.totalorder %s2186_s10, %s2825_s25 }
 0x876   : > { %p2188_p0 = scmp.ne.s32.totalorder %s2186_s10, %s2187_s11  ;;  %p2193_p4 = scmp.lt.s32.totalorder %s2191_s24, %s2187_s11 }
 0x877   : > { %v2044_v9 = vpop.eup %2043 }
 0x878   : > { %v1320_v10 = vmul.f32 %v2044_v9, %v1318_v8  ;;  %vm1325_vm15 = vweird.f32 %v2044_v9  ;;  %p2189_p1 = pnand %p2188_p0, %p2464_p5  ;;  %p2194_p7 = por %p2193_p4, %p2192_p3 }
 0x879   : > { %vm1326_vm4 = vmor %vm1324_vm3, %vm1325_vm15 }
 0x87a   : > { %v1321_v4 = vsub.f32 1.0, %v1320_v10  ;;  %p2190_p2 = pneg %p2189_p1 }
 0x87c   : > { %v1322_v12 = vmul.f32 %v2044_v9, %v1321_v4  ;;  %p2195_p8 = pnand %p2194_p7, %p2190_p2 }
 0x87e   : > { %v1323_v14 = vadd.f32 %v2044_v9, %v1322_v12  ;;  %v1559_v12 = vld [vmem:[%s2820_s20 + $0x8] sm:$0xff] }
 0x880   : > { %v1327_v16 = vsel %vm1326_vm4, %v2044_v9, %v1323_v14  ;;  %v2022_v9 = vld [vmem:[%s2817_s17] ss:$0 sm:$0xff] }
 0x881   : > { %v1332_v18 = vsel %vm1329_vm5, %v1331_v15, %v1327_v16  ;;  %v2023_v14 = vld [vmem:[#allocation2] ss:$0 sm:$0xff] }
 0x882   : > { %v1333_v19 = vmul.f32 %v2040_v0, %v1332_v18 }
 0x884   : > { %1902 = vmatmul.msk.f32.vlgmr.msrb.gmra.mxu3 %vm989_vm2, %v1333_v19  ;;  %1334 = vst.msk [vmem:[%s2671_s0] sm:$0xff] %vm989_vm2, %v1333_v19  ;;  %v2024_v19 = vld [vmem:[#allocation5] ss:$0 sm:$0xff] }
 0x8cb   : > { %v1399_v21 = vpop.xlane.xlu1 %1398 }
 0x8cc   : > { %2045 = vrcp.f32 %v1399_v21  ;;  %v1411_v25 = vand.u32 2147483648, %v1399_v21  ;;  %v1409_v27 = vand.u32 2147483647, %v1399_v21  ;;  %vm1405_vm7 = vweird.f32 %v1399_v21 }
 0x8ce   : > { %v1412_v29 = vor.u32 1.1754944e-38, %v1411_v25  ;;  %vm1410_vm9 = vcmp.eq.f32.partialorder %v1409_v27, 8.507059e+37 }
 0x8d2   : > { %v2046_v22 = vpop.eup %2045 }
 0x8d3   : > { %v1401_v23 = vmul.f32 %v2046_v22, %v1399_v21  ;;  %vm1406_vm6 = vweird.f32 %v2046_v22 }
 0x8d4   : > { %vm1407_vm8 = vmor %vm1405_vm7, %vm1406_vm6 }
 0x8d5   : > { %v1402_v24 = vsub.f32 1.0, %v1401_v23 }
 0x8d7   : > { %v1403_v26 = vmul.f32 %v2046_v22, %v1402_v24 }
 0x8d9   : > { %v1404_v28 = vadd.f32 %v2046_v22, %v1403_v26 }
 0x8db   : > { %v1408_v30 = vsel %vm1407_vm8, %v2046_v22, %v1404_v28 }
 0x8dc   : > { %v1413_v31 = vsel %vm1410_vm9, %v1412_v29, %v1408_v30 }
 0x8dd   : > { %v1414_v32 = vmul.f32 %v2042_v6, %v1413_v31  ;;  %v2021_v6 = vld [vmem:[%s2816_s16] ss:$0 sm:$0xff] }
 0x8df   : > { %1905 = vst.msk [vmem:[%s2671_s0 + $0x8] sm:$0xff] %vm989_vm2, %v1414_v32 }
 0x8e3   : > { %v1418_v33 = vpop.permute.xlu1 %1417 }
 0x8e4   : > { %1438 = vmatpush.msra.mxu2 %v1418_v33 }
 0x8e5   : > { %1906 = vmatmul.msk.f32.vlgmr.msra.gmra.mxu2 %vm989_vm2, %v1414_v32 }
 0x8e6   : > { %1582 = vmatpush.msrb.mxu2 %v1565_v55 }
 0x8e8   : > { %1583 = vmatpush.msrb.mxu2 %v1564_v56 }
 0x8ea   : > { %1584 = vmatpush.msrb.mxu2 %v1563_v57 }
 0x8ec   : > { %1585 = vmatpush.msrb.mxu2 %v1562_v60 }
 0x8ee   : > { %1586 = vmatpush.msrb.mxu2 %v1561_v62 }
 0x8f0   : > { %1587 = vmatpush.msrb.mxu2 %v1560_v11 }
 0x8f2   : > { %1588 = vmatpush.msrb.mxu2 %v1559_v12 }
 0x8f4   : > { %1589 = vmatpush.msrb.mxu2 %v1558_v13 }
 0x907   : > { %v1358_v36 = vpop.f32.mrf.mxu3 }
 0x908   : > { %1908 = vmatmul.msk.f32.vlgmr.msra.gmra.mxu3 %vm961_vm1, %v1358_v36 }
 0x968   : > { %v1440_v38 = vpop.f32.mrf.mxu2 }
 0x969   : > { %1907 = vmatmul.msk.f32.vlgmr.msrb.gmra.mxu1 %vm961_vm1, %v1440_v38 }
 0x98b   : > { %v1486_v40 = vpop.f32.mrf.mxu3 }
 0x9e6   : > { %v1463_v41 = vpop.f32.mrf.mxu1 }
 0x9e7   : > { %v1487_v42 = vadd.f32 %v1486_v40, %v1463_v41 }
 0x9e9   : > { %v1492_v43 = vadd.f32 %v2020_v39, %v1487_v42 }
 0x9eb   : > { %v1493_v45 = vadd.f32 %v1492_v43, %v2645_v44  ;;  %v1528_v44 = vld [vmem:[%s2818_s18 + $0x10] sm:$0xff] }
 0x9ec   : > { %1550 = vmatpush.msrb.mxu0 %v1528_v44 }
 0x9ed   : > { %v1496_v46 = vsel %vm928_vm0, %v1493_v45, 0.0 }
 0x9ee   : > { %1497 = vadd.xlane.f32.xlu2 %v1496_v46  ;;  %1551 = vmatpush.msrb.mxu0 %v1527_v53 }
 0x9f0   : > { %1552 = vmatpush.msrb.mxu0 %v1526_v54 }
 0xa61   : > { %v1498_v47 = vpop.xlane.xlu2 %1497 }
 0xa62   : > { %v1499_v48 = vmul.f32 %v1498_v47, %v2613_v17 }
 0xa64   : > { %v1500_v49 = vsub.f32 %v1493_v45, %v1499_v48 }
 0xa66   : > { %v1501_v50 = vmul.f32 %v1500_v49, %v1500_v49 }
 0xa68   : > { %v1502_v51 = vsel %vm928_vm0, %v1501_v50, 0.0 }
 0xa69   : > { %1503 = vadd.xlane.f32.xlu0 %v1502_v51 }
 0xadc   : > { %v1504_v58 = vpop.xlane.xlu0 %1503 }
 0xadd   : > { %v1505_v59 = vmul.f32 %v1504_v58, %v2613_v17 }
 0xadf   : > { %v1506_v61 = vadd.f32 1e-06, %v1505_v59 }
 0xae1   : > { %2047 = vrsqrt.f32 %v1506_v61  ;;  %vm1513_vm2 = vweird.f32 %v1506_v61 }
 0xae7   : > { %v2048_v63 = vpop.eup %2047 }
 0xae8   : > { %v1508_v0 = vmul.f32 %v2048_v63, %v1506_v61  ;;  %vm1514_vm1 = vweird.f32 %v2048_v63 }
 0xae9   : > { %vm1515_vm10 = vmor %vm1513_vm2, %vm1514_vm1 }
 0xaea   : > { %v1509_v1 = vmul.f32 %v2048_v63, %v1508_v0 }
 0xaec   : > { %v1510_v2 = vmul.f32 0.5, %v1509_v1 }
 0xaee   : > { %v1511_v3 = vsub.f32 1.5, %v1510_v2 }
 0xaf0   : > { %v1512_v5 = vmul.f32 %v2048_v63, %v1511_v3 }
 0xaf2   : > { %v1516_v7 = vsel %vm1515_vm10, %v2048_v63, %v1512_v5 }
 0xaf3   : > { %v1517_v8 = vmul.f32 %v1516_v7, %v1500_v49 }
 0xaf5   : > { %v1521_v10 = vmul.f32 %v2021_v6, %v1517_v8 }
 0xaf7   : > { %v1525_v4 = vadd.f32 %v2022_v9, %v1521_v10 }
 0xaf9   : > { %1909 = vmatmul.msk.f32.vlgmr.msrb.gmra.mxu0 %vm928_vm0, %v1525_v4 }
 0xb76   : > { %v1554_v15 = vpop.f32.mrf.mxu0 }
 0xb77   : > { %v1555_v16 = vadd.f32 %v2023_v14, %v1554_v15 }
 0xb79   : > { %v1557_v18 = vmax.f32 %v1555_v16, 0.0 }
 0xb7b   : > { %1910 = vmatmul.msk.f32.vlgmr.msrb.gmra.mxu2 %vm1570_vm11, %v1557_v18 }
 0xbfe   : > { %v1591_v20 = vpop.f32.mrf.mxu2 }
 0xbff   : > { %v1592_v21 = vadd.f32 %v2024_v19, %v1591_v20 }
 0xc01   : > { %v1594_v22 = vadd.f32 %v1592_v21, %v1525_v4 }
 0xc03   : > { %v1597_v23 = vsel %vm928_vm0, %v1594_v22, 0.0 }
 0xc04   : > { %1598 = vadd.xlane.f32.xlu1 %v1597_v23 }
 0xc77   : > { %v1599_v24 = vpop.xlane.xlu1 %1598 }
 0xc78   : > { %v1600_v25 = vmul.f32 %v1599_v24, %v2613_v17 }
 0xc7a   : > { %v1601_v26 = vsub.f32 %v1594_v22, %v1600_v25 }
 0xc7c   : > { %v1602_v27 = vmul.f32 %v1601_v26, %v1601_v26 }
 0xc7e   : > { %v1603_v28 = vsel %vm928_vm0, %v1602_v27, 0.0 }
 0xc7f   : > { %1604 = vadd.xlane.f32.xlu0 %v1603_v28 }
 0xc80   : > { %2198 = shalt.err (!%p2195_p8)
}
 0xc81   : > { %s2289_s27 = smov 128   ;;  %s2290_s6 = smov 8  }
 0xc82   : > { %1937 = dma.vmem_to_hbm [thread:$0]  (%p2464_p5), %s1654_s22, 256, %s1656_s5, %s1633_s4, %s2289_s27, %s2289_s27, %s2290_s6  }
 0xc83   : > { %s1670_s28 = sshll.u32 %s2671_s0, 4  ;;  %s1672_s9 = sshll.u32 %s1669_s30, 4  ;;  %s1671_s28 = int_to_ptr.vmem [resolvable:$true] %s1670_s28  ;;  %s1673_s9 = int_to_ptr.hbm [resolvable:$true] %s1672_s9 }
 0xc84   : > { %s1638_s12 = scalar_lea.sflag [#allocation12], %s2560_s19  ;;  %s2213_s7 = sshra.s32 %s1673_s9, 4  ;;  %s2214_s7 = int_to_ptr.hbm [resolvable:$true] %s2213_s7 }
 0xc85   : > { %s2215_s13 = scalar_lea.hbm %s2214_s7, 16  ;;  %s2219_s8 = scalar_lea.hbm %s2826_s26, 32 }
 0xc86   : > { %p2216_p9 = scmp.ne.s32.totalorder %s2214_s7, %s2215_s13  ;;  %p2220_p12 = scmp.lt.s32.totalorder %s2214_s7, %s2826_s26 }
 0xc87   : > { %p2221_p13 = scmp.lt.s32.totalorder %s2219_s8, %s2215_s13 }
 0xc88   : > { %p2217_p10 = pnand %p2216_p9, %p2464_p5 }
 0xc89   : > { %p2222_p0 = por %p2221_p13, %p2220_p12 }
 0xc8a   : > { %p2218_p11 = pneg %p2217_p10 }
 0xc8c   : > { %p2223_p1 = pnand %p2222_p0, %p2218_p11 }
 0xc8e   : > { %2226 = shalt.err (!%p2223_p1)
}
 0xc8f   : > { %1938 = dma.vmem_to_hbm [thread:$0]  (%p2464_p5), %s1671_s28, 256, %s1673_s9, %s1638_s12, %s2289_s27, %s2289_s27, %s2290_s6   ;;  %v2025_v38 = vld [vmem:[#allocation7] ss:$0 sm:$0xff]  ;;  %v2026_v40 = vld [vmem:[#allocation8] ss:$0 sm:$0xff] }
 0xc90   : > { %s2893_s0 = sld [smem:[#allocation41_spill]] }
 0xc96   : > { %s917_s30 = scalar_lea.vmem %s2893_s0, %s2523_s21 }
 0xcf2   : > { %v1605_v29 = vpop.xlane.xlu0 %1604 }
 0xcf3   : > { %v1606_v30 = vmul.f32 %v1605_v29, %v2613_v17 }
 0xcf5   : > { %v1607_v31 = vadd.f32 1e-06, %v1606_v30 }
 0xcf7   : > { %2049 = vrsqrt.f32 %v1607_v31  ;;  %vm1614_vm13 = vweird.f32 %v1607_v31 }
 0xcfd   : > { %v2050_v32 = vpop.eup %2049 }
 0xcfe   : > { %v1609_v33 = vmul.f32 %v2050_v32, %v1607_v31  ;;  %vm1615_vm12 = vweird.f32 %v2050_v32 }
 0xcff   : > { %vm1616_vm14 = vmor %vm1614_vm13, %vm1615_vm12 }
 0xd00   : > { %v1610_v34 = vmul.f32 %v2050_v32, %v1609_v33 }
 0xd02   : > { %v1611_v35 = vmul.f32 0.5, %v1610_v34 }
 0xd04   : > { %v1612_v36 = vsub.f32 1.5, %v1611_v35 }
 0xd06   : > { %v1613_v37 = vmul.f32 %v2050_v32, %v1612_v36 }
 0xd08   : > { %v1617_v39 = vsel %vm1616_vm14, %v2050_v32, %v1613_v37 }
 0xd09   : > { %v1618_v41 = vmul.f32 %v1617_v39, %v1601_v26 }
 0xd0b   : > { %v1622_v42 = vmul.f32 %v2025_v38, %v1618_v41 }
 0xd0d   : > { %v1626_v17 = vadd.f32 %v2026_v40, %v1622_v42 }
 0xd0f   : > { %1627 = vst.msk [vmem:[%s917_s30] sm:$0xff] %vm928_vm0, %v1626_v17 }
 0xd10 PF: > { %s2894_s22 = sld [smem:[#allocation20_spill]] }
 0xd11   : > { %s2895_s5 = sld [smem:[#allocation18_spill]] }
 0xd16   : > { %p1969_p5 = scmp.ge.s32.totalorder %s2894_s22, 2 }
 0xd17   : > { %s1694_s27 = sand.u32 1, %s2895_s5  }
 0xd18   : > { %p1955_p2 = pnand %p1969_p5, %p2468_p6  ;;  %s1695_s6 = scalar_lea.sflag [#allocation4], %s1694_s27 }
 0xd1a   : > { %p1956_p3 = pneg %p1955_p2 }
 0xd1c   : > { %2256 = dma.done.wait (%p1956_p3), %s1695_s6, 256  }
 0xd1d   : > { %2258 = vsyncadd (%p1956_p3), %s1695_s6, 4294967040  ;;  %s1705_s28 = scalar_lea.sflag [#allocation12], %s1694_s27 }
 0xd1e   : > { %2260 = dma.done.wait (%p1956_p3), %s1705_s28, 256  }
 0xd1f   : > { %2262 = vsyncadd (%p1956_p3), %s1705_s28, 4294967040  ;;  %s2897_s28 = sld [smem:[#allocation21_spill]]  ;;  %s2900_s27 = smov %s2269_s3 }
 0xd20   : > { %s2898_s21 = sld [smem:[#allocation19_spill]] }
 0xd21   : > { %s2899_s7 = sld [smem:[#allocation22_spill]] }
 0xd25   : > { %p43_p4 = scmp.ge.s32.totalorder %s2897_s28, 4  }
 0xd26   : > { %s2901_s3 = smov %s2898_s21 }
 0xd27   :  { %45 = sbr.rel (!%p43_p4) target bundleno = 27 (0x1b), region = 208 }
 0xd2c   :  { %1711 = vsyncpa [#allocation3], 1 }
 0xd2d   :  { %1713 = vsyncpa [#allocation3 + $0x1], 1 }
 0xd2e   :  { %1714 = vsyncpa [#allocation6], 1 }
 0xd2f   :  { %1715 = vsyncpa [#allocation9], 1 }
 0xd30   :  { %1716 = vsyncpa [#allocation4], 1 }
 0xd31   :  { %1718 = vsyncpa [#allocation4 + $0x1], 1 }
 0xd32   :  { %1719 = vsyncpa [#allocation12], 1 }
 0xd33   :  { %1721 = vsyncpa [#allocation12 + $0x1], 1 }

</bundles_post_ra>
